<compile_context>
chip_gen: v7x
topology: tpu7x:2x2x1
jax: 0.10.0
libtpu: 0.0.40
codegen_flags: <defaults>
</compile_context>

<pallas_src>
import jax
import jax.numpy as jnp
from jax import lax
from jax.experimental import pallas as pl
from jax.experimental.pallas import tpu as pltpu

BN_EPS = 1e-5  # nn.BatchNorm2d default


# ----------------------------------------------------------------------------- kernel
def _res_sep_up_kernel(xc_ref, s1_ref, t1_ref, d1_ref, p1_ref,
                       s2_ref, t2_ref, d2_ref, p2_ref,
                       ws_ref, bs_ref, d3_ref, p3_ref,
                       o_ref, pad1_ref, pad2_ref):
    # xc_ref : (1, Ho, Wo, Ci)  raw concat([up(x), conc]) for one batch element
    # s*/t*  : (1, C)           folded BatchNorm scale / shift
    # d*_ref : (3, 3, 1, C)     depthwise 3x3 weights (per-channel)
    # p*_ref : (Cin_stage, Cout_stage) pointwise 1x1 weights
    # ws/bs  : (Ci, Co) / (1, Co)      shortcut 1x1 conv weight / bias
    # o_ref  : (1, Ho, Wo, Co)
    # pad1/2 : VMEM scratch (Ho+2, Wo+16, C); interior lives at [1:Ho+1, 8:8+Wo, :]
    _, Ho, Wo, Ci = xc_ref.shape
    Co = o_ref.shape[3]
    HW = Ho * Wo
    W0 = 8  # sublane-aligned interior column offset inside the padded scratches

    # Re-zero only the 1-pixel halo the 3x3 taps actually read.  The interior is fully
    # overwritten every call (no full memset on the store slot), and doing it every grid
    # step keeps it correct when the batch axis is sharded across TensorCores.
    for ref in (pad1_ref, pad2_ref):
        Hp, Wp, C = ref.shape
        zrow = jnp.zeros((1, Wp, C), jnp.float32)
        zcol = jnp.zeros((Hp, 1, C), jnp.float32)
        ref[0:1, :, :] = zrow
        ref[Ho + 1:Ho + 2, :, :] = zrow
        ref[:, W0 - 1:W0, :] = zcol
        ref[:, W0 + Wo:W0 + Wo + 1, :] = zcol

    def sep_depthwise(pad_ref, dw_ref, act2d, C):
        # depthwise 3x3, padding=1: write the activation into the aligned scratch
        # interior, accumulate 9 shifted windows * per-channel weights (VPU work).
        pad_ref[1:Ho + 1, W0:W0 + Wo, :] = act2d.reshape(Ho, Wo, C)
        acc = None
        for ky in range(3):
            for kx in range(3):
                win = pad_ref[ky:ky + Ho, W0 - 1 + kx:W0 - 1 + kx + Wo, :]
                term = win.reshape(HW, C) * dw_ref[ky, kx, :, :]
                acc = term if acc is None else acc + term
        return acc  # (HW, C) float32

    # ---- conv_block: BN1 -> ReLU -> SepConv1 -> BN2 -> ReLU -> SepConv2 ----
    xc = xc_ref[0, :, :, :].reshape(HW, Ci)
    a1 = jnp.maximum(xc * s1_ref[...] + t1_ref[...], 0.0)
    h = sep_depthwise(pad1_ref, d1_ref, a1, Ci)
    h = jnp.dot(h, p1_ref[...], preferred_element_type=jnp.float32)      # pointwise 1
    a2 = jnp.maximum(h * s2_ref[...] + t2_ref[...], 0.0)
    h = sep_depthwise(pad2_ref, d2_ref, a2, Co)
    x2 = jnp.dot(h, p2_ref[...], preferred_element_type=jnp.float32)     # pointwise 2
    # TODO(synk): Dropout(p=0.3) is identity here (inference mode); training-mode
    # stochastic masking is not implemented in-kernel.

    # ---- shortcut: 1x1 conv (with bias) on the raw concat, then residual add ----
    # (re-read the VMEM block instead of keeping the (HW, Ci) value live across both
    #  separable convs, to limit vreg pressure / spills)
    xs = jnp.dot(xc_ref[0, :, :, :].reshape(HW, Ci), ws_ref[...],
                 preferred_element_type=jnp.float32) + bs_ref[...]

    # ---- conv_relu2: SepConv3 -> ReLU ----
    h = sep_depthwise(pad2_ref, d3_ref, xs + x2, Co)
    h = jnp.dot(h, p3_ref[...], preferred_element_type=jnp.float32)      # pointwise 3
    h = jnp.maximum(h, 0.0)
    o_ref[0, :, :, :] = h.reshape(Ho, Wo, Co).astype(o_ref.dtype)


# ---------------------------------------------------------------------------- wrapper
def _round_up(n, m):
    return ((n + m - 1) // m) * m


def _pad_to(a, shape):
    return jnp.pad(a, [(0, t - s) for s, t in zip(a.shape, shape)])


def _conv_transpose_2x2(x_nhwc, w, b):
    """ConvTranspose2d(k=2, s=2): out[n, 2i+ki, 2j+kj, co] = x[n,i,j,:] @ w[:,co,ki,kj] + b."""
    n, h, wd, _ = x_nhwc.shape
    co = w.shape[1]
    t = jnp.einsum('nhwi,iokl->nhkwlo', x_nhwc, w,
                   precision=jax.lax.Precision.HIGHEST)
    return t.reshape(n, 2 * h, 2 * wd, co) + b.reshape(1, 1, 1, -1)


def res_sep_preactivation_up_pallas(x_nchw, conc_nchw, p):
    """x: (N, Cin, H, W), conc: (N, Cin - Cout, 2H, 2W)  ->  (N, Cout, 2H, 2W)."""
    N, Cin, H, W = x_nchw.shape
    Cout = p['up_w'].shape[1]
    Ho, Wo = 2 * H, 2 * W
    assert conc_nchw.shape == (N, Cin - Cout, Ho, Wo)

    x = jnp.transpose(x_nchw, (0, 2, 3, 1)).astype(jnp.float32)
    conc = jnp.transpose(conc_nchw, (0, 2, 3, 1)).astype(jnp.float32)

    # TODO(synk): the ConvTranspose2d(k=2,s=2) upsample and the channel concat are done
    # in plain JAX; the stride-2 interleaved scatter has no lane/sublane-aligned Pallas
    # store pattern.  Everything from BN1 onwards is fused in the kernel.
    xup = _conv_transpose_2x2(x, p['up_w'], p['up_b'])
    xconc = jnp.concatenate([xup, conc], axis=-1)              # (N, Ho, Wo, Cin)

    # Zero-pad channels to multiples of 128 so every in-kernel tensor is lane-dense.
    Ci = _round_up(Cin, 128)
    Co = _round_up(Cout, 128)
    xconc = _pad_to(xconc, (N, Ho, Wo, Ci))

    s1 = _pad_to(p['bn1_s'].reshape(1, -1), (1, Ci))
    t1 = _pad_to(p['bn1_t'].reshape(1, -1), (1, Ci))
    d1 = _pad_to(p['dw1'].reshape(3, 3, 1, Cin), (3, 3, 1, Ci))
    p1 = _pad_to(p['pw1'], (Ci, Co))
    s2 = _pad_to(p['bn2_s'].reshape(1, -1), (1, Co))
    t2 = _pad_to(p['bn2_t'].reshape(1, -1), (1, Co))
    d2 = _pad_to(p['dw2'].reshape(3, 3, 1, Cout), (3, 3, 1, Co))
    p2 = _pad_to(p['pw2'], (Co, Co))
    ws = _pad_to(p['sc_w'], (Ci, Co))
    bs = _pad_to(p['sc_b'].reshape(1, -1), (1, Co))
    d3 = _pad_to(p['dw3'].reshape(3, 3, 1, Cout), (3, 3, 1, Co))
    p3 = _pad_to(p['pw3'], (Co, Co))

    def full_spec(shape):
        return pl.BlockSpec(shape, lambda n, r=len(shape): (0,) * r)

    out = pl.pallas_call(
        _res_sep_up_kernel,
        out_shape=jax.ShapeDtypeStruct((N, Ho, Wo, Co), jnp.float32),
        grid=(N,),
        in_specs=[
            pl.BlockSpec((1, Ho, Wo, Ci), lambda n: (n, 0, 0, 0)),
            full_spec((1, Ci)), full_spec((1, Ci)),
            full_spec((3, 3, 1, Ci)), full_spec((Ci, Co)),
            full_spec((1, Co)), full_spec((1, Co)),
            full_spec((3, 3, 1, Co)), full_spec((Co, Co)),
            full_spec((Ci, Co)), full_spec((1, Co)),
            full_spec((3, 3, 1, Co)), full_spec((Co, Co)),
        ],
        out_specs=pl.BlockSpec((1, Ho, Wo, Co), lambda n: (n, 0, 0, 0)),
        scratch_shapes=[
            pltpu.VMEM((Ho + 2, Wo + 16, Ci), jnp.float32),   # SepConv1 padded input
            pltpu.VMEM((Ho + 2, Wo + 16, Co), jnp.float32),   # SepConv2/3 padded input
        ],
        compiler_params=pltpu.CompilerParams(
            # batch elements are independent -> shard the grid across v7x's 2 TCs
            dimension_semantics=("parallel",),
            vmem_limit_bytes=48 * 1024 * 1024,
        ),
        # TODO(synk): for large H/W/C add a row-block grid axis with a 1-row halo per
        # separable conv so tiles also fit v7x's 64 MiB VMEM.
    )(xconc, s1, t1, d1, p1, s2, t2, d2, p2, ws, bs, d3, p3)

    return jnp.transpose(out[..., :Cout], (0, 3, 1, 2))


# -------------------------------------------------------------------------- reference
def _depthwise3x3_ref(x, d):
    return lax.conv_general_dilated(
        x, d.reshape(3, 3, 1, -1), window_strides=(1, 1), padding='SAME',
        dimension_numbers=('NHWC', 'HWIO', 'NHWC'),
        feature_group_count=x.shape[-1],
        precision=jax.lax.Precision.HIGHEST)


def _pointwise_ref(x, w):
    return jnp.einsum('nhwc,co->nhwo', x, w, precision=jax.lax.Precision.HIGHEST)


def res_sep_preactivation_up_ref(x_nchw, conc_nchw, p):
    """Plain-JAX eval-mode transcription of the PyTorch forward (correctness check)."""
    x = jnp.transpose(x_nchw, (0, 2, 3, 1)).astype(jnp.float32)
    conc = jnp.transpose(conc_nchw, (0, 2, 3, 1)).astype(jnp.float32)
    xup = _conv_transpose_2x2(x, p['up_w'], p['up_b'])
    xc = jnp.concatenate([xup, conc], axis=-1)
    h = jnp.maximum(xc * p['bn1_s'] + p['bn1_t'], 0.0)
    h = _pointwise_ref(_depthwise3x3_ref(h, p['dw1']), p['pw1'])
    h = jnp.maximum(h * p['bn2_s'] + p['bn2_t'], 0.0)
    x2 = _pointwise_ref(_depthwise3x3_ref(h, p['dw2']), p['pw2'])
    xs = _pointwise_ref(xc, p['sc_w']) + p['sc_b']
    h = xs + x2                                                # Dropout = identity (eval)
    h = jnp.maximum(_pointwise_ref(_depthwise3x3_ref(h, p['dw3']), p['pw3']), 0.0)
    return jnp.transpose(h, (0, 3, 1, 2))


# ----------------------------------------------------------------------------- params
def make_params(key, cin, cout):
    """Deterministic synthetic parameters in math-friendly layouts.

    up_w : (Cin, Cout, 2, 2)  == torch ConvTranspose2d weight, up_b: (Cout,)
    dw*  : (3, 3, C)          == torch depthwise weight (C,1,3,3) transposed
    pw*  : (Cin, Cout)        == torch 1x1 weight (Cout,Cin,1,1)[:, :, 0, 0].T
    bn*_s / bn*_t             == folded eval-mode BatchNorm scale / shift
    """
    ks = iter(jax.random.split(key, 24))

    def rnd(shape, scale=0.1):
        return scale * jax.random.normal(next(ks), shape, jnp.float32)

    def bn_fold(c):
        gamma = 1.0 + rnd((c,))
        beta = rnd((c,))
        mean = rnd((c,))
        var = jnp.abs(1.0 + rnd((c,)))
        s = gamma / jnp.sqrt(var + BN_EPS)
        return s, beta - mean * s

    p = {'up_w': rnd((cin, cout, 2, 2)), 'up_b': rnd((cout,))}
    p['bn1_s'], p['bn1_t'] = bn_fold(cin)
    p['dw1'] = rnd((3, 3, cin))
    p['pw1'] = rnd((cin, cout))
    p['bn2_s'], p['bn2_t'] = bn_fold(cout)
    p['dw2'] = rnd((3, 3, cout))
    p['pw2'] = rnd((cout, cout))
    p['sc_w'] = rnd((cin, cout))
    p['sc_b'] = rnd((cout,))
    p['dw3'] = rnd((3, 3, cout))
    p['pw3'] = rnd((cout, cout))
    return p


if __name__ == "__main__":
    # typical UNet-up configuration: in_channels = 2 * out_channels, conc carries the rest
    N, Cin, Cout, H, W = 2, 8, 4, 8, 8
    key = jax.random.PRNGKey(0)
    kx, kc, kp = jax.random.split(key, 3)
    x = jax.random.normal(kx, (N, Cin, H, W), jnp.float32)
    conc = jax.random.normal(kc, (N, Cin - Cout, 2 * H, 2 * W), jnp.float32)
    params = make_params(kp, Cin, Cout)

    out = res_sep_preactivation_up_pallas(x, conc, params)
    out = jax.block_until_ready(out)

    ref = res_sep_preactivation_up_ref(x, conc, params)
    assert out.shape == (N, Cout, 2 * H, 2 * W)
    max_err = float(jnp.max(jnp.abs(out - ref)))
    assert jnp.allclose(out, ref, atol=2e-3, rtol=2e-3), \
        f"mismatch vs reference (max abs err {max_err})"
    print("KERNEL_OK")
</pallas_src>

<mosaic_0001>
module attributes {stable_mosaic.version = 11 : i64} {
  func.func @_res_sep_up_kernel(%arg0: i32, %arg1: memref<1x16x16x128xf32, #tpu.memory_space<vmem>>, %arg2: memref<1x128xf32, #tpu.memory_space<vmem>>, %arg3: memref<1x128xf32, #tpu.memory_space<vmem>>, %arg4: memref<3x3x1x128xf32, #tpu.memory_space<vmem>>, %arg5: memref<128x128xf32, #tpu.memory_space<vmem>>, %arg6: memref<1x128xf32, #tpu.memory_space<vmem>>, %arg7: memref<1x128xf32, #tpu.memory_space<vmem>>, %arg8: memref<3x3x1x128xf32, #tpu.memory_space<vmem>>, %arg9: memref<128x128xf32, #tpu.memory_space<vmem>>, %arg10: memref<128x128xf32, #tpu.memory_space<vmem>>, %arg11: memref<1x128xf32, #tpu.memory_space<vmem>>, %arg12: memref<3x3x1x128xf32, #tpu.memory_space<vmem>>, %arg13: memref<128x128xf32, #tpu.memory_space<vmem>>, %arg14: memref<1x16x16x128xf32, #tpu.memory_space<vmem>>, %arg15: memref<18x32x128xf32, #tpu.memory_space<vmem>>, %arg16: memref<18x32x128xf32, #tpu.memory_space<vmem>>) attributes {dimension_semantics = [#tpu.dimension_semantics<parallel>], iteration_bounds = array<i64: 2>, scalar_prefetch = 0 : i64, scratch_operands = 2 : i64, tpu.core_type = #tpu.core_type<tc>, window_params = [{transform_indices = @transform_0, window_bounds = array<i64: 1, 16, 16, 128>}, {pipeline_mode = #tpu.pipeline_mode<synchronous>, transform_indices = @transform_1, window_bounds = array<i64: 1, 128>}, {pipeline_mode = #tpu.pipeline_mode<synchronous>, transform_indices = @transform_2, window_bounds = array<i64: 1, 128>}, {pipeline_mode = #tpu.pipeline_mode<synchronous>, transform_indices = @transform_3, window_bounds = array<i64: 3, 3, 1, 128>}, {pipeline_mode = #tpu.pipeline_mode<synchronous>, transform_indices = @transform_4, window_bounds = array<i64: 128, 128>}, {pipeline_mode = #tpu.pipeline_mode<synchronous>, transform_indices = @transform_5, window_bounds = array<i64: 1, 128>}, {pipeline_mode = #tpu.pipeline_mode<synchronous>, transform_indices = @transform_6, window_bounds = array<i64: 1, 128>}, {pipeline_mode = #tpu.pipeline_mode<synchronous>, transform_indices = @transform_7, window_bounds = array<i64: 3, 3, 1, 128>}, {pipeline_mode = #tpu.pipeline_mode<synchronous>, transform_indices = @transform_8, window_bounds = array<i64: 128, 128>}, {pipeline_mode = #tpu.pipeline_mode<synchronous>, transform_indices = @transform_9, window_bounds = array<i64: 128, 128>}, {pipeline_mode = #tpu.pipeline_mode<synchronous>, transform_indices = @transform_10, window_bounds = array<i64: 1, 128>}, {pipeline_mode = #tpu.pipeline_mode<synchronous>, transform_indices = @transform_11, window_bounds = array<i64: 3, 3, 1, 128>}, {pipeline_mode = #tpu.pipeline_mode<synchronous>, transform_indices = @transform_12, window_bounds = array<i64: 128, 128>}, {transform_indices = @transform_13, window_bounds = array<i64: 1, 16, 16, 128>}]} {
    %cst = arith.constant 0.000000e+00 : f32
    %0 = vector.broadcast %cst : f32 to vector<1x32x128xf32>
    %cst_0 = arith.constant 0.000000e+00 : f32
    %1 = vector.broadcast %cst_0 : f32 to vector<18x1x128xf32>
    %c0 = arith.constant 0 : index
    %c0_1 = arith.constant 0 : index
    %c0_2 = arith.constant 0 : index
    %2 = vector.load %arg15[%c0, %c0_1, %c0_2] : memref<18x32x128xf32, #tpu.memory_space<vmem>>, vector<1x32x128xf32>
    tpu.vector_store %arg15[%c0, %c0_1, %c0_2], %0 {strides = array<i32>} : memref<18x32x128xf32, #tpu.memory_space<vmem>>, vector<1x32x128xf32>,
    %c17 = arith.constant 17 : index
    %c0_3 = arith.constant 0 : index
    %c0_4 = arith.constant 0 : index
    %3 = vector.load %arg15[%c17, %c0_3, %c0_4] : memref<18x32x128xf32, #tpu.memory_space<vmem>>, vector<1x32x128xf32>
    tpu.vector_store %arg15[%c17, %c0_3, %c0_4], %0 {strides = array<i32>} : memref<18x32x128xf32, #tpu.memory_space<vmem>>, vector<1x32x128xf32>,
    %c0_5 = arith.constant 0 : index
    %c7 = arith.constant 7 : index
    %c0_6 = arith.constant 0 : index
    %4 = vector.load %arg15[%c0_5, %c7, %c0_6] : memref<18x32x128xf32, #tpu.memory_space<vmem>>, vector<18x1x128xf32>
    tpu.vector_store %arg15[%c0_5, %c7, %c0_6], %1 {strides = array<i32>} : memref<18x32x128xf32, #tpu.memory_space<vmem>>, vector<18x1x128xf32>,
    %c0_7 = arith.constant 0 : index
    %c24 = arith.constant 24 : index
    %c0_8 = arith.constant 0 : index
    %5 = vector.load %arg15[%c0_7, %c24, %c0_8] : memref<18x32x128xf32, #tpu.memory_space<vmem>>, vector<18x1x128xf32>
    tpu.vector_store %arg15[%c0_7, %c24, %c0_8], %1 {strides = array<i32>} : memref<18x32x128xf32, #tpu.memory_space<vmem>>, vector<18x1x128xf32>,
    %cst_9 = arith.constant 0.000000e+00 : f32
    %6 = vector.broadcast %cst_9 : f32 to vector<1x32x128xf32>
    %cst_10 = arith.constant 0.000000e+00 : f32
    %7 = vector.broadcast %cst_10 : f32 to vector<18x1x128xf32>
    %c0_11 = arith.constant 0 : index
    %c0_12 = arith.constant 0 : index
    %c0_13 = arith.constant 0 : index
    %8 = vector.load %arg16[%c0_11, %c0_12, %c0_13] : memref<18x32x128xf32, #tpu.memory_space<vmem>>, vector<1x32x128xf32>
    tpu.vector_store %arg16[%c0_11, %c0_12, %c0_13], %6 {strides = array<i32>} : memref<18x32x128xf32, #tpu.memory_space<vmem>>, vector<1x32x128xf32>,
    %c17_14 = arith.constant 17 : index
    %c0_15 = arith.constant 0 : index
    %c0_16 = arith.constant 0 : index
    %9 = vector.load %arg16[%c17_14, %c0_15, %c0_16] : memref<18x32x128xf32, #tpu.memory_space<vmem>>, vector<1x32x128xf32>
    tpu.vector_store %arg16[%c17_14, %c0_15, %c0_16], %6 {strides = array<i32>} : memref<18x32x128xf32, #tpu.memory_space<vmem>>, vector<1x32x128xf32>,
    %c0_17 = arith.constant 0 : index
    %c7_18 = arith.constant 7 : index
    %c0_19 = arith.constant 0 : index
    %10 = vector.load %arg16[%c0_17, %c7_18, %c0_19] : memref<18x32x128xf32, #tpu.memory_space<vmem>>, vector<18x1x128xf32>
    tpu.vector_store %arg16[%c0_17, %c7_18, %c0_19], %7 {strides = array<i32>} : memref<18x32x128xf32, #tpu.memory_space<vmem>>, vector<18x1x128xf32>,
    %c0_20 = arith.constant 0 : index
    %c24_21 = arith.constant 24 : index
    %c0_22 = arith.constant 0 : index
    %11 = vector.load %arg16[%c0_20, %c24_21, %c0_22] : memref<18x32x128xf32, #tpu.memory_space<vmem>>, vector<18x1x128xf32>
    tpu.vector_store %arg16[%c0_20, %c24_21, %c0_22], %7 {strides = array<i32>} : memref<18x32x128xf32, #tpu.memory_space<vmem>>, vector<18x1x128xf32>,
    %c0_23 = arith.constant 0 : index
    %c0_24 = arith.constant 0 : index
    %c0_25 = arith.constant 0 : index
    %c0_26 = arith.constant 0 : index
    %12 = vector.load %arg1[%c0_23, %c0_24, %c0_25, %c0_26] : memref<1x16x16x128xf32, #tpu.memory_space<vmem>>, vector<1x16x16x128xf32>
    %13 = vector.shape_cast %12 : vector<1x16x16x128xf32> to vector<16x16x128xf32>
    %14 = vector.shape_cast %13 : vector<16x16x128xf32> to vector<256x128xf32>
    %c0_27 = arith.constant 0 : index
    %c0_28 = arith.constant 0 : index
    %15 = vector.load %arg2[%c0_27, %c0_28] : memref<1x128xf32, #tpu.memory_space<vmem>>, vector<1x128xf32>
    %16 = vector.broadcast %15 : vector<1x128xf32> to vector<256x128xf32>
    %17 = arith.mulf %14, %16 : vector<256x128xf32>
    %c0_29 = arith.constant 0 : index
    %c0_30 = arith.constant 0 : index
    %18 = vector.load %arg3[%c0_29, %c0_30] : memref<1x128xf32, #tpu.memory_space<vmem>>, vector<1x128xf32>
    %19 = vector.broadcast %18 : vector<1x128xf32> to vector<256x128xf32>
    %20 = arith.addf %17, %19 : vector<256x128xf32>
    %cst_31 = arith.constant 0.000000e+00 : f32
    %21 = vector.broadcast %cst_31 : f32 to vector<256x128xf32>
    %22 = arith.maximumf %20, %21 : vector<256x128xf32>
    %23 = vector.shape_cast %22 : vector<256x128xf32> to vector<16x16x128xf32>
    %c1 = arith.constant 1 : index
    %c8 = arith.constant 8 : index
    %c0_32 = arith.constant 0 : index
    %24 = vector.load %arg15[%c1, %c8, %c0_32] : memref<18x32x128xf32, #tpu.memory_space<vmem>>, vector<16x16x128xf32>
    tpu.vector_store %arg15[%c1, %c8, %c0_32], %23 {strides = array<i32>} : memref<18x32x128xf32, #tpu.memory_space<vmem>>, vector<16x16x128xf32>,
    %c0_33 = arith.constant 0 : index
    %c7_34 = arith.constant 7 : index
    %c0_35 = arith.constant 0 : index
    %25 = vector.load %arg15[%c0_33, %c7_34, %c0_35] : memref<18x32x128xf32, #tpu.memory_space<vmem>>, vector<16x16x128xf32>
    %26 = vector.shape_cast %25 : vector<16x16x128xf32> to vector<256x128xf32>
    %c0_36 = arith.constant 0 : index
    %c0_37 = arith.constant 0 : index
    %c0_38 = arith.constant 0 : index
    %c0_39 = arith.constant 0 : index
    %27 = vector.load %arg4[%c0_36, %c0_37, %c0_38, %c0_39] : memref<3x3x1x128xf32, #tpu.memory_space<vmem>>, vector<1x1x1x128xf32>
    %28 = vector.shape_cast %27 : vector<1x1x1x128xf32> to vector<1x128xf32>
    %29 = vector.broadcast %28 : vector<1x128xf32> to vector<256x128xf32>
    %30 = arith.mulf %26, %29 : vector<256x128xf32>
    %c0_40 = arith.constant 0 : index
    %c8_41 = arith.constant 8 : index
    %c0_42 = arith.constant 0 : index
    %31 = vector.load %arg15[%c0_40, %c8_41, %c0_42] : memref<18x32x128xf32, #tpu.memory_space<vmem>>, vector<16x16x128xf32>
    %32 = vector.shape_cast %31 : vector<16x16x128xf32> to vector<256x128xf32>
    %c0_43 = arith.constant 0 : index
    %c1_44 = arith.constant 1 : index
    %c0_45 = arith.constant 0 : index
    %c0_46 = arith.constant 0 : index
    %33 = vector.load %arg4[%c0_43, %c1_44, %c0_45, %c0_46] : memref<3x3x1x128xf32, #tpu.memory_space<vmem>>, vector<1x1x1x128xf32>
    %34 = vector.shape_cast %33 : vector<1x1x1x128xf32> to vector<1x128xf32>
    %35 = vector.broadcast %34 : vector<1x128xf32> to vector<256x128xf32>
    %36 = arith.mulf %32, %35 : vector<256x128xf32>
    %37 = arith.addf %30, %36 : vector<256x128xf32>
    %c0_47 = arith.constant 0 : index
    %c9 = arith.constant 9 : index
    %c0_48 = arith.constant 0 : index
    %38 = vector.load %arg15[%c0_47, %c9, %c0_48] : memref<18x32x128xf32, #tpu.memory_space<vmem>>, vector<16x16x128xf32>
    %39 = vector.shape_cast %38 : vector<16x16x128xf32> to vector<256x128xf32>
    %c0_49 = arith.constant 0 : index
    %c2 = arith.constant 2 : index
    %c0_50 = arith.constant 0 : index
    %c0_51 = arith.constant 0 : index
    %40 = vector.load %arg4[%c0_49, %c2, %c0_50, %c0_51] : memref<3x3x1x128xf32, #tpu.memory_space<vmem>>, vector<1x1x1x128xf32>
    %41 = vector.shape_cast %40 : vector<1x1x1x128xf32> to vector<1x128xf32>
    %42 = vector.broadcast %41 : vector<1x128xf32> to vector<256x128xf32>
    %43 = arith.mulf %39, %42 : vector<256x128xf32>
    %44 = arith.addf %37, %43 : vector<256x128xf32>
    %c1_52 = arith.constant 1 : index
    %c7_53 = arith.constant 7 : index
    %c0_54 = arith.constant 0 : index
    %45 = vector.load %arg15[%c1_52, %c7_53, %c0_54] : memref<18x32x128xf32, #tpu.memory_space<vmem>>, vector<16x16x128xf32>
    %46 = vector.shape_cast %45 : vector<16x16x128xf32> to vector<256x128xf32>
    %c1_55 = arith.constant 1 : index
    %c0_56 = arith.constant 0 : index
    %c0_57 = arith.constant 0 : index
    %c0_58 = arith.constant 0 : index
    %47 = vector.load %arg4[%c1_55, %c0_56, %c0_57, %c0_58] : memref<3x3x1x128xf32, #tpu.memory_space<vmem>>, vector<1x1x1x128xf32>
    %48 = vector.shape_cast %47 : vector<1x1x1x128xf32> to vector<1x128xf32>
    %49 = vector.broadcast %48 : vector<1x128xf32> to vector<256x128xf32>
    %50 = arith.mulf %46, %49 : vector<256x128xf32>
    %51 = arith.addf %44, %50 : vector<256x128xf32>
    %c1_59 = arith.constant 1 : index
    %c8_60 = arith.constant 8 : index
    %c0_61 = arith.constant 0 : index
    %52 = vector.load %arg15[%c1_59, %c8_60, %c0_61] : memref<18x32x128xf32, #tpu.memory_space<vmem>>, vector<16x16x128xf32>
    %53 = vector.shape_cast %52 : vector<16x16x128xf32> to vector<256x128xf32>
    %c1_62 = arith.constant 1 : index
    %c1_63 = arith.constant 1 : index
    %c0_64 = arith.constant 0 : index
    %c0_65 = arith.constant 0 : index
    %54 = vector.load %arg4[%c1_62, %c1_63, %c0_64, %c0_65] : memref<3x3x1x128xf32, #tpu.memory_space<vmem>>, vector<1x1x1x128xf32>
    %55 = vector.shape_cast %54 : vector<1x1x1x128xf32> to vector<1x128xf32>
    %56 = vector.broadcast %55 : vector<1x128xf32> to vector<256x128xf32>
    %57 = arith.mulf %53, %56 : vector<256x128xf32>
    %58 = arith.addf %51, %57 : vector<256x128xf32>
    %c1_66 = arith.constant 1 : index
    %c9_67 = arith.constant 9 : index
    %c0_68 = arith.constant 0 : index
    %59 = vector.load %arg15[%c1_66, %c9_67, %c0_68] : memref<18x32x128xf32, #tpu.memory_space<vmem>>, vector<16x16x128xf32>
    %60 = vector.shape_cast %59 : vector<16x16x128xf32> to vector<256x128xf32>
    %c1_69 = arith.constant 1 : index
    %c2_70 = arith.constant 2 : index
    %c0_71 = arith.constant 0 : index
    %c0_72 = arith.constant 0 : index
    %61 = vector.load %arg4[%c1_69, %c2_70, %c0_71, %c0_72] : memref<3x3x1x128xf32, #tpu.memory_space<vmem>>, vector<1x1x1x128xf32>
    %62 = vector.shape_cast %61 : vector<1x1x1x128xf32> to vector<1x128xf32>
    %63 = vector.broadcast %62 : vector<1x128xf32> to vector<256x128xf32>
    %64 = arith.mulf %60, %63 : vector<256x128xf32>
    %65 = arith.addf %58, %64 : vector<256x128xf32>
    %c2_73 = arith.constant 2 : index
    %c7_74 = arith.constant 7 : index
    %c0_75 = arith.constant 0 : index
    %66 = vector.load %arg15[%c2_73, %c7_74, %c0_75] : memref<18x32x128xf32, #tpu.memory_space<vmem>>, vector<16x16x128xf32>
    %67 = vector.shape_cast %66 : vector<16x16x128xf32> to vector<256x128xf32>
    %c2_76 = arith.constant 2 : index
    %c0_77 = arith.constant 0 : index
    %c0_78 = arith.constant 0 : index
    %c0_79 = arith.constant 0 : index
    %68 = vector.load %arg4[%c2_76, %c0_77, %c0_78, %c0_79] : memref<3x3x1x128xf32, #tpu.memory_space<vmem>>, vector<1x1x1x128xf32>
    %69 = vector.shape_cast %68 : vector<1x1x1x128xf32> to vector<1x128xf32>
    %70 = vector.broadcast %69 : vector<1x128xf32> to vector<256x128xf32>
    %71 = arith.mulf %67, %70 : vector<256x128xf32>
    %72 = arith.addf %65, %71 : vector<256x128xf32>
    %c2_80 = arith.constant 2 : index
    %c8_81 = arith.constant 8 : index
    %c0_82 = arith.constant 0 : index
    %73 = vector.load %arg15[%c2_80, %c8_81, %c0_82] : memref<18x32x128xf32, #tpu.memory_space<vmem>>, vector<16x16x128xf32>
    %74 = vector.shape_cast %73 : vector<16x16x128xf32> to vector<256x128xf32>
    %c2_83 = arith.constant 2 : index
    %c1_84 = arith.constant 1 : index
    %c0_85 = arith.constant 0 : index
    %c0_86 = arith.constant 0 : index
    %75 = vector.load %arg4[%c2_83, %c1_84, %c0_85, %c0_86] : memref<3x3x1x128xf32, #tpu.memory_space<vmem>>, vector<1x1x1x128xf32>
    %76 = vector.shape_cast %75 : vector<1x1x1x128xf32> to vector<1x128xf32>
    %77 = vector.broadcast %76 : vector<1x128xf32> to vector<256x128xf32>
    %78 = arith.mulf %74, %77 : vector<256x128xf32>
    %79 = arith.addf %72, %78 : vector<256x128xf32>
    %c2_87 = arith.constant 2 : index
    %c9_88 = arith.constant 9 : index
    %c0_89 = arith.constant 0 : index
    %80 = vector.load %arg15[%c2_87, %c9_88, %c0_89] : memref<18x32x128xf32, #tpu.memory_space<vmem>>, vector<16x16x128xf32>
    %81 = vector.shape_cast %80 : vector<16x16x128xf32> to vector<256x128xf32>
    %c2_90 = arith.constant 2 : index
    %c2_91 = arith.constant 2 : index
    %c0_92 = arith.constant 0 : index
    %c0_93 = arith.constant 0 : index
    %82 = vector.load %arg4[%c2_90, %c2_91, %c0_92, %c0_93] : memref<3x3x1x128xf32, #tpu.memory_space<vmem>>, vector<1x1x1x128xf32>
    %83 = vector.shape_cast %82 : vector<1x1x1x128xf32> to vector<1x128xf32>
    %84 = vector.broadcast %83 : vector<1x128xf32> to vector<256x128xf32>
    %85 = arith.mulf %81, %84 : vector<256x128xf32>
    %86 = arith.addf %79, %85 : vector<256x128xf32>
    %c0_94 = arith.constant 0 : index
    %c0_95 = arith.constant 0 : index
    %87 = vector.load %arg5[%c0_94, %c0_95] : memref<128x128xf32, #tpu.memory_space<vmem>>, vector<128x128xf32>
    %cst_96 = arith.constant dense<0.000000e+00> : vector<256x128xf32>
    %88 = tpu.matmul %86, %87, %cst_96 {dimension_numbers = #tpu.dot_dimension_numbers<[1], [0], [0], [1], [0, 0, 1, 1], [], []>} : vector<256x128xf32>, vector<128x128xf32>, vector<256x128xf32> -> vector<256x128xf32>
    %c0_97 = arith.constant 0 : index
    %c0_98 = arith.constant 0 : index
    %89 = vector.load %arg6[%c0_97, %c0_98] : memref<1x128xf32, #tpu.memory_space<vmem>>, vector<1x128xf32>
    %90 = vector.broadcast %89 : vector<1x128xf32> to vector<256x128xf32>
    %91 = arith.mulf %88, %90 : vector<256x128xf32>
    %c0_99 = arith.constant 0 : index
    %c0_100 = arith.constant 0 : index
    %92 = vector.load %arg7[%c0_99, %c0_100] : memref<1x128xf32, #tpu.memory_space<vmem>>, vector<1x128xf32>
    %93 = vector.broadcast %92 : vector<1x128xf32> to vector<256x128xf32>
    %94 = arith.addf %91, %93 : vector<256x128xf32>
    %cst_101 = arith.constant 0.000000e+00 : f32
    %95 = vector.broadcast %cst_101 : f32 to vector<256x128xf32>
    %96 = arith.maximumf %94, %95 : vector<256x128xf32>
    %97 = vector.shape_cast %96 : vector<256x128xf32> to vector<16x16x128xf32>
    %c1_102 = arith.constant 1 : index
    %c8_103 = arith.constant 8 : index
    %c0_104 = arith.constant 0 : index
    %98 = vector.load %arg16[%c1_102, %c8_103, %c0_104] : memref<18x32x128xf32, #tpu.memory_space<vmem>>, vector<16x16x128xf32>
    tpu.vector_store %arg16[%c1_102, %c8_103, %c0_104], %97 {strides = array<i32>} : memref<18x32x128xf32, #tpu.memory_space<vmem>>, vector<16x16x128xf32>,
    %c0_105 = arith.constant 0 : index
    %c7_106 = arith.constant 7 : index
    %c0_107 = arith.constant 0 : index
    %99 = vector.load %arg16[%c0_105, %c7_106, %c0_107] : memref<18x32x128xf32, #tpu.memory_space<vmem>>, vector<16x16x128xf32>
    %100 = vector.shape_cast %99 : vector<16x16x128xf32> to vector<256x128xf32>
    %c0_108 = arith.constant 0 : index
    %c0_109 = arith.constant 0 : index
    %c0_110 = arith.constant 0 : index
    %c0_111 = arith.constant 0 : index
    %101 = vector.load %arg8[%c0_108, %c0_109, %c0_110, %c0_111] : memref<3x3x1x128xf32, #tpu.memory_space<vmem>>, vector<1x1x1x128xf32>
    %102 = vector.shape_cast %101 : vector<1x1x1x128xf32> to vector<1x128xf32>
    %103 = vector.broadcast %102 : vector<1x128xf32> to vector<256x128xf32>
    %104 = arith.mulf %100, %103 : vector<256x128xf32>
    %c0_112 = arith.constant 0 : index
    %c8_113 = arith.constant 8 : index
    %c0_114 = arith.constant 0 : index
    %105 = vector.load %arg16[%c0_112, %c8_113, %c0_114] : memref<18x32x128xf32, #tpu.memory_space<vmem>>, vector<16x16x128xf32>
    %106 = vector.shape_cast %105 : vector<16x16x128xf32> to vector<256x128xf32>
    %c0_115 = arith.constant 0 : index
    %c1_116 = arith.constant 1 : index
    %c0_117 = arith.constant 0 : index
    %c0_118 = arith.constant 0 : index
    %107 = vector.load %arg8[%c0_115, %c1_116, %c0_117, %c0_118] : memref<3x3x1x128xf32, #tpu.memory_space<vmem>>, vector<1x1x1x128xf32>
    %108 = vector.shape_cast %107 : vector<1x1x1x128xf32> to vector<1x128xf32>
    %109 = vector.broadcast %108 : vector<1x128xf32> to vector<256x128xf32>
    %110 = arith.mulf %106, %109 : vector<256x128xf32>
    %111 = arith.addf %104, %110 : vector<256x128xf32>
    %c0_119 = arith.constant 0 : index
    %c9_120 = arith.constant 9 : index
    %c0_121 = arith.constant 0 : index
    %112 = vector.load %arg16[%c0_119, %c9_120, %c0_121] : memref<18x32x128xf32, #tpu.memory_space<vmem>>, vector<16x16x128xf32>
    %113 = vector.shape_cast %112 : vector<16x16x128xf32> to vector<256x128xf32>
    %c0_122 = arith.constant 0 : index
    %c2_123 = arith.constant 2 : index
    %c0_124 = arith.constant 0 : index
    %c0_125 = arith.constant 0 : index
    %114 = vector.load %arg8[%c0_122, %c2_123, %c0_124, %c0_125] : memref<3x3x1x128xf32, #tpu.memory_space<vmem>>, vector<1x1x1x128xf32>
    %115 = vector.shape_cast %114 : vector<1x1x1x128xf32> to vector<1x128xf32>
    %116 = vector.broadcast %115 : vector<1x128xf32> to vector<256x128xf32>
    %117 = arith.mulf %113, %116 : vector<256x128xf32>
    %118 = arith.addf %111, %117 : vector<256x128xf32>
    %c1_126 = arith.constant 1 : index
    %c7_127 = arith.constant 7 : index
    %c0_128 = arith.constant 0 : index
    %119 = vector.load %arg16[%c1_126, %c7_127, %c0_128] : memref<18x32x128xf32, #tpu.memory_space<vmem>>, vector<16x16x128xf32>
    %120 = vector.shape_cast %119 : vector<16x16x128xf32> to vector<256x128xf32>
    %c1_129 = arith.constant 1 : index
    %c0_130 = arith.constant 0 : index
    %c0_131 = arith.constant 0 : index
    %c0_132 = arith.constant 0 : index
    %121 = vector.load %arg8[%c1_129, %c0_130, %c0_131, %c0_132] : memref<3x3x1x128xf32, #tpu.memory_space<vmem>>, vector<1x1x1x128xf32>
    %122 = vector.shape_cast %121 : vector<1x1x1x128xf32> to vector<1x128xf32>
    %123 = vector.broadcast %122 : vector<1x128xf32> to vector<256x128xf32>
    %124 = arith.mulf %120, %123 : vector<256x128xf32>
    %125 = arith.addf %118, %124 : vector<256x128xf32>
    %c1_133 = arith.constant 1 : index
    %c8_134 = arith.constant 8 : index
    %c0_135 = arith.constant 0 : index
    %126 = vector.load %arg16[%c1_133, %c8_134, %c0_135] : memref<18x32x128xf32, #tpu.memory_space<vmem>>, vector<16x16x128xf32>
    %127 = vector.shape_cast %126 : vector<16x16x128xf32> to vector<256x128xf32>
    %c1_136 = arith.constant 1 : index
    %c1_137 = arith.constant 1 : index
    %c0_138 = arith.constant 0 : index
    %c0_139 = arith.constant 0 : index
    %128 = vector.load %arg8[%c1_136, %c1_137, %c0_138, %c0_139] : memref<3x3x1x128xf32, #tpu.memory_space<vmem>>, vector<1x1x1x128xf32>
    %129 = vector.shape_cast %128 : vector<1x1x1x128xf32> to vector<1x128xf32>
    %130 = vector.broadcast %129 : vector<1x128xf32> to vector<256x128xf32>
    %131 = arith.mulf %127, %130 : vector<256x128xf32>
    %132 = arith.addf %125, %131 : vector<256x128xf32>
    %c1_140 = arith.constant 1 : index
    %c9_141 = arith.constant 9 : index
    %c0_142 = arith.constant 0 : index
    %133 = vector.load %arg16[%c1_140, %c9_141, %c0_142] : memref<18x32x128xf32, #tpu.memory_space<vmem>>, vector<16x16x128xf32>
    %134 = vector.shape_cast %133 : vector<16x16x128xf32> to vector<256x128xf32>
    %c1_143 = arith.constant 1 : index
    %c2_144 = arith.constant 2 : index
    %c0_145 = arith.constant 0 : index
    %c0_146 = arith.constant 0 : index
    %135 = vector.load %arg8[%c1_143, %c2_144, %c0_145, %c0_146] : memref<3x3x1x128xf32, #tpu.memory_space<vmem>>, vector<1x1x1x128xf32>
    %136 = vector.shape_cast %135 : vector<1x1x1x128xf32> to vector<1x128xf32>
    %137 = vector.broadcast %136 : vector<1x128xf32> to vector<256x128xf32>
    %138 = arith.mulf %134, %137 : vector<256x128xf32>
    %139 = arith.addf %132, %138 : vector<256x128xf32>
    %c2_147 = arith.constant 2 : index
    %c7_148 = arith.constant 7 : index
    %c0_149 = arith.constant 0 : index
    %140 = vector.load %arg16[%c2_147, %c7_148, %c0_149] : memref<18x32x128xf32, #tpu.memory_space<vmem>>, vector<16x16x128xf32>
    %141 = vector.shape_cast %140 : vector<16x16x128xf32> to vector<256x128xf32>
    %c2_150 = arith.constant 2 : index
    %c0_151 = arith.constant 0 : index
    %c0_152 = arith.constant 0 : index
    %c0_153 = arith.constant 0 : index
    %142 = vector.load %arg8[%c2_150, %c0_151, %c0_152, %c0_153] : memref<3x3x1x128xf32, #tpu.memory_space<vmem>>, vector<1x1x1x128xf32>
    %143 = vector.shape_cast %142 : vector<1x1x1x128xf32> to vector<1x128xf32>
    %144 = vector.broadcast %143 : vector<1x128xf32> to vector<256x128xf32>
    %145 = arith.mulf %141, %144 : vector<256x128xf32>
    %146 = arith.addf %139, %145 : vector<256x128xf32>
    %c2_154 = arith.constant 2 : index
    %c8_155 = arith.constant 8 : index
    %c0_156 = arith.constant 0 : index
    %147 = vector.load %arg16[%c2_154, %c8_155, %c0_156] : memref<18x32x128xf32, #tpu.memory_space<vmem>>, vector<16x16x128xf32>
    %148 = vector.shape_cast %147 : vector<16x16x128xf32> to vector<256x128xf32>
    %c2_157 = arith.constant 2 : index
    %c1_158 = arith.constant 1 : index
    %c0_159 = arith.constant 0 : index
    %c0_160 = arith.constant 0 : index
    %149 = vector.load %arg8[%c2_157, %c1_158, %c0_159, %c0_160] : memref<3x3x1x128xf32, #tpu.memory_space<vmem>>, vector<1x1x1x128xf32>
    %150 = vector.shape_cast %149 : vector<1x1x1x128xf32> to vector<1x128xf32>
    %151 = vector.broadcast %150 : vector<1x128xf32> to vector<256x128xf32>
    %152 = arith.mulf %148, %151 : vector<256x128xf32>
    %153 = arith.addf %146, %152 : vector<256x128xf32>
    %c2_161 = arith.constant 2 : index
    %c9_162 = arith.constant 9 : index
    %c0_163 = arith.constant 0 : index
    %154 = vector.load %arg16[%c2_161, %c9_162, %c0_163] : memref<18x32x128xf32, #tpu.memory_space<vmem>>, vector<16x16x128xf32>
    %155 = vector.shape_cast %154 : vector<16x16x128xf32> to vector<256x128xf32>
    %c2_164 = arith.constant 2 : index
    %c2_165 = arith.constant 2 : index
    %c0_166 = arith.constant 0 : index
    %c0_167 = arith.constant 0 : index
    %156 = vector.load %arg8[%c2_164, %c2_165, %c0_166, %c0_167] : memref<3x3x1x128xf32, #tpu.memory_space<vmem>>, vector<1x1x1x128xf32>
    %157 = vector.shape_cast %156 : vector<1x1x1x128xf32> to vector<1x128xf32>
    %158 = vector.broadcast %157 : vector<1x128xf32> to vector<256x128xf32>
    %159 = arith.mulf %155, %158 : vector<256x128xf32>
    %160 = arith.addf %153, %159 : vector<256x128xf32>
    %c0_168 = arith.constant 0 : index
    %c0_169 = arith.constant 0 : index
    %161 = vector.load %arg9[%c0_168, %c0_169] : memref<128x128xf32, #tpu.memory_space<vmem>>, vector<128x128xf32>
    %cst_170 = arith.constant dense<0.000000e+00> : vector<256x128xf32>
    %162 = tpu.matmul %160, %161, %cst_170 {dimension_numbers = #tpu.dot_dimension_numbers<[1], [0], [0], [1], [0, 0, 1, 1], [], []>} : vector<256x128xf32>, vector<128x128xf32>, vector<256x128xf32> -> vector<256x128xf32>
    %c0_171 = arith.constant 0 : index
    %c0_172 = arith.constant 0 : index
    %c0_173 = arith.constant 0 : index
    %c0_174 = arith.constant 0 : index
    %163 = vector.load %arg1[%c0_171, %c0_172, %c0_173, %c0_174] : memref<1x16x16x128xf32, #tpu.memory_space<vmem>>, vector<1x16x16x128xf32>
    %164 = vector.shape_cast %163 : vector<1x16x16x128xf32> to vector<16x16x128xf32>
    %165 = vector.shape_cast %164 : vector<16x16x128xf32> to vector<256x128xf32>
    %c0_175 = arith.constant 0 : index
    %c0_176 = arith.constant 0 : index
    %166 = vector.load %arg10[%c0_175, %c0_176] : memref<128x128xf32, #tpu.memory_space<vmem>>, vector<128x128xf32>
    %cst_177 = arith.constant dense<0.000000e+00> : vector<256x128xf32>
    %167 = tpu.matmul %165, %166, %cst_177 {dimension_numbers = #tpu.dot_dimension_numbers<[1], [0], [0], [1], [0, 0, 1, 1], [], []>} : vector<256x128xf32>, vector<128x128xf32>, vector<256x128xf32> -> vector<256x128xf32>
    %c0_178 = arith.constant 0 : index
    %c0_179 = arith.constant 0 : index
    %168 = vector.load %arg11[%c0_178, %c0_179] : memref<1x128xf32, #tpu.memory_space<vmem>>, vector<1x128xf32>
    %169 = vector.broadcast %168 : vector<1x128xf32> to vector<256x128xf32>
    %170 = arith.addf %167, %169 : vector<256x128xf32>
    %171 = arith.addf %170, %162 : vector<256x128xf32>
    %172 = vector.shape_cast %171 : vector<256x128xf32> to vector<16x16x128xf32>
    %c1_180 = arith.constant 1 : index
    %c8_181 = arith.constant 8 : index
    %c0_182 = arith.constant 0 : index
    %173 = vector.load %arg16[%c1_180, %c8_181, %c0_182] : memref<18x32x128xf32, #tpu.memory_space<vmem>>, vector<16x16x128xf32>
    tpu.vector_store %arg16[%c1_180, %c8_181, %c0_182], %172 {strides = array<i32>} : memref<18x32x128xf32, #tpu.memory_space<vmem>>, vector<16x16x128xf32>,
    %c0_183 = arith.constant 0 : index
    %c7_184 = arith.constant 7 : index
    %c0_185 = arith.constant 0 : index
    %174 = vector.load %arg16[%c0_183, %c7_184, %c0_185] : memref<18x32x128xf32, #tpu.memory_space<vmem>>, vector<16x16x128xf32>
    %175 = vector.shape_cast %174 : vector<16x16x128xf32> to vector<256x128xf32>
    %c0_186 = arith.constant 0 : index
    %c0_187 = arith.constant 0 : index
    %c0_188 = arith.constant 0 : index
    %c0_189 = arith.constant 0 : index
    %176 = vector.load %arg12[%c0_186, %c0_187, %c0_188, %c0_189] : memref<3x3x1x128xf32, #tpu.memory_space<vmem>>, vector<1x1x1x128xf32>
    %177 = vector.shape_cast %176 : vector<1x1x1x128xf32> to vector<1x128xf32>
    %178 = vector.broadcast %177 : vector<1x128xf32> to vector<256x128xf32>
    %179 = arith.mulf %175, %178 : vector<256x128xf32>
    %c0_190 = arith.constant 0 : index
    %c8_191 = arith.constant 8 : index
    %c0_192 = arith.constant 0 : index
    %180 = vector.load %arg16[%c0_190, %c8_191, %c0_192] : memref<18x32x128xf32, #tpu.memory_space<vmem>>, vector<16x16x128xf32>
    %181 = vector.shape_cast %180 : vector<16x16x128xf32> to vector<256x128xf32>
    %c0_193 = arith.constant 0 : index
    %c1_194 = arith.constant 1 : index
    %c0_195 = arith.constant 0 : index
    %c0_196 = arith.constant 0 : index
    %182 = vector.load %arg12[%c0_193, %c1_194, %c0_195, %c0_196] : memref<3x3x1x128xf32, #tpu.memory_space<vmem>>, vector<1x1x1x128xf32>
    %183 = vector.shape_cast %182 : vector<1x1x1x128xf32> to vector<1x128xf32>
    %184 = vector.broadcast %183 : vector<1x128xf32> to vector<256x128xf32>
    %185 = arith.mulf %181, %184 : vector<256x128xf32>
    %186 = arith.addf %179, %185 : vector<256x128xf32>
    %c0_197 = arith.constant 0 : index
    %c9_198 = arith.constant 9 : index
    %c0_199 = arith.constant 0 : index
    %187 = vector.load %arg16[%c0_197, %c9_198, %c0_199] : memref<18x32x128xf32, #tpu.memory_space<vmem>>, vector<16x16x128xf32>
    %188 = vector.shape_cast %187 : vector<16x16x128xf32> to vector<256x128xf32>
    %c0_200 = arith.constant 0 : index
    %c2_201 = arith.constant 2 : index
    %c0_202 = arith.constant 0 : index
    %c0_203 = arith.constant 0 : index
    %189 = vector.load %arg12[%c0_200, %c2_201, %c0_202, %c0_203] : memref<3x3x1x128xf32, #tpu.memory_space<vmem>>, vector<1x1x1x128xf32>
    %190 = vector.shape_cast %189 : vector<1x1x1x128xf32> to vector<1x128xf32>
    %191 = vector.broadcast %190 : vector<1x128xf32> to vector<256x128xf32>
    %192 = arith.mulf %188, %191 : vector<256x128xf32>
    %193 = arith.addf %186, %192 : vector<256x128xf32>
    %c1_204 = arith.constant 1 : index
    %c7_205 = arith.constant 7 : index
    %c0_206 = arith.constant 0 : index
    %194 = vector.load %arg16[%c1_204, %c7_205, %c0_206] : memref<18x32x128xf32, #tpu.memory_space<vmem>>, vector<16x16x128xf32>
    %195 = vector.shape_cast %194 : vector<16x16x128xf32> to vector<256x128xf32>
    %c1_207 = arith.constant 1 : index
    %c0_208 = arith.constant 0 : index
    %c0_209 = arith.constant 0 : index
    %c0_210 = arith.constant 0 : index
    %196 = vector.load %arg12[%c1_207, %c0_208, %c0_209, %c0_210] : memref<3x3x1x128xf32, #tpu.memory_space<vmem>>, vector<1x1x1x128xf32>
    %197 = vector.shape_cast %196 : vector<1x1x1x128xf32> to vector<1x128xf32>
    %198 = vector.broadcast %197 : vector<1x128xf32> to vector<256x128xf32>
    %199 = arith.mulf %195, %198 : vector<256x128xf32>
    %200 = arith.addf %193, %199 : vector<256x128xf32>
    %c1_211 = arith.constant 1 : index
    %c8_212 = arith.constant 8 : index
    %c0_213 = arith.constant 0 : index
    %201 = vector.load %arg16[%c1_211, %c8_212, %c0_213] : memref<18x32x128xf32, #tpu.memory_space<vmem>>, vector<16x16x128xf32>
    %202 = vector.shape_cast %201 : vector<16x16x128xf32> to vector<256x128xf32>
    %c1_214 = arith.constant 1 : index
    %c1_215 = arith.constant 1 : index
    %c0_216 = arith.constant 0 : index
    %c0_217 = arith.constant 0 : index
    %203 = vector.load %arg12[%c1_214, %c1_215, %c0_216, %c0_217] : memref<3x3x1x128xf32, #tpu.memory_space<vmem>>, vector<1x1x1x128xf32>
    %204 = vector.shape_cast %203 : vector<1x1x1x128xf32> to vector<1x128xf32>
    %205 = vector.broadcast %204 : vector<1x128xf32> to vector<256x128xf32>
    %206 = arith.mulf %202, %205 : vector<256x128xf32>
    %207 = arith.addf %200, %206 : vector<256x128xf32>
    %c1_218 = arith.constant 1 : index
    %c9_219 = arith.constant 9 : index
    %c0_220 = arith.constant 0 : index
    %208 = vector.load %arg16[%c1_218, %c9_219, %c0_220] : memref<18x32x128xf32, #tpu.memory_space<vmem>>, vector<16x16x128xf32>
    %209 = vector.shape_cast %208 : vector<16x16x128xf32> to vector<256x128xf32>
    %c1_221 = arith.constant 1 : index
    %c2_222 = arith.constant 2 : index
    %c0_223 = arith.constant 0 : index
    %c0_224 = arith.constant 0 : index
    %210 = vector.load %arg12[%c1_221, %c2_222, %c0_223, %c0_224] : memref<3x3x1x128xf32, #tpu.memory_space<vmem>>, vector<1x1x1x128xf32>
    %211 = vector.shape_cast %210 : vector<1x1x1x128xf32> to vector<1x128xf32>
    %212 = vector.broadcast %211 : vector<1x128xf32> to vector<256x128xf32>
    %213 = arith.mulf %209, %212 : vector<256x128xf32>
    %214 = arith.addf %207, %213 : vector<256x128xf32>
    %c2_225 = arith.constant 2 : index
    %c7_226 = arith.constant 7 : index
    %c0_227 = arith.constant 0 : index
    %215 = vector.load %arg16[%c2_225, %c7_226, %c0_227] : memref<18x32x128xf32, #tpu.memory_space<vmem>>, vector<16x16x128xf32>
    %216 = vector.shape_cast %215 : vector<16x16x128xf32> to vector<256x128xf32>
    %c2_228 = arith.constant 2 : index
    %c0_229 = arith.constant 0 : index
    %c0_230 = arith.constant 0 : index
    %c0_231 = arith.constant 0 : index
    %217 = vector.load %arg12[%c2_228, %c0_229, %c0_230, %c0_231] : memref<3x3x1x128xf32, #tpu.memory_space<vmem>>, vector<1x1x1x128xf32>
    %218 = vector.shape_cast %217 : vector<1x1x1x128xf32> to vector<1x128xf32>
    %219 = vector.broadcast %218 : vector<1x128xf32> to vector<256x128xf32>
    %220 = arith.mulf %216, %219 : vector<256x128xf32>
    %221 = arith.addf %214, %220 : vector<256x128xf32>
    %c2_232 = arith.constant 2 : index
    %c8_233 = arith.constant 8 : index
    %c0_234 = arith.constant 0 : index
    %222 = vector.load %arg16[%c2_232, %c8_233, %c0_234] : memref<18x32x128xf32, #tpu.memory_space<vmem>>, vector<16x16x128xf32>
    %223 = vector.shape_cast %222 : vector<16x16x128xf32> to vector<256x128xf32>
    %c2_235 = arith.constant 2 : index
    %c1_236 = arith.constant 1 : index
    %c0_237 = arith.constant 0 : index
    %c0_238 = arith.constant 0 : index
    %224 = vector.load %arg12[%c2_235, %c1_236, %c0_237, %c0_238] : memref<3x3x1x128xf32, #tpu.memory_space<vmem>>, vector<1x1x1x128xf32>
    %225 = vector.shape_cast %224 : vector<1x1x1x128xf32> to vector<1x128xf32>
    %226 = vector.broadcast %225 : vector<1x128xf32> to vector<256x128xf32>
    %227 = arith.mulf %223, %226 : vector<256x128xf32>
    %228 = arith.addf %221, %227 : vector<256x128xf32>
    %c2_239 = arith.constant 2 : index
    %c9_240 = arith.constant 9 : index
    %c0_241 = arith.constant 0 : index
    %229 = vector.load %arg16[%c2_239, %c9_240, %c0_241] : memref<18x32x128xf32, #tpu.memory_space<vmem>>, vector<16x16x128xf32>
    %230 = vector.shape_cast %229 : vector<16x16x128xf32> to vector<256x128xf32>
    %c2_242 = arith.constant 2 : index
    %c2_243 = arith.constant 2 : index
    %c0_244 = arith.constant 0 : index
    %c0_245 = arith.constant 0 : index
    %231 = vector.load %arg12[%c2_242, %c2_243, %c0_244, %c0_245] : memref<3x3x1x128xf32, #tpu.memory_space<vmem>>, vector<1x1x1x128xf32>
    %232 = vector.shape_cast %231 : vector<1x1x1x128xf32> to vector<1x128xf32>
    %233 = vector.broadcast %232 : vector<1x128xf32> to vector<256x128xf32>
    %234 = arith.mulf %230, %233 : vector<256x128xf32>
    %235 = arith.addf %228, %234 : vector<256x128xf32>
    %c0_246 = arith.constant 0 : index
    %c0_247 = arith.constant 0 : index
    %236 = vector.load %arg13[%c0_246, %c0_247] : memref<128x128xf32, #tpu.memory_space<vmem>>, vector<128x128xf32>
    %cst_248 = arith.constant dense<0.000000e+00> : vector<256x128xf32>
    %237 = tpu.matmul %235, %236, %cst_248 {dimension_numbers = #tpu.dot_dimension_numbers<[1], [0], [0], [1], [0, 0, 1, 1], [], []>} : vector<256x128xf32>, vector<128x128xf32>, vector<256x128xf32> -> vector<256x128xf32>
    %cst_249 = arith.constant 0.000000e+00 : f32
    %238 = vector.broadcast %cst_249 : f32 to vector<256x128xf32>
    %239 = arith.maximumf %237, %238 : vector<256x128xf32>
    %240 = vector.shape_cast %239 : vector<256x128xf32> to vector<16x16x128xf32>
    %c0_250 = arith.constant 0 : index
    %c0_251 = arith.constant 0 : index
    %c0_252 = arith.constant 0 : index
    %c0_253 = arith.constant 0 : index
    %241 = vector.load %arg14[%c0_250, %c0_251, %c0_252, %c0_253] : memref<1x16x16x128xf32, #tpu.memory_space<vmem>>, vector<1x16x16x128xf32>
    %242 = vector.shape_cast %241 : vector<1x16x16x128xf32> to vector<16x16x128xf32>
    %243 = vector.shape_cast %240 : vector<16x16x128xf32> to vector<1x16x16x128xf32>
    tpu.vector_store %arg14[%c0_250, %c0_251, %c0_252, %c0_253], %243 {strides = array<i32>} : memref<1x16x16x128xf32, #tpu.memory_space<vmem>>, vector<1x16x16x128xf32>,
    return
  }
  func.func @transform_0(%arg0: i32) -> (i32, i32, i32, i32) {
    %c0_i32 = arith.constant 0 : i32
    %c0_i32_0 = arith.constant 0 : i32
    %c0_i32_1 = arith.constant 0 : i32
    %c0_i32_2 = arith.constant 0 : i32
    return %arg0, %c0_i32, %c0_i32_0, %c0_i32_1 : i32, i32, i32, i32
  }
  func.func @transform_1(%arg0: i32) -> (i32, i32) {
    %c0_i32 = arith.constant 0 : i32
    %c0_i32_0 = arith.constant 0 : i32
    %c0_i32_1 = arith.constant 0 : i32
    return %c0_i32, %c0_i32_0 : i32, i32
  }
  func.func @transform_2(%arg0: i32) -> (i32, i32) {
    %c0_i32 = arith.constant 0 : i32
    %c0_i32_0 = arith.constant 0 : i32
    %c0_i32_1 = arith.constant 0 : i32
    return %c0_i32, %c0_i32_0 : i32, i32
  }
  func.func @transform_3(%arg0: i32) -> (i32, i32, i32, i32) {
    %c0_i32 = arith.constant 0 : i32
    %c0_i32_0 = arith.constant 0 : i32
    %c0_i32_1 = arith.constant 0 : i32
    %c0_i32_2 = arith.constant 0 : i32
    %c0_i32_3 = arith.constant 0 : i32
    return %c0_i32, %c0_i32_0, %c0_i32_1, %c0_i32_2 : i32, i32, i32, i32
  }
  func.func @transform_4(%arg0: i32) -> (i32, i32) {
    %c0_i32 = arith.constant 0 : i32
    %c0_i32_0 = arith.constant 0 : i32
    %c0_i32_1 = arith.constant 0 : i32
    return %c0_i32, %c0_i32_0 : i32, i32
  }
  func.func @transform_5(%arg0: i32) -> (i32, i32) {
    %c0_i32 = arith.constant 0 : i32
    %c0_i32_0 = arith.constant 0 : i32
    %c0_i32_1 = arith.constant 0 : i32
    return %c0_i32, %c0_i32_0 : i32, i32
  }
  func.func @transform_6(%arg0: i32) -> (i32, i32) {
    %c0_i32 = arith.constant 0 : i32
    %c0_i32_0 = arith.constant 0 : i32
    %c0_i32_1 = arith.constant 0 : i32
    return %c0_i32, %c0_i32_0 : i32, i32
  }
  func.func @transform_7(%arg0: i32) -> (i32, i32, i32, i32) {
    %c0_i32 = arith.constant 0 : i32
    %c0_i32_0 = arith.constant 0 : i32
    %c0_i32_1 = arith.constant 0 : i32
    %c0_i32_2 = arith.constant 0 : i32
    %c0_i32_3 = arith.constant 0 : i32
    return %c0_i32, %c0_i32_0, %c0_i32_1, %c0_i32_2 : i32, i32, i32, i32
  }
  func.func @transform_8(%arg0: i32) -> (i32, i32) {
    %c0_i32 = arith.constant 0 : i32
    %c0_i32_0 = arith.constant 0 : i32
    %c0_i32_1 = arith.constant 0 : i32
    return %c0_i32, %c0_i32_0 : i32, i32
  }
  func.func @transform_9(%arg0: i32) -> (i32, i32) {
    %c0_i32 = arith.constant 0 : i32
    %c0_i32_0 = arith.constant 0 : i32
    %c0_i32_1 = arith.constant 0 : i32
    return %c0_i32, %c0_i32_0 : i32, i32
  }
  func.func @transform_10(%arg0: i32) -> (i32, i32) {
    %c0_i32 = arith.constant 0 : i32
    %c0_i32_0 = arith.constant 0 : i32
    %c0_i32_1 = arith.constant 0 : i32
    return %c0_i32, %c0_i32_0 : i32, i32
  }
  func.func @transform_11(%arg0: i32) -> (i32, i32, i32, i32) {
    %c0_i32 = arith.constant 0 : i32
    %c0_i32_0 = arith.constant 0 : i32
    %c0_i32_1 = arith.constant 0 : i32
    %c0_i32_2 = arith.constant 0 : i32
    %c0_i32_3 = arith.constant 0 : i32
    return %c0_i32, %c0_i32_0, %c0_i32_1, %c0_i32_2 : i32, i32, i32, i32
  }
  func.func @transform_12(%arg0: i32) -> (i32, i32) {
    %c0_i32 = arith.constant 0 : i32
    %c0_i32_0 = arith.constant 0 : i32
    %c0_i32_1 = arith.constant 0 : i32
    return %c0_i32, %c0_i32_0 : i32, i32
  }
  func.func @transform_13(%arg0: i32) -> (i32, i32, i32, i32) {
    %c0_i32 = arith.constant 0 : i32
    %c0_i32_0 = arith.constant 0 : i32
    %c0_i32_1 = arith.constant 0 : i32
    %c0_i32_2 = arith.constant 0 : i32
    return %arg0, %c0_i32, %c0_i32_0, %c0_i32_1 : i32, i32, i32, i32
  }
}

</mosaic_0001>

<bundles_post_ra>
// kernel: tpu_custom_call.1
= control target key start
LH: loop header
LB: loop body
LE: loop exit
PB: predicated region body
PF: predicated region fallthrough
CT: control target
= control target key end

     0   :  { %s9022_s0 = inlined_call_operand.hbm [shape: f32[2,16,16,128], index: 0, kind: input, shape index: {}]   ;;  %s9023_s1 = inlined_call_operand.hbm [shape: f32[1,128], index: 1, kind: input, shape index: {}]   ;;  %s9024_s2 = inlined_call_operand.hbm [shape: f32[1,128], index: 2, kind: input, shape index: {}]   ;;  %s9025_s3 = inlined_call_operand.vmem [shape: f32[3,3,1,128], index: 3, kind: input, shape index: {}]   ;;  %s9026_s4 = inlined_call_operand.hbm [shape: f32[128,128], index: 4, kind: input, shape index: {}]   ;;  %s9027_s5 = inlined_call_operand.hbm [shape: f32[1,128], index: 5, kind: input, shape index: {}]   ;;  %s9028_s6 = inlined_call_operand.vmem [shape: f32[1,128], index: 6, kind: input, shape index: {}]   ;;  %s9029_s7 = inlined_call_operand.vmem [shape: f32[3,3,1,128], index: 7, kind: input, shape index: {}]   ;;  %s9030_s8 = inlined_call_operand.hbm [shape: f32[128,128], index: 8, kind: input, shape index: {}]   ;;  %s9031_s9 = inlined_call_operand.hbm [shape: f32[128,128], index: 9, kind: input, shape index: {}]   ;;  %s9032_s10 = inlined_call_operand.vmem [shape: f32[1,128], index: 10, kind: input, shape index: {}]   ;;  %s9033_s11 = inlined_call_operand.vmem [shape: f32[3,3,1,128], index: 11, kind: input, shape index: {}]   ;;  %s9034_s12 = inlined_call_operand.hbm [shape: f32[128,128], index: 12, kind: input, shape index: {}]   ;;  %s9035_s13 = inlined_call_operand.hbm [shape: f32[2,16,16,128], index: 13, kind: output, shape index: {}]  }
   0x1   :  { %9043 = sst [smem:[#allocation25_spill]] %s9023_s1 }
   0x2   :  { %9044 = sst [smem:[#allocation26_spill]] %s9026_s4 }
   0x3   :  { %9045 = sst [smem:[#allocation27_spill]] %s9029_s7 }
   0x4   :  { %9046 = sst [smem:[#allocation28_spill]] %s9032_s10 }
   0x5   :  { %9047 = sst [smem:[#allocation29_spill]] %s9033_s11 }
   0x6   :  { %9048 = sst [smem:[#allocation30_spill]] %s9035_s13 }
   0x7   :  { %18 = vsyncpa [#allocation5], 0 }
   0x8   :  { %20 = vsyncpa [#allocation5 + $0x1], 0 }
   0x9   :  { %21 = vsyncpa [#allocation8], 0 }
   0xa   :  { %22 = vsyncpa [#allocation11], 0 }
   0xb   :  { %23 = vsyncpa [#allocation14], 0 }
   0xc   :  { %24 = vsyncpa [#allocation17], 0 }
   0xd   :  { %25 = vsyncpa [#allocation6], 0 }
   0xe   :  { %27 = vsyncpa [#allocation6 + $0x1], 0  ;;  %s6299_s25 = smov 0   ;;  %s6301_s26 = smov 0  }
   0xf   :  { %s6303_s27 = smov 0   ;;  %s6305_s28 = smov 0  }
  0x10 LB: > { %s6215_s29 = smov [#allocation7]   ;;  %s6320_s14 = sadd.s32 4294967295, %s6213_s28   ;;  %s6213_s28 = sphi %s6305_s28, %s9079_s28   ;;  %s6209_s27 = sphi %s6303_s27, %s9078_s27   ;;  %s6205_s26 = sphi %s6301_s26, %s9077_s26   ;;  %s6201_s25 = sphi %s6299_s25, %s9076_s25  }
  0x11   : > { %s355_s30 = sshll.u32 %s6215_s29, 4  ;;  %p4960_p0 = scmp.ge.s32.totalorder %s6213_s28, 1  ;;  %s6325_s30 = int_to_ptr.vmem [resolvable:$true] %s355_s30 }
  0x12   : > { %p9039_p1 = scmp.eq.s32.totalorder %s6320_s14, 0  ;;  %p342_p2 = scmp.lt.s32.totalorder %s6213_s28, 3 }
  0x13   : > { %s6216_s16 = smov [#allocation10]   ;;  %s6217_s19 = smov [#allocation13]  }
  0x14   : > { %p6327_p3 = pnand %p4960_p0, %p342_p2  ;;  %s379_s17 = sshll.u32 %s6216_s16, 4  ;;  %s6334_s17 = int_to_ptr.vmem [resolvable:$true] %s379_s17 }
  0x15   : > { %s409_s20 = sshll.u32 %s6217_s19, 4  ;;  %s9051_s1 = sld [smem:[#allocation25_spill]]  ;;  %s6342_s20 = int_to_ptr.vmem [resolvable:$true] %s409_s20 }
  0x16   : > { %s9049_s15 = scalar_select %p6327_p3, 1, 0 }
  0x17   : > { %p5781_p5 = pneg %p6327_p3 }
  0x19   : > { %p6338_p6 = pnand %p5781_p5, %p9039_p1 }
  0x1b   : > { %s5905_s23 = scalar_lea.hbm %s9051_s1, 16  ;;  %p6352_p8 = pneg %p6338_p6 }
  0x1c   : > { %p5906_p7 = scmp.ne.s32.totalorder %s9051_s1, %s5905_s23  ;;  %p5912_p11 = scmp.lt.u32.totalorder %s5905_s23, %s9051_s1 }
  0x1e   : > { %p5908_p9 = pnand %p6352_p8, %p5906_p7 }
  0x20   : > { %p5909_p10 = pneg %p5908_p9 }
  0x22   : > { %p5914_p12 = pnand %p5912_p11, %p5909_p10 }
  0x24   : > { %5917 = shalt.err (!%p5914_p12)
}
  0x25   : > { %s5918_s21 = scalar_lea.vmem %s6325_s30, 16  ;;  %s5925_s22 = scalar_lea.vmem %s6325_s30, 32 }
  0x26   : > { %p5919_p13 = scmp.ne.s32.totalorder %s6325_s30, %s5918_s21  ;;  %p5926_p5 = scmp.lt.s32.totalorder %s6325_s30, %s6325_s30 }
  0x27   : > { %p5927_p7 = scmp.lt.s32.totalorder %s5925_s22, %s5918_s21 }
  0x28   : > { %p5921_p0 = pnand %p5919_p13, %p6352_p8 }
  0x29   : > { %p5928_p9 = por %p5927_p7, %p5926_p5 }
  0x2a   : > { %p5922_p2 = pneg %p5921_p0 }
  0x2c   : > { %p5929_p4 = pnand %p5928_p9, %p5922_p2 }
  0x2e   : > { %5932 = shalt.err (!%p5929_p4)
}
  0x2f   : > { %5784 = dma.hbm_to_vmem [thread:$0]  (!%p6338_p6), %s9051_s1, 16, %s6325_s30, [#allocation8]  }
  0x30   : > { %s9053_s4 = sld [smem:[#allocation26_spill]] }
  0x36   : > { %s5933_s19 = scalar_lea.hbm %s9053_s4, 2048 }
  0x37   : > { %p5934_p10 = scmp.ne.s32.totalorder %s9053_s4, %s5933_s19  ;;  %p5940_p4 = scmp.lt.u32.totalorder %s5933_s19, %s9053_s4 }
  0x39   : > { %p5936_p11 = pnand %p5934_p10, %p6352_p8 }
  0x3b   : > { %p5937_p12 = pneg %p5936_p11 }
  0x3d   : > { %p5942_p13 = pnand %p5940_p4, %p5937_p12 }
  0x3f   : > { %5945 = shalt.err (!%p5942_p13)
}
  0x40   : > { %s5946_s30 = scalar_lea.vmem %s6334_s17, 2048  ;;  %p5954_p7 = scmp.lt.s32.totalorder %s6334_s17, %s6334_s17 }
  0x41   : > { %p5947_p0 = scmp.ne.s32.totalorder %s6334_s17, %s5946_s30  ;;  %p5955_p9 = scmp.lt.s32.totalorder %s5946_s30, %s5946_s30 }
  0x43   : > { %p5949_p2 = pnand %p5947_p0, %p6352_p8  ;;  %p5956_p10 = por %p5955_p9, %p5954_p7 }
  0x45   : > { %p5950_p5 = pneg %p5949_p2 }
  0x47   : > { %p5957_p11 = pnand %p5956_p10, %p5950_p5 }
  0x49   : > { %5960 = shalt.err (!%p5957_p11)
}
  0x4a   : > { %s9041_s10 = smov 128   ;;  %s6219_s11 = smov 8  }
  0x4b   : > { %5790 = dma.hbm_to_vmem [thread:$0]  (!%p6338_p6), %s9053_s4, 2048, %s6334_s17, [#allocation11], %s9041_s10, %s9041_s10, %s6219_s11  }
  0x4c   : > { %s5961_s19 = scalar_lea.hbm %s9030_s8, 2048 }
  0x4d   : > { %p5962_p12 = scmp.ne.s32.totalorder %s9030_s8, %s5961_s19  ;;  %p5968_p0 = scmp.lt.u32.totalorder %s5961_s19, %s9030_s8 }
  0x4f   : > { %p5964_p4 = pnand %p5962_p12, %p6352_p8 }
  0x51   : > { %p5965_p13 = pneg %p5964_p4 }
  0x53   : > { %p5970_p2 = pnand %p5968_p0, %p5965_p13 }
  0x55   : > { %5973 = shalt.err (!%p5970_p2)
}
  0x56   : > { %s5974_s17 = scalar_lea.vmem %s6342_s20, 2048  ;;  %p5982_p10 = scmp.lt.s32.totalorder %s6342_s20, %s6342_s20 }
  0x57   : > { %p5975_p5 = scmp.ne.s32.totalorder %s6342_s20, %s5974_s17  ;;  %p5983_p11 = scmp.lt.s32.totalorder %s5974_s17, %s5974_s17 }
  0x59   : > { %p5977_p7 = pnand %p5975_p5, %p6352_p8  ;;  %p5984_p12 = por %p5983_p11, %p5982_p10 }
  0x5b   : > { %p5978_p9 = pneg %p5977_p7 }
  0x5d   : > { %p5985_p4 = pnand %p5984_p12, %p5978_p9 }
  0x5f   : > { %5988 = shalt.err (!%p5985_p4)
}
  0x60   : > { %5796 = dma.hbm_to_vmem [thread:$0]  (!%p6338_p6), %s9030_s8, 2048, %s6342_s20, [#allocation14], %s9041_s10, %s9041_s10, %s6219_s11  }
  0x61   : > { %s6220_s23 = smov [#allocation9]   ;;  %s6221_s29 = smov [#allocation12]  }
  0x62   : > { %s366_s24 = sshll.u32 %s6220_s23, 4  ;;  %s393_s19 = sshll.u32 %s6221_s29, 4  ;;  %s367_s24 = int_to_ptr.vmem [resolvable:$true] %s366_s24  ;;  %s394_s19 = int_to_ptr.vmem [resolvable:$true] %s393_s19 }
  0x63   : > { %s5989_s30 = scalar_lea.hbm %s9024_s2, 16 }
  0x64   : > { %p5990_p13 = scmp.ne.s32.totalorder %s9024_s2, %s5989_s30  ;;  %p5996_p5 = scmp.lt.u32.totalorder %s5989_s30, %s9024_s2 }
  0x66   : > { %p5992_p0 = pnand %p5990_p13, %p6352_p8 }
  0x68   : > { %p5993_p2 = pneg %p5992_p0 }
  0x6a   : > { %p5998_p7 = pnand %p5996_p5, %p5993_p2 }
  0x6c   : > { %6001 = shalt.err (!%p5998_p7)
}
  0x6d   : > { %s6002_s20 = scalar_lea.vmem %s367_s24, 16  ;;  %s6009_s13 = scalar_lea.vmem %s367_s24, 32 }
  0x6e   : > { %p6003_p9 = scmp.ne.s32.totalorder %s367_s24, %s6002_s20  ;;  %p6010_p12 = scmp.lt.s32.totalorder %s367_s24, %s367_s24 }
  0x6f   : > { %p6011_p4 = scmp.lt.s32.totalorder %s6009_s13, %s6002_s20 }
  0x70   : > { %p6005_p10 = pnand %p6003_p9, %p6352_p8 }
  0x71   : > { %p6012_p1 = por %p6011_p4, %p6010_p12 }
  0x72   : > { %p6006_p11 = pneg %p6005_p10 }
  0x74   : > { %p6013_p3 = pnand %p6012_p1, %p6006_p11 }
  0x76   : > { %6016 = shalt.err (!%p6013_p3)
}
  0x77   : > { %5787 = dma.hbm_to_vmem [thread:$0]  (!%p6338_p6), %s9024_s2, 16, %s367_s24, [#allocation8]  }
  0x78   : > { %s6017_s21 = scalar_lea.hbm %s9027_s5, 16 }
  0x79   : > { %p6018_p13 = scmp.ne.s32.totalorder %s9027_s5, %s6017_s21  ;;  %p6024_p3 = scmp.lt.u32.totalorder %s6017_s21, %s9027_s5 }
  0x7b   : > { %p6020_p0 = pnand %p6018_p13, %p6352_p8 }
  0x7d   : > { %p6021_p1 = pneg %p6020_p0 }
  0x7f   : > { %p6026_p2 = pnand %p6024_p3, %p6021_p1 }
  0x81   : > { %6029 = shalt.err (!%p6026_p2)
}
  0x82   : > { %s6030_s20 = scalar_lea.vmem %s394_s19, 16  ;;  %s6037_s24 = scalar_lea.vmem %s394_s19, 32 }
  0x83   : > { %p6031_p5 = scmp.ne.s32.totalorder %s394_s19, %s6030_s20  ;;  %p6038_p10 = scmp.lt.s32.totalorder %s394_s19, %s394_s19 }
  0x84   : > { %p6039_p11 = scmp.lt.s32.totalorder %s6037_s24, %s6030_s20 }
  0x85   : > { %p6033_p7 = pnand %p6031_p5, %p6352_p8 }
  0x86   : > { %p6040_p12 = por %p6039_p11, %p6038_p10 }
  0x87   : > { %p6034_p9 = pneg %p6033_p7 }
  0x89   : > { %p6041_p4 = pnand %p6040_p12, %p6034_p9 }
  0x8b   : > { %6044 = shalt.err (!%p6041_p4)
}
  0x8c   : > { %5793 = dma.hbm_to_vmem [thread:$0]  (!%p6338_p6), %s9027_s5, 16, %s394_s19, [#allocation11]  }
  0x8d   : > { %s6222_s23 = smov [#allocation15]   ;;  %s6223_s29 = smov [#allocation16]  }
  0x8e   : > { %s422_s7 = sshll.u32 %s6222_s23, 4  ;;  %s441_s21 = sshll.u32 %s6223_s29, 4  ;;  %s423_s7 = int_to_ptr.vmem [resolvable:$true] %s422_s7  ;;  %s442_s21 = int_to_ptr.vmem [resolvable:$true] %s441_s21 }
  0x8f   : > { %s6045_s17 = scalar_lea.hbm %s9031_s9, 2048 }
  0x90   : > { %p6046_p13 = scmp.ne.s32.totalorder %s9031_s9, %s6045_s17  ;;  %p6052_p3 = scmp.lt.u32.totalorder %s6045_s17, %s9031_s9 }
  0x92   : > { %p6048_p0 = pnand %p6046_p13, %p6352_p8 }
  0x94   : > { %p6049_p1 = pneg %p6048_p0 }
  0x96   : > { %p6054_p2 = pnand %p6052_p3, %p6049_p1 }
  0x98   : > { %6057 = shalt.err (!%p6054_p2)
}
  0x99   : > { %s6058_s19 = scalar_lea.vmem %s423_s7, 2048  ;;  %p6066_p10 = scmp.lt.s32.totalorder %s423_s7, %s423_s7 }
  0x9a   : > { %p6059_p5 = scmp.ne.s32.totalorder %s423_s7, %s6058_s19  ;;  %p6067_p11 = scmp.lt.s32.totalorder %s6058_s19, %s6058_s19 }
  0x9c   : > { %p6061_p7 = pnand %p6059_p5, %p6352_p8  ;;  %p6068_p12 = por %p6067_p11, %p6066_p10 }
  0x9e   : > { %p6062_p9 = pneg %p6061_p7 }
  0xa0   : > { %p6069_p4 = pnand %p6068_p12, %p6062_p9 }
  0xa2   : > { %6072 = shalt.err (!%p6069_p4)
}
  0xa3   : > { %5799 = dma.hbm_to_vmem [thread:$0]  (!%p6338_p6), %s9031_s9, 2048, %s423_s7, [#allocation14], %s9041_s10, %s9041_s10, %s6219_s11  }
  0xa4   : > { %s6073_s30 = scalar_lea.hbm %s9034_s12, 2048 }
  0xa5   : > { %p6074_p13 = scmp.ne.s32.totalorder %s9034_s12, %s6073_s30  ;;  %p6080_p3 = scmp.lt.u32.totalorder %s6073_s30, %s9034_s12 }
  0xa7   : > { %p6076_p0 = pnand %p6074_p13, %p6352_p8 }
  0xa9   : > { %p6077_p1 = pneg %p6076_p0 }
  0xab   : > { %p6082_p2 = pnand %p6080_p3, %p6077_p1 }
  0xad   : > { %6085 = shalt.err (!%p6082_p2)
}
  0xae   : > { %s6086_s13 = scalar_lea.vmem %s442_s21, 2048  ;;  %p6094_p10 = scmp.lt.s32.totalorder %s442_s21, %s442_s21 }
  0xaf   : > { %p6087_p5 = scmp.ne.s32.totalorder %s442_s21, %s6086_s13  ;;  %p6095_p11 = scmp.lt.s32.totalorder %s6086_s13, %s6086_s13 }
  0xb1   : > { %p6089_p7 = pnand %p6087_p5, %p6352_p8  ;;  %p6096_p12 = por %p6095_p11, %p6094_p10 }
  0xb3   : > { %p6090_p9 = pneg %p6089_p7 }
  0xb5   : > { %p6097_p4 = pnand %p6096_p12, %p6090_p9 }
  0xb7   : > { %6100 = shalt.err (!%p6097_p4)
}
  0xb8   : > { %5802 = dma.hbm_to_vmem [thread:$0]  (!%p6338_p6), %s9034_s12, 2048, %s442_s21, [#allocation17], %s9041_s10, %s9041_s10, %s6219_s11  }
  0xb9   : > { %s4959_s18 = sadd.s32 4294967294, %s6213_s28   ;;  %s6506_s16 = sadd.s32 1, %s6213_s28  }
  0xba   : > { %s40_s4 = sadd.s32 1, %s6209_s27  ;;  %s37_s23 = ssub.s32 %s6213_s28, %s6506_s16 }
  0xbb   : > { %p47_p8 = scmp.ne.s32.totalorder %s6209_s27, %s6205_s26  ;;  %p38_p13 = scmp.eq.s32.totalorder %s37_s23, 0 }
  0xbc   : > { %p48_p0 = scmp.eq.s32.totalorder %s6213_s28, 0  ;;  %p53_p1 = scmp.ne.s32.totalorder %s6205_s26, %s6201_s25 }
  0xbd   : > { %p329_p3 = scmp.eq.s32.totalorder %s6320_s14, 1  ;;  %p9054_p5 = scmp.eq.s32.totalorder %s6320_s14, 0 }
  0xbe   : > { %s6518_s29 = scalar_select %p38_p13, %s6209_s27, %s40_s4  }
  0xbf   : > { %p49_p2 = por %p48_p0, %p47_p8  ;;  %p6522_p7 = por %p9054_p5, %p53_p1 }
  0xc0   : > { %p6526_p6 = por %p329_p3, %p47_p8  ;;  %p335_p9 = scmp.eq.s32.totalorder %s4959_s18, 1 }
  0xc1   : > { %p5818_p10 = scmp.lt.s32.totalorder %s6213_s28, 2  ;;  %s455_s30 = sand.u32 1, %s6209_s27  }
  0xc2   : > { %s9056_s21 = scalar_select %p6526_p6, 1, 0 }
  0xc3   : > { %p6532_p11 = por %p335_p9, %p53_p1  ;;  %s4969_s1 = sshll.u32 %s455_s30, 8 }
  0xc4   : > { %s5043_s20 = sshll.u32 %s6213_s28, 12  ;;  %s459_s19 = scalar_lea.vmem [#allocation4], %s4969_s1 }
  0xc5   : > { %s9057_s17 = scalar_select %p6532_p11, 1, 0 }
  0xc6   : > { %s6540_s7 = scalar_lea.hbm %s9022_s0, %s5043_s20  ;;  %s466_s4 = sshll.u32 %s459_s19, 4  ;;  %s6546_s4 = int_to_ptr.vmem [resolvable:$true] %s466_s4 }
  0xc7   : > { %p6542_p12 = pnand %p5818_p10, %p49_p2  ;;  %s6548_s23 = scalar_lea.sflag [#allocation5], %s455_s30 }
  0xc8   : > { %s6101_s10 = scalar_lea.hbm %s6540_s7, 4096  ;;  %s6106_s24 = scalar_lea.hbm %s9022_s0, 8192 }
  0xc9   : > { %p6102_p4 = scmp.ne.s32.totalorder %s6540_s7, %s6101_s10  ;;  %p6103_p8 = pneg %p6542_p12 }
  0xca   : > { %p6107_p1 = scmp.lt.u32.totalorder %s6540_s7, %s9022_s0  ;;  %p6108_p3 = scmp.lt.u32.totalorder %s6106_s24, %s6101_s10 }
  0xcb   : > { %p6104_p13 = pnand %p6103_p8, %p6102_p4  ;;  %p6110_p5 = scmp.lt.u32.totalorder %s6101_s10, %s6540_s7 }
  0xcc   : > { %p6109_p2 = por %p6108_p3, %p6107_p1 }
  0xcd   : > { %p6105_p0 = pneg %p6104_p13 }
  0xce   : > { %p6111_p9 = por %p6110_p5, %p6109_p2 }
  0xd0   : > { %p6112_p10 = pnand %p6111_p9, %p6105_p0 }
  0xd2   : > { %6115 = shalt.err (!%p6112_p10)
}
  0xd3   : > { %s6116_s30 = scalar_lea.vmem %s6546_s4, 4096  ;;  %s6224_s1 = smov [#allocation4]  }
  0xd4   : > { %p6117_p4 = scmp.ne.s32.totalorder %s6546_s4, %s6116_s30  ;;  %s6121_s20 = sshll.u32 %s6224_s1, 4  ;;  %s6122_s20 = int_to_ptr.vmem [resolvable:$false] %s6121_s20 }
  0xd5   : > { %s6123_s13 = scalar_lea.vmem %s6122_s20, 8192  ;;  %p6124_p6 = scmp.lt.s32.totalorder %s6546_s4, %s6122_s20 }
  0xd6   : > { %p6119_p13 = pnand %p6117_p4, %p6103_p8  ;;  %p6125_p1 = scmp.lt.s32.totalorder %s6123_s13, %s6116_s30 }
  0xd8   : > { %p6120_p11 = pneg %p6119_p13  ;;  %p6126_p3 = por %p6125_p1, %p6124_p6 }
  0xda   : > { %p6127_p2 = pnand %p6126_p3, %p6120_p11 }
  0xdc   : > { %6130 = shalt.err (!%p6127_p2)
}
  0xdd   : > { %s9059_s10 = smov 128   ;;  %p9060_p8 = scmp.ne.s32.totalorder %s9049_s15, 0 }
  0xde   : > { %5806 = dma.hbm_to_vmem [thread:$0]  (!%p6542_p12), %s6540_s7, 4096, %s6546_s4, %s6548_s23, %s9059_s10, %s9059_s10, %s6219_s11  }
  0xdf   : > { %478 = sbr.rel (%p9060_p8) target bundleno = 1307 (0x51b), region = 72  ;;  %s6582_s24 = sand.u32 (!%p9060_p8), 1, %s6205_s26  }
  0xe0   : > { %s4973_s19 = sshll.u32 (!%p9060_p8), %s6582_s24, 8  ;;  %s481_s30 = scalar_lea.sflag (!%p9060_p8), [#allocation5], %s6582_s24 }
  0xe1   : > { %s6588_s18 = scalar_lea.vmem (!%p9060_p8), [#allocation4], %s4973_s19 }
  0xe6   : > { %6176 = dma.done.wait (%p6522_p7), %s481_s30, 4096  }
  0xe7   : > { %6178 = vsyncadd (%p6522_p7), %s481_s30, 4294963200  ;;  %p9061_p6 = scmp.eq.s32.totalorder %s6320_s14, 0 }
  0xe9   : > { %6180 = dma.done.wait (%p9061_p6), [#allocation8], 32   ;;  %p9062_p11 = pmov %p9061_p6 }
  0xea   : > { %p9063_p12 = pmov %p9061_p6 }
  0xeb   : > { %6182 = vsyncadd (%p9062_p11), [#allocation8], 4294967264 }
  0xec   : > { %6184 = dma.done.wait (%p9063_p12), [#allocation11], 2064   ;;  %p9064_p0 = pmov %p9061_p6 }
  0xee   : > { %6186 = vsyncadd (%p9064_p0), [#allocation11], 4294965232  ;;  %p9065_p5 = pmov %p9064_p0 }
  0xef   : > { %p9066_p9 = pmov %p9064_p0 }
  0xf0   : > { %6188 = dma.done.wait (%p9065_p5), [#allocation14], 4096  }
  0xf1   : > { %6190 = vsyncadd (%p9066_p9), [#allocation14], 4294963200  ;;  %p9067_p7 = pmov %p9064_p0 }
  0xf2   : > { %p9068_p10 = pmov %p9064_p0 }
  0xf3   : > { %6192 = dma.done.wait (%p9067_p7), [#allocation17], 2048  }
  0xf4   : > { %6194 = vsyncadd (%p9068_p10), [#allocation17], 4294965248  ;;  %v6225_v0 = vmov 0.0   ;;  %v1724_v1 = vld [vmem:[#allocation10] sm:$0xff]  ;;  %v1725_v2 = vld [vmem:[#allocation10 + $0x8] sm:$0xff]  ;;  %s9069_s20 = sld [smem:[#allocation27_spill]] }
  0xf5   : > { %555 = vst [vmem:[#allocation2] sm:$0xff] %v6225_v0  ;;  %556 = vst [vmem:[#allocation2 + $0x8] sm:$0xff] %v6225_v0  ;;  %v1726_v3 = vld [vmem:[#allocation10 + $0x10] sm:$0xff]  ;;  %v5557_v4 = vpack.c.bf16 %v1725_v2, %v1724_v1  ;;  %v1727_v5 = vld [vmem:[#allocation10 + $0x18] sm:$0xff]  ;;  %s9071_s13 = sld [smem:[#allocation28_spill]]  ;;  %s8937_s22 = scalar_lea.vmem [#allocation18], %s4973_s19 }
  0xf6   : > { %557 = vst [vmem:[#allocation2 + $0x10] sm:$0xff] %v6225_v0  ;;  %565 = vst [vmem:[#allocation2 + $0x27] sm:$0x1] %v6225_v0  ;;  %v5561_v6 = vpack.c.bf16 %v1727_v5, %v1726_v3  ;;  %v1728_v7 = vld [vmem:[#allocation10 + $0x20] sm:$0xff]  ;;  %v1729_v8 = vld [vmem:[#allocation10 + $0x28] sm:$0xff]  ;;  %s5044_s19 = sshll.u32 %s6320_s14, 12 }
  0xf7   : > { %566 = vst [vmem:[#allocation2 + $0x47] sm:$0x1] %v6225_v0  ;;  %558 = vst [vmem:[#allocation2 + $0x18] sm:$0xff] %v6225_v0  ;;  %5558 = vmatprep.subr.bf16.mxu0 %v5557_v4  ;;  %v1730_v9 = vld [vmem:[#allocation10 + $0x30] sm:$0xff]  ;;  %v1731_v10 = vld [vmem:[#allocation10 + $0x38] sm:$0xff]  ;;  %v5565_v11 = vpack.c.bf16 %v1729_v8, %v1728_v7  ;;  %s4819_s7 = sshll.u32 %s8937_s22, 4  ;;  %s8976_s7 = int_to_ptr.vmem [resolvable:$true] %s4819_s7 }
  0xf8   : > { %560 = vst [vmem:[#allocation2 + $0x220] sm:$0xff] %v6225_v0  ;;  %561 = vst [vmem:[#allocation2 + $0x228] sm:$0xff] %v6225_v0  ;;  %5560 = vmatpush3.bf16.msra.mxu0 %v5557_v4  ;;  %v1732_v12 = vld [vmem:[#allocation10 + $0x40] sm:$0xff]  ;;  %v1733_v13 = vld [vmem:[#allocation10 + $0x48] sm:$0xff]  ;;  %v5569_v28 = vpack.c.bf16 %v1731_v10, %v1730_v9  ;;  %s9072_s1 = sld [smem:[#allocation30_spill]]  ;;  %s4806_s10 = scalar_lea.sflag [#allocation6], %s6582_s24 }
  0xf9   : > { %562 = vst [vmem:[#allocation2 + $0x230] sm:$0xff] %v6225_v0  ;;  %563 = vst [vmem:[#allocation2 + $0x238] sm:$0xff] %v6225_v0  ;;  %5562 = vmatprep.subr.bf16.mxu0 %v5561_v6  ;;  %v645_v14 = vld [vmem:[%s6588_s18] sm:$0xff]  ;;  %v646_v15 = vld [vmem:[%s6588_s18 + $0x8] sm:$0xff]  ;;  %v6730_v40 = vpack.c.bf16 %v1733_v13, %v1732_v12  ;;  %s6131_s30 = scalar_lea.vmem %s8976_s7, 4096  ;;  %p9073_p13 = scmp.ne.s32.totalorder %s9056_s21, 0 }
  0xfa   : > { %567 = vst [vmem:[#allocation2 + $0x67] sm:$0x1] %v6225_v0  ;;  %568 = vst [vmem:[#allocation2 + $0x87] sm:$0x1] %v6225_v0  ;;  %v647_v16 = vld [vmem:[%s6588_s18 + $0x10] sm:$0xff]  ;;  %v648_v17 = vld [vmem:[%s6588_s18 + $0x18] sm:$0xff]  ;;  %p6132_p4 = scmp.ne.s32.totalorder %s8976_s7, %s6131_s30 }
  0xfb   : > { %569 = vst [vmem:[#allocation2 + $0xa7] sm:$0x1] %v6225_v0  ;;  %570 = vst [vmem:[#allocation2 + $0xc7] sm:$0x1] %v6225_v0  ;;  %v6702_v18 = vld [vmem:[#allocation7] ss:$0 sm:$0xff] }
  0xfc   : > { %571 = vst [vmem:[#allocation2 + $0xe7] sm:$0x1] %v6225_v0  ;;  %572 = vst [vmem:[#allocation2 + $0x107] sm:$0x1] %v6225_v0  ;;  %v1734_v19 = vld [vmem:[#allocation10 + $0x50] sm:$0xff]  ;;  %v1735_v20 = vld [vmem:[#allocation10 + $0x58] sm:$0xff]  ;;  %v684_v21 = vmul.f32 %v6702_v18, %v645_v14  ;;  %v685_v22 = vmul.f32 %v6702_v18, %v646_v15  ;;  %v686_v23 = vmul.f32 %v6702_v18, %v647_v16  ;;  %5564 = vmatpush3.bf16.msra.mxu0 %v5561_v6  ;;  %p6133_p1 = pnand %p6132_p4, %p9073_p13 }
  0xfd   : > { %573 = vst [vmem:[#allocation2 + $0x127] sm:$0x1] %v6225_v0  ;;  %574 = vst [vmem:[#allocation2 + $0x147] sm:$0x1] %v6225_v0  ;;  %v687_v24 = vmul.f32 %v6702_v18, %v648_v17  ;;  %v6708_v25 = vld [vmem:[#allocation9] ss:$0 sm:$0xff]  ;;  %5566 = vmatprep.subr.bf16.mxu0 %v5565_v11  ;;  %v6744_v52 = vpack.c.bf16 %v1735_v20, %v1734_v19 }
  0xfe   : > { %575 = vst [vmem:[#allocation2 + $0x167] sm:$0x1] %v6225_v0  ;;  %576 = vst [vmem:[#allocation2 + $0x187] sm:$0x1] %v6225_v0  ;;  %v6713_v27 = vld [vmem:[%s9025_s3] ss:$0 sm:$0xff]  ;;  %v723_v36 = vadd.f32 %v6708_v25, %v684_v21  ;;  %v724_v37 = vadd.f32 %v6708_v25, %v685_v22  ;;  %v725_v38 = vadd.f32 %v6708_v25, %v686_v23  ;;  %p6134_p3 = pneg %p6133_p1 }
  0xff   : > { %577 = vst [vmem:[#allocation2 + $0x1a7] sm:$0x1] %v6225_v0  ;;  %578 = vst [vmem:[#allocation2 + $0x1c7] sm:$0x1] %v6225_v0  ;;  %v6719_v30 = vld [vmem:[%s9025_s3 + $0x1] ss:$0 sm:$0xff]  ;;  %v726_v39 = vadd.f32 %v6708_v25, %v687_v24 }
 0x100   : > { %579 = vst [vmem:[#allocation2 + $0x1e7] sm:$0x1] %v6225_v0  ;;  %580 = vst [vmem:[#allocation2 + $0x207] sm:$0x1] %v6225_v0  ;;  %v995_v31 = vld [vmem:[#allocation2 + $0x9] sm:$0xff]  ;;  %v1738_v35 = vld [vmem:[#allocation10 + $0x70] sm:$0xff]  ;;  %5568 = vmatpush3.bf16.msra.mxu0 %v5565_v11 }
 0x101   : > { %583 = vst [vmem:[#allocation2 + $0x38] sm:$0x1] %v6225_v0  ;;  %584 = vst [vmem:[#allocation2 + $0x58] sm:$0x1] %v6225_v0  ;;  %v6724_v32 = vld [vmem:[%s9025_s3 + $0x2] ss:$0 sm:$0xff]  ;;  %5570 = vmatprep.subr.bf16.mxu0 %v5569_v28 }
 0x102   : > { %585 = vst [vmem:[#allocation2 + $0x78] sm:$0x1] %v6225_v0  ;;  %586 = vst [vmem:[#allocation2 + $0x98] sm:$0x1] %v6225_v0  ;;  %v1736_v33 = vld [vmem:[#allocation10 + $0x60] sm:$0xff]  ;;  %v1737_v34 = vld [vmem:[#allocation10 + $0x68] sm:$0xff]  ;;  %v1035_v43 = vmul.f32 %v6724_v32, %v995_v31 }
 0x103   : > { %587 = vst [vmem:[#allocation2 + $0xb8] sm:$0x1] %v6225_v0  ;;  %588 = vst [vmem:[#allocation2 + $0xd8] sm:$0x1] %v6225_v0  ;;  %v1739_v41 = vld [vmem:[#allocation10 + $0x78] sm:$0xff]  ;;  %v931_v42 = vmul.f32 0.0, %v6719_v30  ;;  %v6746_v53 = vpack.c.bf16 %v1737_v34, %v1736_v33 }
 0x104   : > { %589 = vst [vmem:[#allocation2 + $0xf8] sm:$0x1] %v6225_v0  ;;  %590 = vst [vmem:[#allocation2 + $0x118] sm:$0x1] %v6225_v0  ;;  %v6737_v44 = vld [vmem:[%s9025_s3 + $0x4] ss:$0 sm:$0xff]  ;;  %v6751_v58 = vpack.c.bf16 %v1739_v41, %v1738_v35  ;;  %5572 = vmatpush3.bf16.msra.mxu0 %v5569_v28 }
 0x105   : > { %591 = vst [vmem:[#allocation2 + $0x138] sm:$0x1] %v6225_v0  ;;  %592 = vst [vmem:[#allocation2 + $0x158] sm:$0x1] %v6225_v0  ;;  %v6742_v45 = vld [vmem:[%s9025_s3 + $0x7] ss:$0 sm:$0xff]  ;;  %5574 = vmatprep.subr.bf16.mxu0 %v6730_v40 }
 0x106   : > { %593 = vst [vmem:[#allocation2 + $0x178] sm:$0x1] %v6225_v0  ;;  %594 = vst [vmem:[#allocation2 + $0x198] sm:$0x1] %v6225_v0  ;;  %v755_v46 = vmax.f32 %v723_v36, 0.0  ;;  %v756_v47 = vmax.f32 %v724_v37, 0.0 }
 0x107   : > { %595 = vst [vmem:[#allocation2 + $0x1b8] sm:$0x1] %v6225_v0  ;;  %596 = vst [vmem:[#allocation2 + $0x1d8] sm:$0x1] %v6225_v0  ;;  %v757_v48 = vmax.f32 %v725_v38, 0.0  ;;  %v758_v49 = vmax.f32 %v726_v39, 0.0 }
 0x108   : > { %597 = vst [vmem:[#allocation2 + $0x1f8] sm:$0x1] %v6225_v0  ;;  %598 = vst [vmem:[#allocation2 + $0x218] sm:$0x1] %v6225_v0  ;;  %v821_v50 = vld [vmem:[#allocation2 + $0xf] sm:$0xff]  ;;  %v649_v56 = vld [vmem:[%s6588_s18 + $0x20] sm:$0xff]  ;;  %v6754_v59 = vmul.f32 %v6737_v44, %v755_v46  ;;  %v933_v7 = vmul.f32 %v6719_v30, %v755_v46  ;;  %v934_v11 = vmul.f32 %v6719_v30, %v756_v47  ;;  %5576 = vmatpush3.bf16.msra.mxu0 %v6730_v40 }
 0x109   : > { %600 = vst [vmem:[#allocation3] sm:$0xff] %v6225_v0  ;;  %601 = vst [vmem:[#allocation3 + $0x8] sm:$0xff] %v6225_v0  ;;  %v860_v55 = vmul.f32 %v6713_v27, %v821_v50  ;;  %v650_v57 = vld [vmem:[%s6588_s18 + $0x28] sm:$0xff]  ;;  %v6757_v60 = vmul.f32 %v6742_v45, %v757_v48  ;;  %v651_v62 = vld [vmem:[%s6588_s18 + $0x30] sm:$0xff]  ;;  %v688_v1 = vmul.f32 %v6702_v18, %v649_v56  ;;  %5578 = vmatprep.subr.bf16.mxu0 %v6744_v52  ;;  %s6226_s14 = smov [#allocation18]  }
 0x10a   : > { %602 = vst [vmem:[#allocation3 + $0x10] sm:$0xff] %v6225_v0  ;;  %603 = vst [vmem:[#allocation3 + $0x18] sm:$0xff] %v6225_v0  ;;  %v689_v2 = vmul.f32 %v6702_v18, %v650_v57  ;;  %v652_v3 = vld [vmem:[%s6588_s18 + $0x38] sm:$0xff]  ;;  %v653_v4 = vld [vmem:[%s6588_s18 + $0x40] sm:$0xff]  ;;  %v6769_v6 = vmul.f32 %v6742_v45, %v758_v49  ;;  %v6773_v8 = vmul.f32 %v6737_v44, %v757_v48  ;;  %s6135_s15 = sshll.u32 %s6226_s14, 4  ;;  %s6136_s15 = int_to_ptr.vmem [resolvable:$false] %s6135_s15 }
 0x10b   : > { %605 = vst [vmem:[#allocation3 + $0x220] sm:$0xff] %v6225_v0  ;;  %606 = vst [vmem:[#allocation3 + $0x228] sm:$0xff] %v6225_v0  ;;  %v964_v63 = vadd.f32 %v931_v42, %v860_v55  ;;  %v727_v9 = vadd.f32 %v6708_v25, %v688_v1  ;;  %v690_v12 = vmul.f32 %v6702_v18, %v651_v62  ;;  %v654_v13 = vld [vmem:[%s6588_s18 + $0x48] sm:$0xff]  ;;  %v655_v19 = vld [vmem:[%s6588_s18 + $0x50] sm:$0xff]  ;;  %s6137_s11 = scalar_lea.vmem %s6136_s15, 8192  ;;  %p6138_p2 = scmp.lt.s32.totalorder %s8976_s7, %s6136_s15 }
 0x10c   : > { %607 = vst [vmem:[#allocation3 + $0x230] sm:$0xff] %v6225_v0  ;;  %608 = vst [vmem:[#allocation3 + $0x238] sm:$0xff] %v6225_v0  ;;  %v728_v10 = vadd.f32 %v6708_v25, %v689_v2  ;;  %v6782_v15 = vmul.f32 %v6737_v44, %v758_v49  ;;  %v691_v16 = vmul.f32 %v6702_v18, %v652_v3  ;;  %v656_v20 = vld [vmem:[%s6588_s18 + $0x58] sm:$0xff]  ;;  %v6791_v21 = vld [vmem:[%s9025_s3 + $0x3] ss:$0 sm:$0xff]  ;;  %5580 = vmatpush3.bf16.msra.mxu0 %v6744_v52  ;;  %p6139_p8 = scmp.lt.s32.totalorder %s6137_s11, %s6131_s30 }
 0x10d   : > { %610 = vst [vmem:[#allocation3 + $0x27] sm:$0x1] %v6225_v0  ;;  %611 = vst [vmem:[#allocation3 + $0x47] sm:$0x1] %v6225_v0  ;;  %v692_v17 = vmul.f32 %v6702_v18, %v653_v4  ;;  %v6793_v22 = vmax.f32 %v727_v9, 0.0  ;;  %v729_v24 = vadd.f32 %v6708_v25, %v690_v12  ;;  %v6813_v33 = vmul.f32 %v6719_v30, %v758_v49 }
 0x10e   : > { %612 = vst [vmem:[#allocation3 + $0x67] sm:$0x1] %v6225_v0  ;;  %613 = vst [vmem:[#allocation3 + $0x87] sm:$0x1] %v6225_v0  ;;  %v6795_v23 = vmax.f32 %v728_v10, 0.0  ;;  %v730_v31 = vadd.f32 %v6708_v25, %v691_v16  ;;  %v6816_v34 = vmul.f32 %v6702_v18, %v654_v13  ;;  %v6839_v40 = vmul.f32 %v6702_v18, %v656_v20  ;;  %p6140_p6 = por %p6139_p8, %p6138_p2 }
 0x10f   : > { %614 = vst [vmem:[#allocation3 + $0xa7] sm:$0x1] %v6225_v0  ;;  %615 = vst [vmem:[#allocation3 + $0xc7] sm:$0x1] %v6225_v0  ;;  %v6804_v28 = vld [vmem:[%s9025_s3 + $0x5] ss:$0 sm:$0xff]  ;;  %v6819_v35 = vadd.f32 %v6708_v25, %v692_v17  ;;  %v6831_v39 = vmul.f32 %v6742_v45, %v6793_v22  ;;  %v6850_v50 = vmul.f32 %v6737_v44, %v6793_v22  ;;  %5582 = vmatprep.subr.bf16.mxu0 %v6746_v53 }
 0x110   : > { %616 = vst [vmem:[#allocation3 + $0xe7] sm:$0x1] %v6225_v0  ;;  %617 = vst [vmem:[#allocation3 + $0x107] sm:$0x1] %v6225_v0  ;;  %v6825_v38 = vld [vmem:[%s9025_s3 + $0x8] ss:$0 sm:$0xff]  ;;  %5584 = vmatpush3.bf16.msra.mxu0 %v6746_v53  ;;  %p6141_p11 = pnand %p6140_p6, %p6134_p3 }
 0x111   : > { %618 = vst [vmem:[#allocation3 + $0x127] sm:$0x1] %v6225_v0  ;;  %619 = vst [vmem:[#allocation3 + $0x147] sm:$0x1] %v6225_v0  ;;  %v6833_v41 = vmax.f32 %v729_v24, 0.0  ;;  %v6869_v20 = vmax.f32 %v730_v31, 0.0  ;;  %5586 = vmatprep.subr.bf16.mxu0 %v6751_v58 }
 0x112   : > { %620 = vst [vmem:[#allocation3 + $0x167] sm:$0x1] %v6225_v0  ;;  %621 = vst [vmem:[#allocation3 + $0x187] sm:$0x1] %v6225_v0 }
 0x113   : > { %622 = vst [vmem:[#allocation3 + $0x1a7] sm:$0x1] %v6225_v0  ;;  %623 = vst [vmem:[#allocation3 + $0x1c7] sm:$0x1] %v6225_v0 }
 0x114   : > { %624 = vst [vmem:[#allocation3 + $0x1e7] sm:$0x1] %v6225_v0  ;;  %625 = vst [vmem:[#allocation3 + $0x207] sm:$0x1] %v6225_v0  ;;  %5588 = vmatpush3.bf16.msra.mxu0 %v6751_v58 }
 0x115   : > { %628 = vst [vmem:[#allocation3 + $0x38] sm:$0x1] %v6225_v0  ;;  %629 = vst [vmem:[#allocation3 + $0x58] sm:$0x1] %v6225_v0 }
 0x116   : > { %630 = vst [vmem:[#allocation3 + $0x78] sm:$0x1] %v6225_v0  ;;  %631 = vst [vmem:[#allocation3 + $0x98] sm:$0x1] %v6225_v0 }
 0x117   : > { %632 = vst [vmem:[#allocation3 + $0xb8] sm:$0x1] %v6225_v0  ;;  %633 = vst [vmem:[#allocation3 + $0xd8] sm:$0x1] %v6225_v0 }
 0x118   : > { %634 = vst [vmem:[#allocation3 + $0xf8] sm:$0x1] %v6225_v0  ;;  %635 = vst [vmem:[#allocation3 + $0x118] sm:$0x1] %v6225_v0 }
 0x119   : > { %636 = vst [vmem:[#allocation3 + $0x138] sm:$0x1] %v6225_v0  ;;  %637 = vst [vmem:[#allocation3 + $0x158] sm:$0x1] %v6225_v0 }
 0x11a   : > { %638 = vst [vmem:[#allocation3 + $0x178] sm:$0x1] %v6225_v0  ;;  %639 = vst [vmem:[#allocation3 + $0x198] sm:$0x1] %v6225_v0 }
 0x11b   : > { %640 = vst [vmem:[#allocation3 + $0x1b8] sm:$0x1] %v6225_v0  ;;  %641 = vst [vmem:[#allocation3 + $0x1d8] sm:$0x1] %v6225_v0 }
 0x11c   : > { %642 = vst [vmem:[#allocation3 + $0x1f8] sm:$0x1] %v6225_v0  ;;  %643 = vst [vmem:[#allocation3 + $0x218] sm:$0x1] %v6225_v0 }
 0x11d   : > { %564 = vst [vmem:[#allocation2 + $0x7] sm:$0x1] %v6225_v0  ;;  %582 = vst [vmem:[#allocation2 + $0x18] sm:$0x1] %v6225_v0 }
 0x11e   : > { %581 = vst [vmem:[#allocation2 + $0x227] sm:$0x1] %v6225_v0  ;;  %599 = vst [vmem:[#allocation2 + $0x238] sm:$0x1] %v6225_v0 }
 0x11f   : > { %609 = vst [vmem:[#allocation3 + $0x7] sm:$0x1] %v6225_v0  ;;  %626 = vst [vmem:[#allocation3 + $0x227] sm:$0x1] %v6225_v0 }
 0x120   : > { %627 = vst [vmem:[#allocation3 + $0x18] sm:$0x1] %v6225_v0  ;;  %644 = vst [vmem:[#allocation3 + $0x238] sm:$0x1] %v6225_v0  ;;  %v6762_v0 = vmul.f32 %v6737_v44, %v756_v47 }
 0x121   : > { %788 = vst [vmem:[#allocation2 + $0x28] sm:$0xff] %v755_v46  ;;  %789 = vst [vmem:[#allocation2 + $0x30] sm:$0xff] %v756_v47 }
 0x122   : > { %790 = vst [vmem:[#allocation2 + $0x48] sm:$0xff] %v757_v48  ;;  %791 = vst [vmem:[#allocation2 + $0x50] sm:$0xff] %v758_v49  ;;  %v6846_v49 = vmul.f32 %v6742_v45, %v6795_v23 }
 0x123   : > { %792 = vst [vmem:[#allocation2 + $0x68] sm:$0xff] %v6793_v22  ;;  %793 = vst [vmem:[#allocation2 + $0x70] sm:$0xff] %v6795_v23 }
 0x124   : > { %v820_v26 = vld [vmem:[#allocation2 + $0x7] sm:$0xff]  ;;  %v996_v51 = vld [vmem:[#allocation2 + $0x11] sm:$0xff]  ;;  %794 = vst [vmem:[#allocation2 + $0x88] sm:$0xff] %v6833_v41  ;;  %795 = vst [vmem:[#allocation2 + $0x90] sm:$0xff] %v6869_v20 }
 0x125   : > { %v859_v29 = vmul.f32 %v6713_v27, %v820_v26  ;;  %v1036_v61 = vmul.f32 %v6724_v32, %v996_v51  ;;  %v6799_v26 = vmul.f32 %v6719_v30, %v757_v48 }
 0x127   : > { %v963_v54 = vadd.f32 %v931_v42, %v859_v29  ;;  %v1068_v14 = vadd.f32 %v1036_v61, %v964_v63  ;;  %v6809_v29 = vld [vmem:[%s9025_s3 + $0x6] ss:$0 sm:$0xff]  ;;  %v6836_v42 = vmul.f32 %v6702_v18, %v655_v19 }
 0x128   : > { %v1099_v36 = vld [vmem:[#allocation2 + $0x27] sm:$0xff]  ;;  %v1100_v47 = vld [vmem:[#allocation2 + $0x2f] sm:$0xff] }
 0x129   : > { %v1067_v5 = vadd.f32 %v1035_v43, %v963_v54  ;;  %v1307_v37 = vld [vmem:[#allocation2 + $0x29] sm:$0xff]  ;;  %v1139_v43 = vmul.f32 %v6791_v21, %v1099_v36  ;;  %v861_v48 = vmul.f32 %v6713_v27, %v1099_v36  ;;  %v1140_v56 = vmul.f32 %v6791_v21, %v1100_v47  ;;  %v1308_v57 = vld [vmem:[#allocation2 + $0x31] sm:$0xff] }
 0x12a   : > { %v1412_v46 = vld [vmem:[#allocation2 + $0x47] sm:$0xff]  ;;  %v1347_v51 = vmul.f32 %v6804_v28, %v1307_v37  ;;  %v1037_v61 = vmul.f32 %v6724_v32, %v1307_v37  ;;  %v1348_v1 = vmul.f32 %v6804_v28, %v1308_v57  ;;  %v1413_v2 = vld [vmem:[#allocation2 + $0x4f] sm:$0xff]  ;;  %v862_v13 = vmul.f32 %v6713_v27, %v1100_v47 }
 0x12b   : > { %v1452_v54 = vmul.f32 %v6809_v29, %v1412_v46  ;;  %v1620_v55 = vld [vmem:[#allocation2 + $0x49] sm:$0xff]  ;;  %v1171_v62 = vadd.f32 %v1139_v43, %v1067_v5  ;;  %v965_v3 = vadd.f32 %v933_v7, %v861_v48  ;;  %v1172_v4 = vadd.f32 %v1140_v56, %v1068_v14  ;;  %v1621_v10 = vld [vmem:[#allocation2 + $0x51] sm:$0xff] }
 0x12c   : > { %v1660_v63 = vmul.f32 %v6825_v38, %v1620_v55  ;;  %v1453_v9 = vmul.f32 %v6809_v29, %v1413_v2  ;;  %v1141_v12 = vmul.f32 %v6791_v21, %v1412_v46  ;;  %v1661_v16 = vmul.f32 %v6825_v38, %v1621_v10  ;;  %v1414_v43 = vld [vmem:[#allocation2 + $0x67] sm:$0xff] }
 0x12d   : > { %v1275_v5 = vadd.f32 %v6754_v59, %v1171_v62  ;;  %v1069_v17 = vadd.f32 %v1037_v61, %v965_v3  ;;  %v1038_v19 = vmul.f32 %v6724_v32, %v1308_v57  ;;  %v1276_v7 = vadd.f32 %v6762_v0, %v1172_v4  ;;  %v1622_v48 = vld [vmem:[#allocation2 + $0x69] sm:$0xff] }
 0x12e   : > { %v966_v52 = vadd.f32 %v934_v11, %v862_v13  ;;  %v1142_v14 = vmul.f32 %v6791_v21, %v1413_v2  ;;  %v1349_v37 = vmul.f32 %v6804_v28, %v1620_v55  ;;  %v863_v47 = vmul.f32 %v6713_v27, %v1412_v46  ;;  %v1415_v62 = vld [vmem:[#allocation2 + $0x6f] sm:$0xff] }
 0x12f   : > { %v1379_v24 = vadd.f32 %v1347_v51, %v1275_v5  ;;  %v1173_v36 = vadd.f32 %v1141_v12, %v1069_v17  ;;  %v1380_v59 = vadd.f32 %v1348_v1, %v1276_v7  ;;  %v1350_v57 = vmul.f32 %v6804_v28, %v1621_v10  ;;  %v6881_v1 = vld [vmem:[#allocation2 + $0x71] sm:$0xff]  ;;  %v6893_v7 = vld [vmem:[#allocation2 + $0x87] sm:$0xff] }
 0x130   : > { %v1070_v56 = vadd.f32 %v1038_v19, %v966_v52  ;;  %v1039_v0 = vmul.f32 %v6724_v32, %v1620_v55  ;;  %v1454_v51 = vmul.f32 %v6809_v29, %v1414_v43  ;;  %v1662_v46 = vmul.f32 %v6825_v38, %v1622_v48 }
 0x131   : > { %v1484_v11 = vadd.f32 %v1452_v54, %v1379_v24  ;;  %v1277_v31 = vadd.f32 %v6773_v8, %v1173_v36  ;;  %v1485_v61 = vadd.f32 %v1453_v9, %v1380_v59  ;;  %v967_v3 = vadd.f32 %v6799_v26, %v863_v47 }
 0x132   : > { %v1174_v53 = vadd.f32 %v1142_v14, %v1070_v56  ;;  %v1143_v4 = vmul.f32 %v6791_v21, %v1414_v43  ;;  %v1455_v54 = vmul.f32 %v6809_v29, %v1415_v62  ;;  %v1663_v8 = vmul.f32 %v6825_v38, %v6881_v1  ;;  %v6909_v56 = vld [vmem:[#allocation2 + $0x8f] sm:$0xff] }
 0x133   : > { %v1588_v55 = vadd.f32 %v6757_v60, %v1484_v11  ;;  %v1381_v12 = vadd.f32 %v1349_v37, %v1277_v31  ;;  %v1589_v9 = vadd.f32 %v6769_v6, %v1485_v61  ;;  %v1071_v5 = vadd.f32 %v1039_v0, %v967_v3 }
 0x134   : > { %v1278_v13 = vadd.f32 %v6782_v15, %v1174_v53  ;;  %v1351_v17 = vmul.f32 %v6804_v28, %v1622_v48  ;;  %v864_v60 = vmul.f32 %v6713_v27, %v1413_v2  ;;  %v1040_v52 = vmul.f32 %v6724_v32, %v1621_v10 }
 0x135   : > { %v1692_v26 = vadd.f32 %v1660_v63, %v1588_v55  ;;  %v1486_v19 = vadd.f32 %v1454_v51, %v1381_v12  ;;  %v1693_v14 = vadd.f32 %v1661_v16, %v1589_v9  ;;  %v1175_v36 = vadd.f32 %v1143_v4, %v1071_v5  ;;  %v1624_v16 = vld [vmem:[#allocation2 + $0x89] sm:$0xff]  ;;  %v1625_v12 = vld [vmem:[#allocation2 + $0x91] sm:$0xff] }
 0x136   : > { %v1382_v24 = vadd.f32 %v1350_v57, %v1278_v13  ;;  %v1456_v58 = vmul.f32 %v6809_v29, %v6893_v7  ;;  %v1560_v15 = vmul.f32 %v6742_v45, %v6833_v41  ;;  %v968_v63 = vadd.f32 %v6813_v33, %v864_v60 }
 0x137   : > { %5269 = vmatprep.mubr.f32.mxu0 %v1692_v26  ;;  %v1590_v6 = vadd.f32 %v6831_v39, %v1486_v19  ;;  %v1144_v37 = vmul.f32 %v6791_v21, %v1415_v62  ;;  %v1279_v10 = vadd.f32 %v6850_v50, %v1175_v36  ;;  %v1248_v47 = vmul.f32 %v6737_v44, %v6795_v23 }
 0x138   : > { %5270 = vmatmul.mubr.f32.vlgmr.msra.gmra.mrb[0].mxu0 %v1693_v14  ;;  %v1487_v2 = vadd.f32 %v1455_v54, %v1382_v24  ;;  %v1352_v59 = vmul.f32 %v6804_v28, %v6881_v1  ;;  %v1664_v57 = vmul.f32 %v6825_v38, %v1624_v16  ;;  %v1072_v0 = vadd.f32 %v1040_v52, %v968_v63 }
 0x139   : > { %v1694_v39 = vadd.f32 %v1662_v46, %v1590_v6  ;;  %v1457_v33 = vmul.f32 %v6809_v29, %v6909_v56  ;;  %v1383_v31 = vadd.f32 %v1351_v17, %v1279_v10  ;;  %v732_v50 = vadd.f32 %v6708_v25, %v6816_v34 }
 0x13a   : > { %v1591_v11 = vadd.f32 %v6846_v49, %v1487_v2  ;;  %v6918_v51 = vmax.f32 %v6819_v35, 0.0  ;;  %v1176_v61 = vadd.f32 %v1144_v37, %v1072_v0  ;;  %v865_v53 = vmul.f32 %v6713_v27, %v1414_v43 }
 0x13b   : > { %5272 = vmatprep.mubr.f32.mxu0 %v1694_v39  ;;  %v937_v46 = vmul.f32 %v6719_v30, %v6793_v22  ;;  %v1041_v3 = vmul.f32 %v6724_v32, %v1622_v48  ;;  %v1488_v55 = vadd.f32 %v1456_v58, %v1383_v31  ;;  %v1561_v49 = vmul.f32 %v6742_v45, %v6869_v20 }
 0x13c   : > { %v1695_v4 = vadd.f32 %v1663_v8, %v1591_v11  ;;  %v6926_v54 = vmax.f32 %v732_v50, 0.0  ;;  %796 = vst [vmem:[#allocation2 + $0xa8] sm:$0xff] %v6918_v51  ;;  %v1280_v34 = vadd.f32 %v1248_v47, %v1176_v61  ;;  %v1665_v35 = vmul.f32 %v6825_v38, %v1625_v12 }
 0x13d   : > { %v969_v9 = vadd.f32 %v937_v46, %v865_v53  ;;  %v1145_v43 = vmul.f32 %v6791_v21, %v6893_v7  ;;  %v1592_v22 = vadd.f32 %v1560_v15, %v1488_v55  ;;  %v1249_v48 = vmul.f32 %v6737_v44, %v6833_v41 }
 0x13e   : > { %5273 = vmatmul.mubr.f32.gmra.mrb[2].mxu0 %v1695_v4  ;;  %797 = vst [vmem:[#allocation2 + $0xb0] sm:$0xff] %v6926_v54  ;;  %v866_v8 = vmul.f32 %v6713_v27, %v1415_v62  ;;  %v938_v13 = vmul.f32 %v6719_v30, %v6795_v23  ;;  %v1384_v5 = vadd.f32 %v1352_v59, %v1280_v34 }
 0x13f   : > { %v1073_v17 = vadd.f32 %v1041_v3, %v969_v9  ;;  %v1353_v26 = vmul.f32 %v6804_v28, %v1624_v16  ;;  %v1042_v19 = vmul.f32 %v6724_v32, %v6881_v1  ;;  %v1696_v60 = vadd.f32 %v1664_v57, %v1592_v22  ;;  %v657_v22 = vld [vmem:[%s6588_s18 + $0x60] sm:$0xff] }
 0x140   : > { %v970_v52 = vadd.f32 %v938_v13, %v866_v8  ;;  %v1146_v14 = vmul.f32 %v6791_v21, %v6909_v56  ;;  %v1250_v24 = vmul.f32 %v6737_v44, %v6869_v20  ;;  %v1489_v36 = vadd.f32 %v1457_v33, %v1384_v5 }
 0x141   : > { %v1177_v62 = vadd.f32 %v1145_v43, %v1073_v17  ;;  %v1354_v58 = vmul.f32 %v6804_v28, %v1625_v12  ;;  %v733_v23 = vadd.f32 %v6708_v25, %v6836_v42  ;;  %5275 = vmatprep.mubr.f32.mxu0 %v1696_v60  ;;  %v734_v1 = vadd.f32 %v6708_v25, %v6839_v40 }
 0x142   : > { %v1074_v6 = vadd.f32 %v1042_v19, %v970_v52  ;;  %v867_v15 = vmul.f32 %v6713_v27, %v6893_v7  ;;  %v939_v63 = vmul.f32 %v6719_v30, %v6833_v41  ;;  %v1593_v37 = vadd.f32 %v1561_v49, %v1489_v36 }
 0x143   : > { %v1281_v2 = vadd.f32 %v1249_v48, %v1177_v62  ;;  %v1418_v10 = vld [vmem:[#allocation2 + $0xa7] sm:$0xff]  ;;  %v6954_v47 = vmax.f32 %v733_v23, 0.0  ;;  %v1043_v59 = vmul.f32 %v6724_v32, %v1624_v16  ;;  %v6958_v57 = vmax.f32 %v734_v1, 0.0 }
 0x144   : > { %v1458_v42 = vmul.f32 %v6809_v29, %v1418_v10  ;;  %v1178_v39 = vadd.f32 %v1146_v14, %v1074_v6  ;;  %v971_v0 = vadd.f32 %v939_v63, %v867_v15  ;;  %v1697_v40 = vadd.f32 %v1665_v35, %v1593_v37  ;;  %v658_v48 = vld [vmem:[%s6588_s18 + $0x68] sm:$0xff] }
 0x145   : > { %v1385_v33 = vadd.f32 %v1353_v26, %v1281_v2  ;;  %v1562_v7 = vmul.f32 %v6742_v45, %v6918_v51  ;;  %v6962_v11 = vld [vmem:[#allocation2 + $0xaf] sm:$0xff]  ;;  %798 = vst [vmem:[#allocation2 + $0xc8] sm:$0xff] %v6954_v47  ;;  %v1147_v41 = vmul.f32 %v6791_v21, %v1418_v10  ;;  %v1563_v61 = vmul.f32 %v6742_v45, %v6926_v54 }
 0x146   : > { %v1626_v31 = vld [vmem:[#allocation2 + $0xa9] sm:$0xff]  ;;  %v1282_v16 = vadd.f32 %v1250_v24, %v1178_v39  ;;  %v1459_v50 = vmul.f32 %v6809_v29, %v6962_v11  ;;  %v6970_v53 = vld [vmem:[#allocation2 + $0xb1] sm:$0xff]  ;;  %799 = vst [vmem:[#allocation2 + $0xd0] sm:$0xff] %v6958_v57  ;;  %v1251_v46 = vmul.f32 %v6737_v44, %v6918_v51  ;;  %5276 = vmatmul.mubr.f32.gmra.mrb[4].mxu0 %v1697_v40 }
 0x147   : > { %v1490_v3 = vadd.f32 %v1458_v42, %v1385_v33  ;;  %v1666_v4 = vmul.f32 %v6825_v38, %v1626_v31  ;;  %v1667_v55 = vmul.f32 %v6825_v38, %v6970_v53  ;;  %v1075_v49 = vadd.f32 %v1043_v59, %v971_v0 }
 0x148   : > { %v1386_v34 = vadd.f32 %v1354_v58, %v1282_v16  ;;  %v868_v35 = vmul.f32 %v6713_v27, %v6909_v56  ;;  %v940_v9 = vmul.f32 %v6719_v30, %v6869_v20  ;;  %v1044_v43 = vmul.f32 %v6724_v32, %v1625_v12 }
 0x149   : > { %v1594_v8 = vadd.f32 %v1562_v7, %v1490_v3  ;;  %v1179_v13 = vadd.f32 %v1147_v41, %v1075_v49  ;;  %v1355_v5 = vmul.f32 %v6804_v28, %v1626_v31  ;;  %v1564_v17 = vmul.f32 %v6742_v45, %v6954_v47 }
 0x14a   : > { %v1491_v26 = vadd.f32 %v1459_v50, %v1386_v34  ;;  %v972_v19 = vadd.f32 %v940_v9, %v868_v35  ;;  %v1148_v60 = vmul.f32 %v6791_v21, %v6962_v11  ;;  %v1252_v56 = vmul.f32 %v6737_v44, %v6926_v54  ;;  %v659_v9 = vld [vmem:[%s6588_s18 + $0x70] sm:$0xff] }
 0x14b   : > { %v1698_v20 = vadd.f32 %v1666_v4, %v1594_v8  ;;  %v1283_v52 = vadd.f32 %v1251_v46, %v1179_v13  ;;  %v696_v12 = vmul.f32 %v6702_v18, %v657_v22  ;;  %v697_v14 = vmul.f32 %v6702_v18, %v658_v48 }
 0x14c   : > { %v1595_v24 = vadd.f32 %v1563_v61, %v1491_v26  ;;  %v1420_v36 = vld [vmem:[#allocation2 + $0xc7] sm:$0xff]  ;;  %v1076_v62 = vadd.f32 %v1044_v43, %v972_v19  ;;  %v869_v58 = vmul.f32 %v6713_v27, %v1418_v10  ;;  %v941_v23 = vmul.f32 %v6719_v30, %v6918_v51  ;;  %v660_v43 = vld [vmem:[%s6588_s18 + $0x78] sm:$0xff] }
 0x14d   : > { %5278 = vmatprep.mubr.f32.mxu0 %v1698_v20  ;;  %v1387_v6 = vadd.f32 %v1355_v5, %v1283_v52  ;;  %v1460_v1 = vmul.f32 %v6809_v29, %v1420_v36  ;;  %v1628_v15 = vld [vmem:[#allocation2 + $0xc9] sm:$0xff]  ;;  %v735_v63 = vadd.f32 %v6708_v25, %v696_v12  ;;  %v736_v37 = vadd.f32 %v6708_v25, %v697_v14  ;;  %v7011_v41 = vld [vmem:[#allocation2 + $0xd1] sm:$0xff] }
 0x14e   : > { %v1699_v2 = vadd.f32 %v1667_v55, %v1595_v24  ;;  %v1668_v59 = vmul.f32 %v6825_v38, %v1628_v15  ;;  %v1180_v42 = vadd.f32 %v1148_v60, %v1076_v62  ;;  %v1356_v39 = vmul.f32 %v6804_v28, %v6970_v53  ;;  %v7003_v10 = vld [vmem:[#allocation2 + $0xcf] sm:$0xff] }
 0x14f   : > { %v1492_v0 = vadd.f32 %v1460_v1, %v1387_v6  ;;  %v1461_v51 = vmul.f32 %v6809_v29, %v7003_v10  ;;  %v7007_v40 = vmax.f32 %v735_v63, 0.0  ;;  %v7009_v33 = vmax.f32 %v736_v37, 0.0 }
 0x150   : > { %5279 = vmatmul.mubr.f32.gmra.mrb[6].mxu0 %v1699_v2  ;;  %v1284_v7 = vadd.f32 %v1252_v56, %v1180_v42  ;;  %v973_v16 = vadd.f32 %v941_v23, %v869_v58  ;;  %v1045_v50 = vmul.f32 %v6724_v32, %v1626_v31  ;;  %v1149_v61 = vmul.f32 %v6791_v21, %v1420_v36 }
 0x151   : > { %v1596_v46 = vadd.f32 %v1564_v17, %v1492_v0  ;;  %v1565_v3 = vmul.f32 %v6742_v45, %v6958_v57  ;;  %v1669_v4 = vmul.f32 %v6825_v38, %v7011_v41  ;;  %800 = vst [vmem:[#allocation2 + $0xe8] sm:$0xff] %v7007_v40  ;;  %801 = vst [vmem:[#allocation2 + $0xf0] sm:$0xff] %v7009_v33 }
 0x152   : > { %v1253_v55 = vmul.f32 %v6737_v44, %v6954_v47  ;;  %v1388_v49 = vadd.f32 %v1356_v39, %v1284_v7  ;;  %v1077_v34 = vadd.f32 %v1045_v50, %v973_v16  ;;  %v870_v31 = vmul.f32 %v6713_v27, %v6962_v11 }
 0x153   : > { %v942_v35 = vmul.f32 %v6719_v30, %v6926_v54  ;;  %v1700_v22 = vadd.f32 %v1668_v59, %v1596_v46  ;;  %v1357_v48 = vmul.f32 %v6804_v28, %v1628_v15  ;;  %v1566_v8 = vmul.f32 %v6742_v45, %v7007_v40 }
 0x154   : > { %v1046_v13 = vmul.f32 %v6724_v32, %v6970_v53  ;;  %v1493_v5 = vadd.f32 %v1461_v51, %v1388_v49  ;;  %v1181_v17 = vadd.f32 %v1149_v61, %v1077_v34  ;;  %v1150_v11 = vmul.f32 %v6791_v21, %v7003_v10 }
 0x155   : > { %v974_v26 = vadd.f32 %v942_v35, %v870_v31  ;;  %5281 = vmatprep.mubr.f32.mxu0 %v1700_v22  ;;  %v1254_v54 = vmul.f32 %v6737_v44, %v6958_v57  ;;  %v698_v19 = vmul.f32 %v6702_v18, %v659_v9  ;;  %v699_v60 = vmul.f32 %v6702_v18, %v660_v43  ;;  %v661_v31 = vld [vmem:[%s6588_s18 + $0x80] sm:$0xff]  ;;  %v662_v35 = vld [vmem:[%s6588_s18 + $0x88] sm:$0xff] }
 0x156   : > { %v871_v56 = vmul.f32 %v6713_v27, %v1420_v36  ;;  %v1597_v20 = vadd.f32 %v1565_v3, %v1493_v5  ;;  %v1285_v52 = vadd.f32 %v1253_v55, %v1181_v17  ;;  %v943_v53 = vmul.f32 %v6719_v30, %v6954_v47 }
 0x157   : > { %v1078_v12 = vadd.f32 %v1046_v13, %v974_v26  ;;  %v1358_v14 = vmul.f32 %v6804_v28, %v7011_v41  ;;  %v737_v24 = vadd.f32 %v6708_v25, %v698_v19  ;;  %v738_v62 = vadd.f32 %v6708_v25, %v699_v60 }
 0x158   : > { %v1047_v58 = vmul.f32 %v6724_v32, %v1628_v15  ;;  %v1701_v23 = vadd.f32 %v1669_v4, %v1597_v20  ;;  %v1389_v6 = vadd.f32 %v1357_v48, %v1285_v52  ;;  %v1422_v1 = vld [vmem:[#allocation2 + $0xe7] sm:$0xff]  ;;  %v975_v36 = vadd.f32 %v943_v53, %v871_v56  ;;  %v7049_v2 = vld [vmem:[#allocation2 + $0xef] sm:$0xff] }
 0x159   : > { %v1182_v63 = vadd.f32 %v1150_v11, %v1078_v12  ;;  %v1462_v37 = vmul.f32 %v6809_v29, %v1422_v1  ;;  %v1567_v47 = vmul.f32 %v6742_v45, %v7009_v33  ;;  %v7053_v59 = vmax.f32 %v737_v24, 0.0  ;;  %v1630_v39 = vld [vmem:[#allocation2 + $0xe9] sm:$0xff]  ;;  %v1631_v51 = vld [vmem:[#allocation2 + $0xf1] sm:$0xff] }
 0x15a   : > { %v1255_v42 = vmul.f32 %v6737_v44, %v7007_v40  ;;  %5282 = vmatmul.mubr.f32.gmra.mrb[8].mxu0 %v1701_v23  ;;  %v1463_v0 = vmul.f32 %v6809_v29, %v7049_v2  ;;  %v7059_v7 = vmax.f32 %v738_v62, 0.0  ;;  %v1079_v16 = vadd.f32 %v1047_v58, %v975_v36 }
 0x15b   : > { %v1286_v15 = vadd.f32 %v1254_v54, %v1182_v63  ;;  %v1494_v50 = vadd.f32 %v1462_v37, %v1389_v6  ;;  %v1670_v61 = vmul.f32 %v6825_v38, %v1630_v39  ;;  %v1671_v46 = vmul.f32 %v6825_v38, %v1631_v51  ;;  %802 = vst [vmem:[#allocation2 + $0x108] sm:$0xff] %v7053_v59 }
 0x15c   : > { %v1151_v3 = vmul.f32 %v6791_v21, %v1422_v1  ;;  %803 = vst [vmem:[#allocation2 + $0x110] sm:$0xff] %v7059_v7  ;;  %v872_v55 = vmul.f32 %v6713_v27, %v7003_v10  ;;  %v944_v49 = vmul.f32 %v6719_v30, %v6958_v57  ;;  %v1048_v34 = vmul.f32 %v6724_v32, %v7011_v41 }
 0x15d   : > { %v1390_v4 = vadd.f32 %v1358_v14, %v1286_v15  ;;  %v1598_v9 = vadd.f32 %v1566_v8, %v1494_v50  ;;  %v1359_v22 = vmul.f32 %v6804_v28, %v1630_v39  ;;  %v1568_v48 = vmul.f32 %v6742_v45, %v7053_v59 }
 0x15e   : > { %v1183_v43 = vadd.f32 %v1151_v3, %v1079_v16  ;;  %v976_v5 = vadd.f32 %v944_v49, %v872_v55  ;;  %v1152_v10 = vmul.f32 %v6791_v21, %v7049_v2  ;;  %v1256_v57 = vmul.f32 %v6737_v44, %v7009_v33  ;;  %v663_v49 = vld [vmem:[%s6588_s18 + $0x90] sm:$0xff] }
 0x15f   : > { %v1495_v13 = vadd.f32 %v1463_v0, %v1390_v4  ;;  %v1702_v17 = vadd.f32 %v1670_v61, %v1598_v9  ;;  %v700_v41 = vmul.f32 %v6702_v18, %v661_v31  ;;  %v701_v8 = vmul.f32 %v6702_v18, %v662_v35 }
 0x160   : > { %v1287_v26 = vadd.f32 %v1255_v42, %v1183_v43  ;;  %v1080_v54 = vadd.f32 %v1048_v34, %v976_v5  ;;  %v873_v19 = vmul.f32 %v6713_v27, %v1422_v1  ;;  %v945_v60 = vmul.f32 %v6719_v30, %v7007_v40  ;;  %v664_v34 = vld [vmem:[%s6588_s18 + $0x98] sm:$0xff] }
 0x161   : > { %v1599_v11 = vadd.f32 %v1567_v47, %v1495_v13  ;;  %5284 = vmatprep.mubr.f32.mxu0 %v1702_v17  ;;  %v739_v20 = vadd.f32 %v6708_v25, %v700_v41  ;;  %v740_v52 = vadd.f32 %v6708_v25, %v701_v8  ;;  %v1049_v12 = vmul.f32 %v6724_v32, %v1630_v39 }
 0x162   : > { %v1391_v56 = vadd.f32 %v1359_v22, %v1287_v26  ;;  %v1424_v14 = vld [vmem:[#allocation2 + $0x107] sm:$0xff]  ;;  %v1184_v24 = vadd.f32 %v1152_v10, %v1080_v54  ;;  %v1360_v62 = vmul.f32 %v6804_v28, %v1631_v51  ;;  %v977_v58 = vadd.f32 %v945_v60, %v873_v19 }
 0x163   : > { %v1703_v53 = vadd.f32 %v1671_v46, %v1599_v11  ;;  %v1464_v23 = vmul.f32 %v6809_v29, %v1424_v14  ;;  %v7091_v6 = vld [vmem:[#allocation2 + $0x10f] sm:$0xff]  ;;  %v7093_v1 = vmax.f32 %v739_v20, 0.0  ;;  %v7095_v40 = vmax.f32 %v740_v52, 0.0 }
 0x164   : > { %v1153_v63 = vmul.f32 %v6791_v21, %v1424_v14  ;;  %v1632_v36 = vld [vmem:[#allocation2 + $0x109] sm:$0xff]  ;;  %v1288_v37 = vadd.f32 %v1256_v57, %v1184_v24  ;;  %v1465_v47 = vmul.f32 %v6809_v29, %v7091_v6  ;;  %v1569_v42 = vmul.f32 %v6742_v45, %v7059_v7  ;;  %v1633_v39 = vld [vmem:[#allocation2 + $0x111] sm:$0xff] }
 0x165   : > { %5285 = vmatmul.mubr.f32.gmra.mrb[10].mxu0 %v1703_v53  ;;  %v1257_v15 = vmul.f32 %v6737_v44, %v7053_v59  ;;  %v1496_v0 = vadd.f32 %v1464_v23, %v1391_v56  ;;  %v1672_v16 = vmul.f32 %v6825_v38, %v1632_v36  ;;  %v1673_v50 = vmul.f32 %v6825_v38, %v1633_v39 }
 0x166   : > { %804 = vst [vmem:[#allocation2 + $0x128] sm:$0xff] %v7093_v1  ;;  %805 = vst [vmem:[#allocation2 + $0x130] sm:$0xff] %v7095_v40  ;;  %v1081_v61 = vadd.f32 %v1049_v12, %v977_v58  ;;  %v1392_v46 = vadd.f32 %v1360_v62, %v1288_v37  ;;  %v874_v3 = vmul.f32 %v6713_v27, %v7049_v2 }
 0x167   : > { %v946_v4 = vmul.f32 %v6719_v30, %v7009_v33  ;;  %v1050_v55 = vmul.f32 %v6724_v32, %v1631_v51  ;;  %v1600_v31 = vadd.f32 %v1568_v48, %v1496_v0  ;;  %v1361_v9 = vmul.f32 %v6804_v28, %v1632_v36 }
 0x168   : > { %v1185_v35 = vadd.f32 %v1153_v63, %v1081_v61  ;;  %v1570_v43 = vmul.f32 %v6742_v45, %v7093_v1  ;;  %v1497_v22 = vadd.f32 %v1465_v47, %v1392_v46  ;;  %v1154_v5 = vmul.f32 %v6791_v21, %v7091_v6 }
 0x169   : > { %v978_v13 = vadd.f32 %v946_v4, %v874_v3  ;;  %v1258_v2 = vmul.f32 %v6737_v44, %v7059_v7  ;;  %v1704_v33 = vadd.f32 %v1672_v16, %v1600_v31  ;;  %v702_v51 = vmul.f32 %v6702_v18, %v663_v49  ;;  %v665_v4 = vld [vmem:[%s6588_s18 + $0xa0] sm:$0xff] }
 0x16a   : > { %v1289_v10 = vadd.f32 %v1257_v15, %v1185_v35  ;;  %v703_v48 = vmul.f32 %v6702_v18, %v664_v34  ;;  %v1601_v57 = vadd.f32 %v1569_v42, %v1497_v22  ;;  %v875_v26 = vmul.f32 %v6713_v27, %v1424_v14 }
 0x16b   : > { %v1082_v17 = vadd.f32 %v1050_v55, %v978_v13  ;;  %v947_v41 = vmul.f32 %v6719_v30, %v7053_v59  ;;  %5287 = vmatprep.mubr.f32.mxu0 %v1704_v33  ;;  %v741_v11 = vadd.f32 %v6708_v25, %v702_v51  ;;  %v1051_v19 = vmul.f32 %v6724_v32, %v1632_v36  ;;  %v666_v55 = vld [vmem:[%s6588_s18 + $0xa8] sm:$0xff] }
 0x16c   : > { %v1393_v8 = vadd.f32 %v1361_v9, %v1289_v10  ;;  %v742_v54 = vadd.f32 %v6708_v25, %v703_v48  ;;  %v1705_v60 = vadd.f32 %v1673_v50, %v1601_v57  ;;  %v1362_v52 = vmul.f32 %v6804_v28, %v1633_v39 }
 0x16d   : > { %v1426_v56 = vld [vmem:[#allocation2 + $0x127] sm:$0xff]  ;;  %v1186_v20 = vadd.f32 %v1154_v5, %v1082_v17  ;;  %v979_v12 = vadd.f32 %v947_v41, %v875_v26  ;;  %v7132_v14 = vld [vmem:[#allocation2 + $0x12f] sm:$0xff]  ;;  %v1571_v59 = vmul.f32 %v6742_v45, %v7095_v40  ;;  %v7136_v24 = vmax.f32 %v741_v11, 0.0 }
 0x16e   : > { %v1466_v53 = vmul.f32 %v6809_v29, %v1426_v56  ;;  %v1259_v62 = vmul.f32 %v6737_v44, %v7093_v1  ;;  %5288 = vmatmul.mubr.f32.gmra.mrb[12].mxu0 %v1705_v60  ;;  %v1634_v58 = vld [vmem:[#allocation2 + $0x129] sm:$0xff]  ;;  %v1467_v63 = vmul.f32 %v6809_v29, %v7132_v14  ;;  %v1635_v36 = vld [vmem:[#allocation2 + $0x131] sm:$0xff]  ;;  %v7142_v37 = vmax.f32 %v742_v54, 0.0 }
 0x16f   : > { %v1290_v23 = vadd.f32 %v1258_v2, %v1186_v20  ;;  %v1083_v47 = vadd.f32 %v1051_v19, %v979_v12  ;;  %v1674_v15 = vmul.f32 %v6825_v38, %v1634_v58  ;;  %v1675_v0 = vmul.f32 %v6825_v38, %v1635_v36  ;;  %806 = vst [vmem:[#allocation2 + $0x148] sm:$0xff] %v7136_v24 }
 0x170   : > { %v1498_v42 = vadd.f32 %v1466_v53, %v1393_v8  ;;  %v1155_v16 = vmul.f32 %v6791_v21, %v1426_v56  ;;  %807 = vst [vmem:[#allocation2 + $0x150] sm:$0xff] %v7142_v37  ;;  %v876_v61 = vmul.f32 %v6713_v27, %v7091_v6  ;;  %v948_v46 = vmul.f32 %v6719_v30, %v7059_v7 }
 0x171   : > { %v1394_v50 = vadd.f32 %v1362_v52, %v1290_v23  ;;  %v1052_v3 = vmul.f32 %v6724_v32, %v1633_v39  ;;  %v1363_v31 = vmul.f32 %v6804_v28, %v1634_v58  ;;  %v1572_v35 = vmul.f32 %v6742_v45, %v7136_v24 }
 0x172   : > { %v1602_v49 = vadd.f32 %v1570_v43, %v1498_v42  ;;  %v1187_v34 = vadd.f32 %v1155_v16, %v1083_v47  ;;  %v980_v22 = vadd.f32 %v948_v46, %v876_v61  ;;  %v1156_v13 = vmul.f32 %v6791_v21, %v7132_v14  ;;  %v668_v61 = vld [vmem:[%s6588_s18 + $0xb8] sm:$0xff] }
 0x173   : > { %v1499_v9 = vadd.f32 %v1467_v63, %v1394_v50  ;;  %v1260_v6 = vmul.f32 %v6737_v44, %v7095_v40  ;;  %v704_v39 = vmul.f32 %v6702_v18, %v665_v4  ;;  %v705_v43 = vmul.f32 %v6702_v18, %v666_v55  ;;  %v667_v50 = vld [vmem:[%s6588_s18 + $0xb0] sm:$0xff] }
 0x174   : > { %v1706_v7 = vadd.f32 %v1674_v15, %v1602_v49  ;;  %v1291_v5 = vadd.f32 %v1259_v62, %v1187_v34  ;;  %v1084_v33 = vadd.f32 %v1052_v3, %v980_v22  ;;  %v877_v10 = vmul.f32 %v6713_v27, %v1426_v56 }
 0x175   : > { %v1603_v2 = vadd.f32 %v1571_v59, %v1499_v9  ;;  %v949_v51 = vmul.f32 %v6719_v30, %v7093_v1  ;;  %v743_v57 = vadd.f32 %v6708_v25, %v704_v39  ;;  %v744_v17 = vadd.f32 %v6708_v25, %v705_v43  ;;  %v7231_v43 = vld [vmem:[%s9025_s3 + $0x2] ss:$0 sm:$0xff] }
 0x176   : > { %5290 = vmatprep.mubr.f32.mxu0 %v1706_v7  ;;  %v1395_v48 = vadd.f32 %v1363_v31, %v1291_v5  ;;  %v1053_v26 = vmul.f32 %v6724_v32, %v1634_v58  ;;  %v1428_v8 = vld [vmem:[#allocation2 + $0x147] sm:$0xff]  ;;  %v1188_v11 = vadd.f32 %v1156_v13, %v1084_v33  ;;  %v1364_v18 = vmul.f32 %v6804_v28, %v1635_v36  ;;  %v7224_v7 = vld [vmem:[#allocation9] ss:$0 sm:$0xff] }
 0x177   : > { %v1707_v41 = vadd.f32 %v1675_v0, %v1603_v2  ;;  %v981_v54 = vadd.f32 %v949_v51, %v877_v10  ;;  %v1468_v19 = vmul.f32 %v6809_v29, %v1428_v8  ;;  %v7173_v60 = vld [vmem:[#allocation2 + $0x14f] sm:$0xff]  ;;  %v7175_v56 = vmax.f32 %v743_v57, 0.0 }
 0x178   : > { %v7177_v1 = vmax.f32 %v744_v17, 0.0  ;;  %v1157_v20 = vmul.f32 %v6791_v21, %v1428_v8  ;;  %v1636_v25 = vld [vmem:[#allocation2 + $0x149] sm:$0xff]  ;;  %v1292_v52 = vadd.f32 %v1260_v6, %v1188_v11  ;;  %v1469_v12 = vmul.f32 %v6809_v29, %v7173_v60  ;;  %v7184_v59 = vld [vmem:[#allocation2 + $0x151] sm:$0xff]  ;;  %v7251_v11 = vld [vmem:[%s9025_s3 + $0x4] ss:$0 sm:$0xff] }
 0x179   : > { %5291 = vmatmul.mubr.f32.gmra.mrb[14].mxu0 %v1707_v41  ;;  %v1573_v53 = vmul.f32 %v6742_v45, %v7142_v37  ;;  %v1261_v62 = vmul.f32 %v6737_v44, %v7136_v24  ;;  %v1500_v58 = vadd.f32 %v1468_v19, %v1395_v48  ;;  %v1676_v23 = vmul.f32 %v6825_v38, %v1636_v25 }
 0x17a   : > { %v1677_v63 = vmul.f32 %v6825_v38, %v7184_v59  ;;  %808 = vst [vmem:[#allocation2 + $0x168] sm:$0xff] %v7175_v56  ;;  %809 = vst [vmem:[#allocation2 + $0x170] sm:$0xff] %v7177_v1  ;;  %v1085_v47 = vadd.f32 %v1053_v26, %v981_v54  ;;  %v1396_v42 = vadd.f32 %v1364_v18, %v1292_v52  ;;  %v7242_v26 = vld [vmem:[%s9025_s3 + $0x7] ss:$0 sm:$0xff] }
 0x17b   : > { %v878_v15 = vmul.f32 %v6713_v27, %v7132_v14  ;;  %v950_v0 = vmul.f32 %v6719_v30, %v7095_v40  ;;  %v1054_v16 = vmul.f32 %v6724_v32, %v1635_v36  ;;  %v1604_v46 = vadd.f32 %v1572_v35, %v1500_v58  ;;  %v7207_v32 = vld [vmem:[#allocation7] ss:$0 sm:$0xff] }
 0x17c   : > { %v1189_v3 = vadd.f32 %v1157_v20, %v1085_v47  ;;  %v1365_v4 = vmul.f32 %v6804_v28, %v1636_v25  ;;  %v1574_v55 = vmul.f32 %v6742_v45, %v7175_v56  ;;  %v1501_v49 = vadd.f32 %v1469_v12, %v1396_v42  ;;  %v7214_v45 = vld [vmem:[%s9025_s3] ss:$0 sm:$0xff] }
 0x17d   : > { %v982_v34 = vadd.f32 %v950_v0, %v878_v15  ;;  %v1158_v31 = vmul.f32 %v6791_v21, %v7173_v60  ;;  %v1262_v27 = vmul.f32 %v6737_v44, %v7142_v37  ;;  %v1708_v30 = vadd.f32 %v1676_v23, %v1604_v46  ;;  %v7220_v44 = vld [vmem:[%s9025_s3 + $0x1] ss:$0 sm:$0xff] }
 0x17e   : > { %v1293_v40 = vadd.f32 %v1261_v62, %v1189_v3  ;;  %v706_v14 = vmul.f32 %v7207_v32, %v667_v50  ;;  %v707_v36 = vmul.f32 %v7207_v32, %v668_v61  ;;  %v1605_v35 = vadd.f32 %v1573_v53, %v1501_v49  ;;  %v669_v0 = vld [vmem:[%s6588_s18 + $0xc0] sm:$0xff] }
 0x17f   : > { %v1086_v9 = vadd.f32 %v1054_v16, %v982_v34  ;;  %v879_v22 = vmul.f32 %v7214_v45, %v1428_v8  ;;  %v951_v13 = vmul.f32 %v7220_v44, %v7136_v24  ;;  %5293 = vmatprep.mubr.f32.mxu0 %v1708_v30  ;;  %v1055_v2 = vmul.f32 %v7231_v43, %v1636_v25  ;;  %v670_v16 = vld [vmem:[%s6588_s18 + $0xc8] sm:$0xff] }
 0x180   : > { %v1397_v6 = vadd.f32 %v1365_v4, %v1293_v40  ;;  %v745_v5 = vadd.f32 %v7224_v7, %v706_v14  ;;  %v746_v39 = vadd.f32 %v7224_v7, %v707_v36  ;;  %v1709_v33 = vadd.f32 %v1677_v63, %v1605_v35 }
 0x181   : > { %v1430_v10 = vld [vmem:[#allocation2 + $0x167] sm:$0xff]  ;;  %v1190_v51 = vadd.f32 %v1158_v31, %v1086_v9  ;;  %v1366_v24 = vmul.f32 %v6804_v28, %v7184_v59  ;;  %v983_v48 = vadd.f32 %v951_v13, %v879_v22  ;;  %v7237_v17 = vld [vmem:[#allocation2 + $0x16f] sm:$0xff]  ;;  %v1575_v41 = vmul.f32 %v7242_v26, %v7177_v1 }
 0x182   : > { %v1470_v57 = vmul.f32 %v6809_v29, %v1430_v10  ;;  %v7246_v8 = vmax.f32 %v745_v5, 0.0  ;;  %v1263_v18 = vmul.f32 %v7251_v11, %v7175_v56  ;;  %5294 = vmatmul.mubr.f32.gmra.mrb[16].mxu0 %v1709_v33  ;;  %v1638_v54 = vld [vmem:[#allocation2 + $0x169] sm:$0xff]  ;;  %v1471_v20 = vmul.f32 %v6809_v29, %v7237_v17  ;;  %v7257_v25 = vld [vmem:[#allocation2 + $0x171] sm:$0xff] }
 0x183   : > { %v1294_v19 = vadd.f32 %v1262_v27, %v1190_v51  ;;  %v7259_v52 = vmax.f32 %v746_v39, 0.0  ;;  %v1087_v12 = vadd.f32 %v1055_v2, %v983_v48  ;;  %v1678_v62 = vmul.f32 %v6825_v38, %v1638_v54 }
 0x184   : > { %v1502_v53 = vadd.f32 %v1470_v57, %v1397_v6  ;;  %v1679_v58 = vmul.f32 %v6825_v38, %v7257_v25  ;;  %810 = vst [vmem:[#allocation2 + $0x188] sm:$0xff] %v7246_v8  ;;  %v1159_v23 = vmul.f32 %v6791_v21, %v1430_v10  ;;  %v880_v47 = vmul.f32 %v7214_v45, %v7173_v60 }
 0x185   : > { %v1398_v63 = vadd.f32 %v1366_v24, %v1294_v19  ;;  %811 = vst [vmem:[#allocation2 + $0x190] sm:$0xff] %v7259_v52  ;;  %v952_v42 = vmul.f32 %v7220_v44, %v7142_v37  ;;  %v1056_v15 = vmul.f32 %v7231_v43, %v7184_v59  ;;  %v1367_v61 = vmul.f32 %v6804_v28, %v1638_v54  ;;  %v7321_v19 = vld [vmem:[%s9025_s3 + $0x8] ss:$0 sm:$0xff] }
 0x186   : > { %v1606_v50 = vadd.f32 %v1574_v55, %v1502_v53  ;;  %v1191_v38 = vadd.f32 %v1159_v23, %v1087_v12  ;;  %v1576_v46 = vmul.f32 %v7242_v26, %v7246_v8  ;;  %v1160_v60 = vmul.f32 %v6791_v21, %v7237_v17 }
 0x187   : > { %v1503_v3 = vadd.f32 %v1471_v20, %v1398_v63  ;;  %v984_v4 = vadd.f32 %v952_v42, %v880_v47  ;;  %v1264_v37 = vmul.f32 %v7251_v11, %v7177_v1  ;;  %v708_v59 = vmul.f32 %v7207_v32, %v669_v0  ;;  %v671_v47 = vld [vmem:[%s6588_s18 + $0xd0] sm:$0xff]  ;;  %v672_v42 = vld [vmem:[%s6588_s18 + $0xd8] sm:$0xff] }
 0x188   : > { %v1710_v49 = vadd.f32 %v1678_v62, %v1606_v50  ;;  %v1295_v34 = vadd.f32 %v1263_v18, %v1191_v38  ;;  %v709_v55 = vmul.f32 %v7207_v32, %v670_v16  ;;  %v881_v30 = vmul.f32 %v7214_v45, %v1430_v10  ;;  %v7302_v10 = vld [vmem:[%s9025_s3 + $0x3] ss:$0 sm:$0xff]  ;;  %v7339_v16 = vld [vmem:[%s9025_s3 + $0x5] ss:$0 sm:$0xff] }
 0x189   : > { %v1607_v31 = vadd.f32 %v1575_v41, %v1503_v3  ;;  %v1088_v27 = vadd.f32 %v1056_v15, %v984_v4  ;;  %v953_v40 = vmul.f32 %v7220_v44, %v7175_v56  ;;  %v747_v21 = vadd.f32 %v7224_v7, %v708_v59 }
 0x18a   : > { %5296 = vmatprep.mubr.f32.mxu0 %v1710_v49  ;;  %v1399_v14 = vadd.f32 %v1367_v61, %v1295_v34  ;;  %v748_v36 = vadd.f32 %v7224_v7, %v709_v55  ;;  %v1057_v35 = vmul.f32 %v7231_v43, %v1638_v54  ;;  %v1368_v6 = vmul.f32 %v6804_v28, %v7257_v25  ;;  %v7308_v28 = vld [vmem:[%s9025_s3 + $0x6] ss:$0 sm:$0xff] }
 0x18b   : > { %v1711_v9 = vadd.f32 %v1679_v58, %v1607_v31  ;;  %v1432_v22 = vld [vmem:[#allocation2 + $0x187] sm:$0xff]  ;;  %v1192_v13 = vadd.f32 %v1160_v60, %v1088_v27  ;;  %v985_v5 = vadd.f32 %v953_v40, %v881_v30  ;;  %v7295_v56 = vmax.f32 %v747_v21, 0.0 }
 0x18c   : > { %v1472_v39 = vmul.f32 %v6809_v29, %v1432_v22  ;;  %v7293_v2 = vld [vmem:[#allocation2 + $0x18f] sm:$0xff]  ;;  %v7297_v33 = vmax.f32 %v748_v36, 0.0  ;;  %v1161_v51 = vmul.f32 %v7302_v10, %v1432_v22  ;;  %v1577_v57 = vmul.f32 %v7242_v26, %v7259_v52 }
 0x18d   : > { %5297 = vmatmul.mubr.f32.gmra.mrb[18].mxu0 %v1711_v9  ;;  %v1640_v24 = vld [vmem:[#allocation2 + $0x189] sm:$0xff]  ;;  %v1296_v48 = vadd.f32 %v1264_v37, %v1192_v13  ;;  %v1473_v29 = vmul.f32 %v7308_v28, %v7293_v2  ;;  %v7314_v41 = vld [vmem:[#allocation2 + $0x191] sm:$0xff]  ;;  %v1265_v18 = vmul.f32 %v7251_v11, %v7246_v8  ;;  %812 = vst [vmem:[#allocation2 + $0x1a8] sm:$0xff] %v7295_v56 }
 0x18e   : > { %v1504_v54 = vadd.f32 %v1472_v39, %v1399_v14  ;;  %v1680_v20 = vmul.f32 %v7321_v19, %v1640_v24  ;;  %v1681_v12 = vmul.f32 %v7321_v19, %v7314_v41  ;;  %813 = vst [vmem:[#allocation2 + $0x1b0] sm:$0xff] %v7297_v33  ;;  %v1089_v53 = vadd.f32 %v1057_v35, %v985_v5 }
 0x18f   : > { %v1400_v62 = vadd.f32 %v1368_v6, %v1296_v48  ;;  %v882_v58 = vmul.f32 %v7214_v45, %v7237_v17  ;;  %v954_v23 = vmul.f32 %v7220_v44, %v7177_v1  ;;  %v1058_v63 = vmul.f32 %v7231_v43, %v7257_v25 }
 0x190   : > { %v1608_v15 = vadd.f32 %v1576_v46, %v1504_v54  ;;  %v1193_v0 = vadd.f32 %v1161_v51, %v1089_v53  ;;  %v1369_v50 = vmul.f32 %v7339_v16, %v1640_v24  ;;  %v1578_v17 = vmul.f32 %v7242_v26, %v7295_v56 }
 0x191   : > { %v1505_v38 = vadd.f32 %v1473_v29, %v1400_v62  ;;  %v986_v61 = vadd.f32 %v954_v23, %v882_v58  ;;  %v1162_v1 = vmul.f32 %v7302_v10, %v7293_v2  ;;  %v1266_v25 = vmul.f32 %v7251_v11, %v7259_v52  ;;  %v673_v23 = vld [vmem:[%s6588_s18 + $0xe0] sm:$0xff] }
 0x192   : > { %v1712_v46 = vadd.f32 %v1680_v20, %v1608_v15  ;;  %v1297_v3 = vadd.f32 %v1265_v18, %v1193_v0  ;;  %v710_v4 = vmul.f32 %v7207_v32, %v671_v47  ;;  %v711_v60 = vmul.f32 %v7207_v32, %v672_v42 }
 0x193   : > { %v1609_v37 = vadd.f32 %v1577_v57, %v1505_v38  ;;  %v1090_v49 = vadd.f32 %v1058_v63, %v986_v61  ;;  %v883_v34 = vmul.f32 %v7214_v45, %v1432_v22  ;;  %v955_v59 = vmul.f32 %v7220_v44, %v7246_v8  ;;  %v674_v63 = vld [vmem:[%s6588_s18 + $0xe8] sm:$0xff] }
 0x194   : > { %5299 = vmatprep.mubr.f32.mxu0 %v1712_v46  ;;  %v1401_v55 = vadd.f32 %v1369_v50, %v1297_v3  ;;  %v749_v31 = vadd.f32 %v7224_v7, %v710_v4  ;;  %v750_v27 = vadd.f32 %v7224_v7, %v711_v60  ;;  %v1059_v30 = vmul.f32 %v7231_v43, %v1640_v24  ;;  %v1434_v14 = vld [vmem:[#allocation2 + $0x1a7] sm:$0xff] }
 0x195   : > { %v1713_v40 = vadd.f32 %v1681_v12, %v1609_v37  ;;  %v1194_v21 = vadd.f32 %v1162_v1, %v1090_v49  ;;  %v1370_v36 = vmul.f32 %v7339_v16, %v7314_v41  ;;  %v987_v35 = vadd.f32 %v955_v59, %v883_v34  ;;  %v7359_v22 = vld [vmem:[#allocation2 + $0x1af] sm:$0xff] }
 0x196   : > { %v1474_v9 = vmul.f32 %v7308_v28, %v1434_v14  ;;  %v1579_v8 = vmul.f32 %v7242_v26, %v7297_v33  ;;  %v7363_v13 = vmax.f32 %v749_v31, 0.0  ;;  %v1267_v6 = vmul.f32 %v7251_v11, %v7295_v56  ;;  %v1642_v5 = vld [vmem:[#allocation2 + $0x1a9] sm:$0xff]  ;;  %v1643_v24 = vld [vmem:[#allocation2 + $0x1b1] sm:$0xff] }
 0x197   : > { %5300 = vmatmul.mubr.f32.gmra.mrb[20].mxu0 %v1713_v40  ;;  %v1298_v39 = vadd.f32 %v1266_v25, %v1194_v21  ;;  %v1475_v51 = vmul.f32 %v7308_v28, %v7359_v22  ;;  %v7369_v48 = vmax.f32 %v750_v27, 0.0  ;;  %v1091_v29 = vadd.f32 %v1059_v30, %v987_v35 }
 0x198   : > { %v1506_v57 = vadd.f32 %v1474_v9, %v1401_v55  ;;  %v1682_v18 = vmul.f32 %v7321_v19, %v1642_v5  ;;  %v1683_v54 = vmul.f32 %v7321_v19, %v1643_v24  ;;  %814 = vst [vmem:[#allocation2 + $0x1c8] sm:$0xff] %v7363_v13  ;;  %v1163_v20 = vmul.f32 %v7302_v10, %v1434_v14 }
 0x199   : > { %v1402_v12 = vadd.f32 %v1370_v36, %v1298_v39  ;;  %815 = vst [vmem:[#allocation2 + $0x1d0] sm:$0xff] %v7369_v48  ;;  %v884_v53 = vmul.f32 %v7214_v45, %v7293_v2  ;;  %v956_v62 = vmul.f32 %v7220_v44, %v7259_v52  ;;  %v1060_v58 = vmul.f32 %v7231_v43, %v7314_v41 }
 0x19a   : > { %v1610_v47 = vadd.f32 %v1578_v17, %v1506_v57  ;;  %v1195_v42 = vadd.f32 %v1163_v20, %v1091_v29  ;;  %v1371_v15 = vmul.f32 %v7339_v16, %v1642_v5  ;;  %v1580_v0 = vmul.f32 %v7242_v26, %v7363_v13 }
 0x19b   : > { %v1507_v50 = vadd.f32 %v1475_v51, %v1402_v12  ;;  %v988_v38 = vadd.f32 %v956_v62, %v884_v53  ;;  %v1164_v2 = vmul.f32 %v7302_v10, %v7359_v22  ;;  %v1268_v52 = vmul.f32 %v7251_v11, %v7297_v33  ;;  %v675_v53 = vld [vmem:[%s6588_s18 + $0xf0] sm:$0xff]  ;;  %v676_v62 = vld [vmem:[%s6588_s18 + $0xf8] sm:$0xff] }
 0x19c   : > { %v1714_v61 = vadd.f32 %v1682_v18, %v1610_v47  ;;  %v1299_v1 = vadd.f32 %v1267_v6, %v1195_v42  ;;  %v712_v41 = vmul.f32 %v7207_v32, %v673_v23  ;;  %v713_v17 = vmul.f32 %v7207_v32, %v674_v63 }
 0x19d   : > { %v1611_v25 = vadd.f32 %v1579_v8, %v1507_v50  ;;  %v1092_v46 = vadd.f32 %v1060_v58, %v988_v38  ;;  %v885_v3 = vmul.f32 %v7214_v45, %v1434_v14  ;;  %v957_v4 = vmul.f32 %v7220_v44, %v7295_v56 }
 0x19e   : > { %5302 = vmatprep.mubr.f32.mxu0 %v1714_v61  ;;  %v1403_v60 = vadd.f32 %v1371_v15, %v1299_v1  ;;  %v751_v37 = vadd.f32 %v7224_v7, %v712_v41  ;;  %v752_v49 = vadd.f32 %v7224_v7, %v713_v17  ;;  %v1061_v34 = vmul.f32 %v7231_v43, %v1642_v5 }
 0x19f   : > { %v1715_v59 = vadd.f32 %v1683_v54, %v1611_v25  ;;  %v1436_v55 = vld [vmem:[#allocation2 + $0x1c7] sm:$0xff]  ;;  %v1196_v31 = vadd.f32 %v1164_v2, %v1092_v46  ;;  %v1372_v27 = vmul.f32 %v7339_v16, %v1643_v24  ;;  %v989_v30 = vadd.f32 %v957_v4, %v885_v3 }
 0x1a0   : > { %v1476_v40 = vmul.f32 %v7308_v28, %v1436_v55  ;;  %v7401_v14 = vld [vmem:[#allocation2 + $0x1cf] sm:$0xff]  ;;  %v7403_v21 = vmax.f32 %v751_v37, 0.0  ;;  %v7405_v56 = vmax.f32 %v752_v49, 0.0  ;;  %v1165_v36 = vmul.f32 %v7302_v10, %v1436_v55 }
 0x1a1   : > { %5303 = vmatmul.mubr.f32.gmra.mrb[22].mxu0 %v1715_v59  ;;  %v1644_v35 = vld [vmem:[#allocation2 + $0x1c9] sm:$0xff]  ;;  %v1300_v9 = vadd.f32 %v1268_v52, %v1196_v31  ;;  %v1477_v8 = vmul.f32 %v7308_v28, %v7401_v14  ;;  %v1581_v6 = vmul.f32 %v7242_v26, %v7369_v48  ;;  %v1093_v51 = vadd.f32 %v1061_v34, %v989_v30  ;;  %v1645_v18 = vld [vmem:[#allocation2 + $0x1d1] sm:$0xff] }
 0x1a2   : > { %v1508_v5 = vadd.f32 %v1476_v40, %v1403_v60  ;;  %v1684_v39 = vmul.f32 %v7321_v19, %v1644_v35  ;;  %816 = vst [vmem:[#allocation2 + $0x1e8] sm:$0xff] %v7403_v21  ;;  %817 = vst [vmem:[#allocation2 + $0x1f0] sm:$0xff] %v7405_v56  ;;  %v1269_v29 = vmul.f32 %v7251_v11, %v7363_v13 }
 0x1a3   : > { %v1404_v57 = vadd.f32 %v1372_v27, %v1300_v9  ;;  %v886_v54 = vmul.f32 %v7214_v45, %v7359_v22  ;;  %v958_v20 = vmul.f32 %v7220_v44, %v7297_v33  ;;  %v1062_v12 = vmul.f32 %v7231_v43, %v1643_v24 }
 0x1a4   : > { %v1612_v58 = vadd.f32 %v1580_v0, %v1508_v5  ;;  %v1685_v23 = vmul.f32 %v7321_v19, %v1645_v18  ;;  %v1197_v63 = vadd.f32 %v1165_v36, %v1093_v51  ;;  %v1373_v47 = vmul.f32 %v7339_v16, %v1644_v35 }
 0x1a5   : > { %v1509_v42 = vadd.f32 %v1477_v8, %v1404_v57  ;;  %v990_v15 = vadd.f32 %v958_v20, %v886_v54  ;;  %v1166_v50 = vmul.f32 %v7302_v10, %v7401_v14  ;;  %v1270_v22 = vmul.f32 %v7251_v11, %v7369_v48 }
 0x1a6   : > { %v1716_v38 = vadd.f32 %v1684_v39, %v1612_v58  ;;  %v1301_v33 = vadd.f32 %v1269_v29, %v1197_v63  ;;  %v714_v24 = vmul.f32 %v7207_v32, %v675_v53  ;;  %v715_v2 = vmul.f32 %v7207_v32, %v676_v62 }
 0x1a7   : > { %v1613_v0 = vadd.f32 %v1581_v6, %v1509_v42  ;;  %v1094_v52 = vadd.f32 %v1062_v12, %v990_v15  ;;  %v887_v61 = vmul.f32 %v7214_v45, %v1436_v55  ;;  %v959_v1 = vmul.f32 %v7220_v44, %v7363_v13 }
 0x1a8   : > { %5305 = vmatprep.mubr.f32.mxu0 %v1716_v38  ;;  %v1405_v41 = vadd.f32 %v1373_v47, %v1301_v33  ;;  %v753_v17 = vadd.f32 %v7224_v7, %v714_v24  ;;  %v754_v25 = vadd.f32 %v7224_v7, %v715_v2  ;;  %v1063_v46 = vmul.f32 %v7231_v43, %v1644_v35 }
 0x1a9   : > { %v1717_v3 = vadd.f32 %v1685_v23, %v1613_v0  ;;  %v1438_v4 = vld [vmem:[#allocation2 + $0x1e7] sm:$0xff]  ;;  %v1198_v60 = vadd.f32 %v1166_v50, %v1094_v52  ;;  %v1374_v32 = vmul.f32 %v7339_v16, %v1645_v18  ;;  %v991_v37 = vadd.f32 %v959_v1, %v887_v61  ;;  %v1439_v13 = vld [vmem:[#allocation2 + $0x1ef] sm:$0xff] }
 0x1aa   : > { %v1478_v49 = vmul.f32 %v7308_v28, %v1438_v4  ;;  %v1582_v34 = vmul.f32 %v7242_v26, %v7403_v21  ;;  %v1583_v59 = vmul.f32 %v7242_v26, %v7405_v56  ;;  %v785_v55 = vmax.f32 %v753_v17, 0.0  ;;  %v1646_v7 = vld [vmem:[#allocation2 + $0x1e9] sm:$0xff]  ;;  %v1647_v57 = vld [vmem:[#allocation2 + $0x1f1] sm:$0xff] }
 0x1ab   : > { %5306 = vmatmul.mubr.f32.gmra.mrb[24].mxu0 %v1717_v3  ;;  %v1302_v31 = vadd.f32 %v1270_v22, %v1198_v60  ;;  %v1479_v27 = vmul.f32 %v7308_v28, %v1439_v13  ;;  %v7445_v30 = vmax.f32 %v754_v25, 0.0  ;;  %v1095_v40 = vadd.f32 %v1063_v46, %v991_v37 }
 0x1ac   : > { %v1510_v36 = vadd.f32 %v1478_v49, %v1405_v41  ;;  %v1686_v35 = vmul.f32 %v7321_v19, %v1646_v7  ;;  %818 = vst [vmem:[#allocation2 + $0x208] sm:$0xff] %v785_v55  ;;  %v1167_v9 = vmul.f32 %v7302_v10, %v1438_v4  ;;  %v1271_v8 = vmul.f32 %v7251_v11, %v7403_v21 }
 0x1ad   : > { %v1406_v6 = vadd.f32 %v1374_v32, %v1302_v31  ;;  %819 = vst [vmem:[#allocation2 + $0x210] sm:$0xff] %v7445_v30  ;;  %v888_v5 = vmul.f32 %v7214_v45, %v7401_v14  ;;  %v960_v39 = vmul.f32 %v7220_v44, %v7369_v48  ;;  %v1064_v51 = vmul.f32 %v7231_v43, %v1645_v18  ;;  %v1442_v32 = vld [vmem:[#allocation2 + $0x227] sm:$0xff] }
 0x1ae   : > { %v1614_v29 = vadd.f32 %v1582_v34, %v1510_v36  ;;  %v1199_v54 = vadd.f32 %v1167_v9, %v1095_v40  ;;  %v1375_v20 = vmul.f32 %v7339_v16, %v1646_v7  ;;  %v1687_v53 = vmul.f32 %v7321_v19, %v1647_v57  ;;  %v3015_v40 = vld [vmem:[#allocation13 + $0x18] sm:$0xff] }
 0x1af   : > { %v1511_v12 = vadd.f32 %v1479_v27, %v1406_v6  ;;  %v992_v62 = vadd.f32 %v960_v39, %v888_v5  ;;  %v1168_v58 = vmul.f32 %v7302_v10, %v1439_v13  ;;  %v889_v14 = vmul.f32 %v7214_v45, %v1438_v4  ;;  %v3014_v27 = vld [vmem:[#allocation13 + $0x10] sm:$0xff]  ;;  %v1650_v5 = vld [vmem:[#allocation2 + $0x229] sm:$0xff] }
 0x1b0   : > { %v1718_v23 = vadd.f32 %v1686_v35, %v1614_v29  ;;  %v1303_v63 = vadd.f32 %v1271_v8, %v1199_v54  ;;  %v961_v48 = vmul.f32 %v7220_v44, %v7403_v21  ;;  %v1272_v42 = vmul.f32 %v7251_v11, %v7405_v56 }
 0x1b1   : > { %v1615_v47 = vadd.f32 %v1583_v59, %v1511_v12  ;;  %v1096_v18 = vadd.f32 %v1064_v51, %v992_v62  ;;  %v1065_v15 = vmul.f32 %v7231_v43, %v1646_v7  ;;  %v1584_v22 = vmul.f32 %v7242_v26, %v785_v55  ;;  %v3013_v59 = vld [vmem:[#allocation13 + $0x8] sm:$0xff] }
 0x1b2   : > { %5308 = vmatprep.mubr.f32.mxu0 %v1718_v23  ;;  %v1407_v50 = vadd.f32 %v1375_v20, %v1303_v63  ;;  %v1376_v38 = vmul.f32 %v7339_v16, %v1647_v57  ;;  %v993_v33 = vadd.f32 %v961_v48, %v889_v14  ;;  %v1273_v52 = vmul.f32 %v7251_v11, %v785_v55  ;;  %v3017_v62 = vld [vmem:[#allocation13 + $0x28] sm:$0xff] }
 0x1b3   : > { %v1719_v24 = vadd.f32 %v1687_v53, %v1615_v47  ;;  %v1440_v2 = vld [vmem:[#allocation2 + $0x207] sm:$0xff]  ;;  %v1200_v0 = vadd.f32 %v1168_v58, %v1096_v18  ;;  %v890_v21 = vmul.f32 %v7214_v45, %v1439_v13  ;;  %v962_v46 = vmul.f32 %v7220_v44, %v7405_v56 }
 0x1b4   : > { %v1480_v61 = vmul.f32 %v7308_v28, %v1440_v2  ;;  %v1648_v1 = vld [vmem:[#allocation2 + $0x209] sm:$0xff]  ;;  %v1097_v17 = vadd.f32 %v1065_v15, %v993_v33  ;;  %v1169_v25 = vmul.f32 %v7302_v10, %v1440_v2  ;;  %v1585_v7 = vmul.f32 %v7242_v26, %v7445_v30  ;;  %v1649_v31 = vld [vmem:[#allocation2 + $0x211] sm:$0xff] }
 0x1b5   : > { %v1441_v41 = vld [vmem:[#allocation2 + $0x20f] sm:$0xff]  ;;  %5309 = vmatmul.mubr.f32.gmra.mrb[26].mxu0 %v1719_v24  ;;  %v1688_v3 = vmul.f32 %v7321_v19, %v1648_v1  ;;  %v1304_v4 = vadd.f32 %v1272_v42, %v1200_v0  ;;  %v1377_v45 = vmul.f32 %v7339_v16, %v1648_v1  ;;  %v994_v34 = vadd.f32 %v962_v46, %v890_v21  ;;  %v3012_v13 = vld [vmem:[#allocation13] sm:$0xff]  ;;  %v3023_v1 = vld [vmem:[#allocation13 + $0x58] sm:$0xff] }
 0x1b6   : > { %v1481_v60 = vmul.f32 %v7308_v28, %v1441_v41  ;;  %v1512_v37 = vadd.f32 %v1480_v61, %v1407_v50  ;;  %v1201_v49 = vadd.f32 %v1169_v25, %v1097_v17  ;;  %v1066_v44 = vmul.f32 %v7231_v43, %v1647_v57  ;;  %v7485_v43 = vld [vmem:[#allocation2 + $0x8] sm:$0xff]  ;;  %v1651_v42 = vld [vmem:[#allocation2 + $0x231] sm:$0xff]  ;;  %v3019_v50 = vld [vmem:[#allocation13 + $0x38] sm:$0xff] }
 0x1b7   : > { %v1408_v55 = vadd.f32 %v1376_v38, %v1304_v4  ;;  %v1170_v56 = vmul.f32 %v7302_v10, %v1441_v41  ;;  %v1689_v35 = vmul.f32 %v7321_v19, %v1649_v31  ;;  %v1482_v8 = vmul.f32 %v7308_v28, %v1442_v32  ;;  %v1443_v57 = vld [vmem:[#allocation2 + $0x22f] sm:$0xff]  ;;  %v3016_v53 = vld [vmem:[#allocation13 + $0x20] sm:$0xff] }
 0x1b8   : > { %v1616_v36 = vadd.f32 %v1584_v22, %v1512_v37  ;;  %v1305_v9 = vadd.f32 %v1273_v52, %v1201_v49  ;;  %v1098_v39 = vadd.f32 %v1066_v44, %v994_v34  ;;  %v1274_v51 = vmul.f32 %v7251_v11, %v7445_v30  ;;  %v3018_v15 = vld [vmem:[#allocation13 + $0x30] sm:$0xff]  ;;  %v3020_v2 = vld [vmem:[#allocation13 + $0x40] sm:$0xff]  ;;  %v3021_v0 = vld [vmem:[#allocation13 + $0x48] sm:$0xff] }
 0x1b9   : > { %v1513_v6 = vadd.f32 %v1481_v60, %v1408_v55  ;;  %v5589_v29 = vpack.c.bf16 %v3013_v59, %v3012_v13  ;;  %v1586_v10 = vmul.f32 %v7485_v43, %v7242_v26  ;;  %v5593_v12 = vpack.c.bf16 %v3015_v40, %v3014_v27  ;;  %v3022_v61 = vld [vmem:[#allocation13 + $0x50] sm:$0xff]  ;;  %v3024_v17 = vld [vmem:[#allocation13 + $0x60] sm:$0xff]  ;;  %v3025_v25 = vld [vmem:[#allocation13 + $0x68] sm:$0xff] }
 0x1ba   : > { %v1720_v54 = vadd.f32 %v1688_v3, %v1616_v36  ;;  %v1409_v20 = vadd.f32 %v1377_v45, %v1305_v9  ;;  %v1202_v23 = vadd.f32 %v1170_v56, %v1098_v39  ;;  %v1378_v63 = vmul.f32 %v7339_v16, %v1649_v31  ;;  %v3026_v46 = vld [vmem:[#allocation13 + $0x70] sm:$0xff]  ;;  %v3027_v3 = vld [vmem:[#allocation13 + $0x78] sm:$0xff]  ;;  %v3285_v60 = vld [vmem:[#allocation15] sm:$0xff] }
 0x1bb   : > { %v1617_v58 = vadd.f32 %v1585_v7, %v1513_v6  ;;  %5590 = vmatprep.subr.bf16.mxu1 %v5589_v29  ;;  %v1690_v11 = vmul.f32 %v7321_v19, %v1650_v5  ;;  %v1483_v47 = vmul.f32 %v7308_v28, %v1443_v57  ;;  %v5597_v26 = vpack.c.bf16 %v3017_v62, %v3016_v53  ;;  %v3286_v32 = vld [vmem:[#allocation15 + $0x8] sm:$0xff]  ;;  %v7496_v49 = vld [vmem:[#allocation12] ss:$0 sm:$0xff]  ;;  %v7501_v34 = vld [vmem:[%s9028_s6] ss:$0 sm:$0xff] }
 0x1bc   : > { %5311 = vmatprep.mubr.f32.mxu0 %v1720_v54  ;;  %v1514_v14 = vadd.f32 %v1482_v8, %v1409_v20  ;;  %5592 = vmatpush3.bf16.msra.mxu1 %v5589_v29  ;;  %v1306_v48 = vadd.f32 %v1274_v51, %v1202_v23  ;;  %v1691_v33 = vmul.f32 %v7321_v19, %v1651_v42  ;;  %v2108_v7 = vld [vmem:[#allocation3 + $0x7] sm:$0xff]  ;;  %v7508_v31 = vld [vmem:[%s9069_s20] ss:$0 sm:$0xff]  ;;  %v2109_v44 = vld [vmem:[#allocation3 + $0xf] sm:$0xff] }
 0x1bd   : > { %v1721_v30 = vadd.f32 %v1689_v35, %v1617_v58  ;;  %5594 = vmatprep.subr.bf16.mxu1 %v5593_v12  ;;  %v5601_v24 = vpack.c.bf16 %v3019_v50, %v3018_v15  ;;  %v5605_v21 = vpack.c.bf16 %v3021_v0, %v3020_v2  ;;  %v5609_v41 = vpack.c.bf16 %v3023_v1, %v3022_v61  ;;  %v7515_v40 = vld [vmem:[%s9069_s20 + $0x1] ss:$0 sm:$0xff]  ;;  %v2283_v8 = vld [vmem:[#allocation3 + $0x9] sm:$0xff]  ;;  %v7523_v6 = vld [vmem:[%s9069_s20 + $0x2] ss:$0 sm:$0xff] }
 0x1be   : > { %v1618_v18 = vadd.f32 %v1586_v10, %v1514_v14  ;;  %v1410_v22 = vadd.f32 %v1378_v63, %v1306_v48  ;;  %v5613_v19 = vpack.c.bf16 %v3025_v25, %v3024_v17  ;;  %v5617_v4 = vpack.c.bf16 %v3027_v3, %v3026_v46  ;;  %v2284_v29 = vld [vmem:[#allocation3 + $0x11] sm:$0xff]  ;;  %v7533_v53 = vld [vmem:[%s9069_s20 + $0x4] ss:$0 sm:$0xff]  ;;  %v7540_v42 = vld [vmem:[%s9069_s20 + $0x7] ss:$0 sm:$0xff] }
 0x1bf   : > { %5312 = vmatmul.mubr.f32.gmra.mrb[28].mxu0 %v1721_v30  ;;  %v7493_v37 = vpack.c.bf16 %v3286_v32, %v3285_v60  ;;  %v2147_v35 = vmul.f32 %v7508_v31, %v2108_v7  ;;  %v2219_v9 = vmul.f32 %v7485_v43, %v7515_v40  ;;  %v2148_v5 = vmul.f32 %v7508_v31, %v2109_v44  ;;  %v3287_v63 = vld [vmem:[#allocation15 + $0x10] sm:$0xff]  ;;  %v3288_v14 = vld [vmem:[#allocation15 + $0x18] sm:$0xff]  ;;  %v3290_v48 = vld [vmem:[#allocation15 + $0x28] sm:$0xff] }
 0x1c0   : > { %v1722_v38 = vadd.f32 %v1690_v11, %v1618_v18  ;;  %5596 = vmatpush3.bf16.msra.mxu1 %v5593_v12  ;;  %v1515_v16 = vadd.f32 %v1483_v47, %v1410_v22  ;;  %v2323_v43 = vmul.f32 %v7523_v6, %v2283_v8  ;;  %v2324_v58 = vmul.f32 %v7523_v6, %v2284_v29  ;;  %v3289_v11 = vld [vmem:[#allocation15 + $0x20] sm:$0xff]  ;;  %v3291_v47 = vld [vmem:[#allocation15 + $0x30] sm:$0xff]  ;;  %v7545_v50 = vld [vmem:[%s9069_s20 + $0x3] ss:$0 sm:$0xff] }
 0x1c1   : > { %5598 = vmatprep.subr.bf16.mxu1 %v5597_v26  ;;  %v2251_v12 = vadd.f32 %v2219_v9, %v2147_v35  ;;  %v2252_v62 = vadd.f32 %v2219_v9, %v2148_v5  ;;  %v7556_v0 = vpack.c.bf16 %v3290_v48, %v3289_v11  ;;  %v7582_v35 = vld [vmem:[%s9069_s20 + $0x6] ss:$0 sm:$0xff] }
 0x1c2   : > { %5314 = vmatprep.mubr.f32.mxu0 %v1722_v38  ;;  %v1619_v52 = vadd.f32 %v1586_v10, %v1515_v16  ;;  %v7547_v38 = vpack.c.bf16 %v3288_v14, %v3287_v63  ;;  %v7552_v16 = vld [vmem:[%s9069_s20 + $0x5] ss:$0 sm:$0xff] }
 0x1c3   : > { %v2355_v15 = vadd.f32 %v2323_v43, %v2251_v12  ;;  %v2356_v22 = vadd.f32 %v2324_v58, %v2252_v62 }
 0x1c4   : > { %5600 = vmatpush3.bf16.msra.mxu1 %v5597_v26  ;;  %v1723_v28 = vadd.f32 %v1691_v33, %v1619_v52  ;;  %v3292_v26 = vld [vmem:[#allocation15 + $0x38] sm:$0xff] }
 0x1c5   : > { %5602 = vmatprep.subr.bf16.mxu1 %v5601_v24  ;;  %v7558_v52 = vpack.c.bf16 %v3292_v26, %v3291_v47 }
 0x1c6   : > { %5315 = vmatmul.mubr.f32.gmra.mrb[30].mxu0 %v1723_v28 }
 0x1c8   : > { %5604 = vmatpush3.bf16.msra.mxu1 %v5601_v24 }
 0x1c9   : > { %5606 = vmatprep.subr.bf16.mxu1 %v5605_v21 }
 0x1cc   : > { %5608 = vmatpush3.bf16.msra.mxu1 %v5605_v21 }
 0x1cd   : > { %5610 = vmatprep.subr.bf16.mxu1 %v5609_v41 }
 0x1d0   : > { %5612 = vmatpush3.bf16.msra.mxu1 %v5609_v41 }
 0x1d1   : > { %5614 = vmatprep.subr.bf16.mxu1 %v5613_v19 }
 0x1d4   : > { %5616 = vmatpush3.bf16.msra.mxu1 %v5613_v19 }
 0x1d5   : > { %5618 = vmatprep.subr.bf16.mxu1 %v5617_v4 }
 0x1d8   : > { %5620 = vmatpush3.bf16.msra.mxu1 %v5617_v4 }
 0x1d9   : > { %5622 = vmatprep.subr.bf16.mxu1 %v7493_v37 }
 0x20b   : > { %v5271_v45 = vpop.f32.mrb[0].mxu0 }
 0x20c   : > { %v1973_v13 = vmul.f32 %v5271_v45, %v7496_v49  ;;  %v1806_v59 = vpop.f32.mrb[1].mxu0 }
 0x20d   : > { %v1972_v55 = vmul.f32 %v7496_v49, %v1806_v59 }
 0x20e   : > { %v2012_v56 = vadd.f32 %v7501_v34, %v1973_v13 }
 0x20f   : > { %v2011_v27 = vadd.f32 %v7501_v34, %v1972_v55 }
 0x210   : > { %v2044_v36 = vmax.f32 %v2012_v56, 0.0 }
 0x211   : > { %v2043_v39 = vmax.f32 %v2011_v27, 0.0  ;;  %v5274_v51 = vpop.f32.mrb[2].mxu0 }
 0x212   : > { %2077 = vst [vmem:[#allocation3 + $0x30] sm:$0xff] %v2044_v36  ;;  %v1975_v54 = vmul.f32 %v5274_v51, %v7496_v49  ;;  %v1816_v20 = vpop.f32.mrb[3].mxu0  ;;  %v2532_v33 = vmul.f32 %v7533_v53, %v2044_v36  ;;  %v2222_v2 = vmul.f32 %v7515_v40, %v2044_v36 }
 0x213   : > { %2076 = vst [vmem:[#allocation3 + $0x28] sm:$0xff] %v2043_v39  ;;  %v1974_v10 = vmul.f32 %v7496_v49, %v1816_v20  ;;  %v2531_v61 = vmul.f32 %v7533_v53, %v2043_v39  ;;  %v2221_v17 = vmul.f32 %v7515_v40, %v2043_v39 }
 0x214   : > { %v2014_v57 = vadd.f32 %v7501_v34, %v1975_v54  ;;  %v7591_v54 = vld [vmem:[%s9069_s20 + $0x8] ss:$0 sm:$0xff] }
 0x215   : > { %v2013_v23 = vadd.f32 %v7501_v34, %v1974_v10 }
 0x216   : > { %v2046_v30 = vmax.f32 %v2014_v57, 0.0 }
 0x217   : > { %v2045_v18 = vmax.f32 %v2013_v23, 0.0 }
 0x218   : > { %2079 = vst [vmem:[#allocation3 + $0x50] sm:$0xff] %v2046_v30  ;;  %v2845_v41 = vmul.f32 %v7540_v42, %v2046_v30  ;;  %v7564_v25 = vmul.f32 %v7533_v53, %v2046_v30  ;;  %v7570_v32 = vmul.f32 %v7515_v40, %v2046_v30 }
 0x219   : > { %2078 = vst [vmem:[#allocation3 + $0x48] sm:$0xff] %v2045_v18  ;;  %v2596_v24 = vld [vmem:[#allocation3 + $0x31] sm:$0xff]  ;;  %v5277_v28 = vpop.f32.mrb[4].mxu0  ;;  %v2844_v12 = vmul.f32 %v7540_v42, %v2045_v18  ;;  %v2533_v63 = vmul.f32 %v7533_v53, %v2045_v18 }
 0x21a   : > { %v2387_v21 = vld [vmem:[#allocation3 + $0x27] sm:$0xff]  ;;  %v2388_v1 = vld [vmem:[#allocation3 + $0x2f] sm:$0xff]  ;;  %v1977_v19 = vmul.f32 %v5277_v28, %v7496_v49  ;;  %v1826_v46 = vpop.f32.mrb[5].mxu0  ;;  %v2636_v13 = vmul.f32 %v7552_v16, %v2596_v24  ;;  %v2326_v27 = vmul.f32 %v7523_v6, %v2596_v24 }
 0x21b   : > { %v2427_v3 = vmul.f32 %v7545_v50, %v2387_v21  ;;  %v2595_v4 = vld [vmem:[#allocation3 + $0x29] sm:$0xff]  ;;  %v2428_v60 = vmul.f32 %v7545_v50, %v2388_v1  ;;  %v1976_v45 = vmul.f32 %v7496_v49, %v1826_v46  ;;  %v2149_v59 = vmul.f32 %v7508_v31, %v2387_v21 }
 0x21c   : > { %v2150_v55 = vmul.f32 %v7508_v31, %v2388_v1  ;;  %v2016_v7 = vadd.f32 %v7501_v34, %v1977_v19  ;;  %v2325_v8 = vmul.f32 %v7523_v6, %v2595_v4  ;;  %v2635_v29 = vmul.f32 %v7552_v16, %v2595_v4 }
 0x21d   : > { %v2459_v44 = vadd.f32 %v2427_v3, %v2355_v15  ;;  %v2460_v56 = vadd.f32 %v2428_v60, %v2356_v22  ;;  %v2015_v36 = vadd.f32 %v7501_v34, %v1976_v45  ;;  %v2253_v9 = vadd.f32 %v2221_v17, %v2149_v59 }
 0x21e   : > { %v2254_v5 = vadd.f32 %v2222_v2, %v2150_v55  ;;  %v7585_v39 = vmax.f32 %v2016_v7, 0.0  ;;  %v2223_v22 = vmul.f32 %v7515_v40, %v2045_v18 }
 0x21f   : > { %v2563_v51 = vadd.f32 %v2531_v61, %v2459_v44  ;;  %v2564_v20 = vadd.f32 %v2532_v33, %v2460_v56  ;;  %v7593_v10 = vld [vmem:[#allocation3 + $0x51] sm:$0xff]  ;;  %v7595_v43 = vmax.f32 %v2015_v36, 0.0  ;;  %v2357_v23 = vadd.f32 %v2325_v8, %v2253_v9 }
 0x220   : > { %v2700_v57 = vld [vmem:[#allocation3 + $0x47] sm:$0xff]  ;;  %v2701_v58 = vld [vmem:[#allocation3 + $0x4f] sm:$0xff]  ;;  %2081 = vst [vmem:[#allocation3 + $0x70] sm:$0xff] %v7585_v39  ;;  %v2358_v48 = vadd.f32 %v2326_v27, %v2254_v5  ;;  %v2949_v26 = vmul.f32 %v7591_v54, %v7593_v10  ;;  %v2638_v27 = vmul.f32 %v7552_v16, %v7593_v10 }
 0x221   : > { %v2908_v62 = vld [vmem:[#allocation3 + $0x49] sm:$0xff]  ;;  %v2667_v14 = vadd.f32 %v2635_v29, %v2563_v51  ;;  %v2740_v11 = vmul.f32 %v7582_v35, %v2700_v57  ;;  %v2668_v30 = vadd.f32 %v2636_v13, %v2564_v20  ;;  %2080 = vst [vmem:[#allocation3 + $0x68] sm:$0xff] %v7595_v43  ;;  %v2741_v47 = vmul.f32 %v7582_v35, %v2701_v58 }
 0x222   : > { %v2429_v15 = vmul.f32 %v7545_v50, %v2700_v57  ;;  %v2948_v2 = vmul.f32 %v7591_v54, %v2908_v62  ;;  %v2637_v28 = vmul.f32 %v7552_v16, %v2908_v62  ;;  %v2430_v21 = vmul.f32 %v7545_v50, %v2701_v58 }
 0x223   : > { %v5280_v33 = vpop.f32.mrb[6].mxu0  ;;  %v2772_v24 = vadd.f32 %v2740_v11, %v2667_v14  ;;  %v2773_v17 = vadd.f32 %v2741_v47, %v2668_v30  ;;  %v2151_v46 = vmul.f32 %v7508_v31, %v2700_v57  ;;  %v2327_v18 = vmul.f32 %v7523_v6, %v2908_v62 }
 0x224   : > { %v1979_v61 = vmul.f32 %v5280_v33, %v7496_v49  ;;  %v1836_v1 = vpop.f32.mrb[7].mxu0  ;;  %v2461_v19 = vadd.f32 %v2429_v15, %v2357_v23  ;;  %v2462_v60 = vadd.f32 %v2430_v21, %v2358_v48  ;;  %v2846_v20 = vmul.f32 %v7540_v42, %v7595_v43 }
 0x225   : > { %v1978_v3 = vmul.f32 %v7496_v49, %v1836_v1  ;;  %v2876_v4 = vadd.f32 %v2844_v12, %v2772_v24  ;;  %v2877_v13 = vadd.f32 %v2845_v41, %v2773_v17  ;;  %v2255_v55 = vadd.f32 %v2223_v22, %v2151_v46 }
 0x226   : > { %v2018_v45 = vadd.f32 %v7501_v34, %v1979_v61  ;;  %v2565_v59 = vadd.f32 %v2533_v63, %v2461_v19  ;;  %v2566_v56 = vadd.f32 %v7564_v25, %v2462_v60  ;;  %v2152_v25 = vmul.f32 %v7508_v31, %v2701_v58 }
 0x227   : > { %v2017_v7 = vadd.f32 %v7501_v34, %v1978_v3  ;;  %v2980_v44 = vadd.f32 %v2948_v2, %v2876_v4  ;;  %v2981_v9 = vadd.f32 %v2949_v26, %v2877_v13  ;;  %v7621_v5 = vld [vmem:[#allocation3 + $0x71] sm:$0xff]  ;;  %v2359_v51 = vadd.f32 %v2327_v18, %v2255_v55 }
 0x228   : > { %v7619_v36 = vmax.f32 %v2018_v45, 0.0  ;;  %v2669_v8 = vadd.f32 %v2637_v28, %v2565_v59  ;;  %v2702_v41 = vld [vmem:[#allocation3 + $0x67] sm:$0xff]  ;;  %v2670_v57 = vadd.f32 %v2638_v27, %v2566_v56  ;;  %v2703_v12 = vld [vmem:[#allocation3 + $0x6f] sm:$0xff]  ;;  %v2847_v14 = vmul.f32 %v7540_v42, %v7585_v39 }
 0x229   : > { %v7623_v29 = vmax.f32 %v2017_v7, 0.0  ;;  %5349 = vmatprep.mubr.f32.mxu1 %v2980_v44  ;;  %v2742_v62 = vmul.f32 %v7582_v35, %v2702_v41  ;;  %v2910_v23 = vld [vmem:[#allocation3 + $0x69] sm:$0xff]  ;;  %v2743_v63 = vmul.f32 %v7582_v35, %v2703_v12  ;;  %v2431_v11 = vmul.f32 %v7545_v50, %v2702_v41 }
 0x22a   : > { %2083 = vst [vmem:[#allocation3 + $0x90] sm:$0xff] %v7619_v36  ;;  %5350 = vmatmul.mubr.f32.vlgmr.msra.gmra.mrb[0].mxu1 %v2981_v9  ;;  %v2951_v58 = vmul.f32 %v7591_v54, %v7621_v5  ;;  %v2535_v30 = vmul.f32 %v7533_v53, %v7595_v43  ;;  %v2256_v48 = vadd.f32 %v7570_v32, %v2152_v25 }
 0x22b   : > { %2082 = vst [vmem:[#allocation3 + $0x88] sm:$0xff] %v7623_v29  ;;  %5624 = vmatpush3.bf16.msra.mxu1 %v7493_v37  ;;  %v2328_v47 = vmul.f32 %v7523_v6, %v7593_v10  ;;  %v2774_v26 = vadd.f32 %v2742_v62, %v2669_v8  ;;  %v2775_v15 = vadd.f32 %v2743_v63, %v2670_v57 }
 0x22c   : > { %v2463_v22 = vadd.f32 %v2431_v11, %v2359_v51  ;;  %5626 = vmatprep.subr.bf16.mxu1 %v7547_v38  ;;  %v2432_v33 = vmul.f32 %v7545_v50, %v2703_v12  ;;  %v2950_v37 = vmul.f32 %v7591_v54, %v2910_v23  ;;  %v2639_v2 = vmul.f32 %v7552_v16, %v2910_v23 }
 0x22d   : > { %v5283_v24 = vpop.f32.mrb[8].mxu0  ;;  %v2360_v28 = vadd.f32 %v2328_v47, %v2256_v48  ;;  %v2536_v21 = vmul.f32 %v7533_v53, %v7585_v39  ;;  %v2878_v10 = vadd.f32 %v2846_v20, %v2774_v26  ;;  %v2879_v1 = vadd.f32 %v2847_v14, %v2775_v15 }
 0x22e   : > { %v1981_v32 = vmul.f32 %v5283_v24, %v7496_v49  ;;  %v1846_v61 = vpop.f32.mrb[9].mxu0  ;;  %v2567_v17 = vadd.f32 %v2535_v30, %v2463_v22  ;;  %v2153_v3 = vmul.f32 %v7508_v31, %v2702_v41  ;;  %v2225_v4 = vmul.f32 %v7515_v40, %v7595_v43 }
 0x22f   : > { %v1980_v19 = vmul.f32 %v7496_v49, %v1846_v61  ;;  %v2464_v46 = vadd.f32 %v2432_v33, %v2360_v28  ;;  %5628 = vmatpush3.bf16.msra.mxu1 %v7547_v38  ;;  %v2982_v18 = vadd.f32 %v2950_v37, %v2878_v10  ;;  %v2983_v45 = vadd.f32 %v2951_v58, %v2879_v1 }
 0x230   : > { %v2020_v60 = vadd.f32 %v7501_v34, %v1981_v32  ;;  %v2640_v13 = vmul.f32 %v7552_v16, %v7621_v5  ;;  %5630 = vmatprep.subr.bf16.mxu1 %v7556_v0  ;;  %v2671_v55 = vadd.f32 %v2639_v2, %v2567_v17  ;;  %v2257_v44 = vadd.f32 %v2225_v4, %v2153_v3 }
 0x231   : > { %v2019_v59 = vadd.f32 %v7501_v34, %v1980_v19  ;;  %v2568_v7 = vadd.f32 %v2536_v21, %v2464_v46  ;;  %5352 = vmatprep.mubr.f32.mxu1 %v2982_v18  ;;  %v2848_v43 = vmul.f32 %v7540_v42, %v7623_v29  ;;  %v7664_v9 = vld [vmem:[#allocation3 + $0x91] sm:$0xff]  ;;  %v2329_v8 = vmul.f32 %v7523_v6, %v2910_v23 }
 0x232   : > { %v7660_v38 = vmax.f32 %v2020_v60, 0.0  ;;  %v2704_v56 = vld [vmem:[#allocation3 + $0x87] sm:$0xff]  ;;  %v2705_v27 = vld [vmem:[#allocation3 + $0x8f] sm:$0xff]  ;;  %5353 = vmatmul.mubr.f32.gmra.mrb[2].mxu1 %v2983_v45  ;;  %v2154_v25 = vmul.f32 %v7508_v31, %v2703_v12  ;;  %v2849_v63 = vmul.f32 %v7540_v42, %v7619_v36  ;;  %v2953_v58 = vmul.f32 %v7591_v54, %v7664_v9 }
 0x233   : > { %v7667_v51 = vmax.f32 %v2019_v59, 0.0  ;;  %v2744_v41 = vmul.f32 %v7582_v35, %v2704_v56  ;;  %v2912_v20 = vld [vmem:[#allocation3 + $0x89] sm:$0xff]  ;;  %v2672_v57 = vadd.f32 %v2640_v13, %v2568_v7  ;;  %v2745_v62 = vmul.f32 %v7582_v35, %v2705_v27  ;;  %5632 = vmatpush3.bf16.msra.mxu1 %v7556_v0 }
 0x234   : > { %2085 = vst [vmem:[#allocation3 + $0xb0] sm:$0xff] %v7660_v38  ;;  %v2361_v14 = vadd.f32 %v2329_v8, %v2257_v44  ;;  %v2433_v11 = vmul.f32 %v7545_v50, %v2704_v56  ;;  %v2537_v12 = vmul.f32 %v7533_v53, %v7623_v29  ;;  %v2226_v30 = vmul.f32 %v7515_v40, %v7585_v39 }
 0x235   : > { %2084 = vst [vmem:[#allocation3 + $0xa8] sm:$0xff] %v7667_v51  ;;  %v2776_v23 = vadd.f32 %v2744_v41, %v2671_v55  ;;  %5634 = vmatprep.subr.bf16.mxu1 %v7558_v52  ;;  %v2952_v48 = vmul.f32 %v7591_v54, %v2912_v20  ;;  %v2777_v47 = vadd.f32 %v2745_v62, %v2672_v57 }
 0x236   : > { %v2465_v26 = vadd.f32 %v2433_v11, %v2361_v14  ;;  %v2641_v0 = vmul.f32 %v7552_v16, %v2912_v20  ;;  %v2258_v33 = vadd.f32 %v2226_v30, %v2154_v25  ;;  %v2330_v24 = vmul.f32 %v7523_v6, %v7621_v5 }
 0x237   : > { %v2880_v22 = vadd.f32 %v2848_v43, %v2776_v23  ;;  %v2434_v37 = vmul.f32 %v7545_v50, %v2705_v27  ;;  %v2881_v39 = vadd.f32 %v2849_v63, %v2777_v47  ;;  %v2155_v32 = vmul.f32 %v7508_v31, %v2704_v56  ;;  %5636 = vmatpush3.bf16.msra.mxu1 %v7558_v52 }
 0x238   : > { %v5286_v15 = vpop.f32.mrb[10].mxu0  ;;  %v2569_v21 = vadd.f32 %v2537_v12, %v2465_v26  ;;  %v2362_v1 = vadd.f32 %v2330_v24, %v2258_v33  ;;  %v2227_v17 = vmul.f32 %v7515_v40, %v7623_v29  ;;  %v2850_v46 = vmul.f32 %v7540_v42, %v7667_v51 }
 0x239   : > { %v1983_v2 = vmul.f32 %v5286_v15, %v7496_v49  ;;  %v1856_v28 = vpop.f32.mrb[11].mxu0  ;;  %v2984_v10 = vadd.f32 %v2952_v48, %v2880_v22  ;;  %v2985_v19 = vadd.f32 %v2953_v58, %v2881_v39  ;;  %v2538_v3 = vmul.f32 %v7533_v53, %v7619_v36 }
 0x23a   : > { %v1982_v61 = vmul.f32 %v7496_v49, %v1856_v28  ;;  %v2673_v52 = vadd.f32 %v2641_v0, %v2569_v21  ;;  %v2466_v60 = vadd.f32 %v2434_v37, %v2362_v1  ;;  %v2259_v18 = vadd.f32 %v2227_v17, %v2155_v32 }
 0x23b   : > { %v2022_v5 = vadd.f32 %v7501_v34, %v1983_v2  ;;  %5355 = vmatprep.mubr.f32.mxu1 %v2984_v10  ;;  %v2642_v29 = vmul.f32 %v7552_v16, %v7664_v9  ;;  %v2331_v55 = vmul.f32 %v7523_v6, %v2912_v20  ;;  %v2156_v7 = vmul.f32 %v7508_v31, %v2705_v27  ;;  %v7711_v8 = vld [vmem:[#allocation3 + $0xb1] sm:$0xff] }
 0x23c   : > { %v2021_v4 = vadd.f32 %v7501_v34, %v1982_v61  ;;  %5356 = vmatmul.mubr.f32.gmra.mrb[4].mxu1 %v2985_v19  ;;  %v2706_v13 = vld [vmem:[#allocation3 + $0xa7] sm:$0xff]  ;;  %v2707_v59 = vld [vmem:[#allocation3 + $0xaf] sm:$0xff]  ;;  %v2570_v43 = vadd.f32 %v2538_v3, %v2466_v60  ;;  %v2228_v41 = vmul.f32 %v7515_v40, %v7619_v36  ;;  %v2851_v25 = vmul.f32 %v7540_v42, %v7660_v38 }
 0x23d   : > { %v7702_v45 = vmax.f32 %v2022_v5, 0.0  ;;  %v2746_v56 = vmul.f32 %v7582_v35, %v2706_v13  ;;  %v2914_v57 = vld [vmem:[#allocation3 + $0xa9] sm:$0xff]  ;;  %v2363_v62 = vadd.f32 %v2331_v55, %v2259_v18  ;;  %v2435_v20 = vmul.f32 %v7545_v50, %v2706_v13 }
 0x23e   : > { %v7708_v44 = vmax.f32 %v2021_v4, 0.0  ;;  %v2539_v27 = vmul.f32 %v7533_v53, %v7667_v51  ;;  %v2674_v14 = vadd.f32 %v2642_v29, %v2570_v43  ;;  %v2747_v11 = vmul.f32 %v7582_v35, %v2707_v59 }
 0x23f   : > { %2087 = vst [vmem:[#allocation3 + $0xd0] sm:$0xff] %v7702_v45  ;;  %v2778_v63 = vadd.f32 %v2746_v56, %v2673_v52  ;;  %v2260_v23 = vadd.f32 %v2228_v41, %v2156_v7  ;;  %v2955_v36 = vmul.f32 %v7591_v54, %v7711_v8  ;;  %v2467_v58 = vadd.f32 %v2435_v20, %v2363_v62 }
 0x240   : > { %2086 = vst [vmem:[#allocation3 + $0xc8] sm:$0xff] %v7708_v44  ;;  %v2332_v12 = vmul.f32 %v7523_v6, %v7664_v9  ;;  %v2436_v30 = vmul.f32 %v7545_v50, %v2707_v59  ;;  %v2954_v26 = vmul.f32 %v7591_v54, %v2914_v57  ;;  %v2779_v0 = vadd.f32 %v2747_v11, %v2674_v14 }
 0x241   : > { %v5289_v48 = vpop.f32.mrb[12].mxu0  ;;  %v2882_v47 = vadd.f32 %v2850_v46, %v2778_v63  ;;  %v2643_v15 = vmul.f32 %v7552_v16, %v2914_v57  ;;  %v2571_v24 = vadd.f32 %v2539_v27, %v2467_v58  ;;  %v2157_v2 = vmul.f32 %v7508_v31, %v2706_v13 }
 0x242   : > { %v1985_v22 = vmul.f32 %v5289_v48, %v7496_v49  ;;  %v1866_v33 = vpop.f32.mrb[13].mxu0  ;;  %v2364_v37 = vadd.f32 %v2332_v12, %v2260_v23  ;;  %v2883_v9 = vadd.f32 %v2851_v25, %v2779_v0  ;;  %v2229_v21 = vmul.f32 %v7515_v40, %v7667_v51 }
 0x243   : > { %v1984_v28 = vmul.f32 %v7496_v49, %v1866_v33  ;;  %v2986_v39 = vadd.f32 %v2954_v26, %v2882_v47  ;;  %v2852_v61 = vmul.f32 %v7540_v42, %v7708_v44  ;;  %v2540_v1 = vmul.f32 %v7533_v53, %v7660_v38 }
 0x244   : > { %v2024_v32 = vadd.f32 %v7501_v34, %v1985_v22  ;;  %v2468_v10 = vadd.f32 %v2436_v30, %v2364_v37  ;;  %v2987_v5 = vadd.f32 %v2955_v36, %v2883_v9  ;;  %v2675_v19 = vadd.f32 %v2643_v15, %v2571_v24 }
 0x245   : > { %v2023_v17 = vadd.f32 %v7501_v34, %v1984_v28  ;;  %5358 = vmatprep.mubr.f32.mxu1 %v2986_v39  ;;  %v2261_v46 = vadd.f32 %v2229_v21, %v2157_v2  ;;  %v2644_v51 = vmul.f32 %v7552_v16, %v7711_v8  ;;  %v2333_v13 = vmul.f32 %v7523_v6, %v2914_v57 }
 0x246   : > { %v7741_v3 = vmax.f32 %v2024_v32, 0.0  ;;  %v2572_v52 = vadd.f32 %v2540_v1, %v2468_v10  ;;  %v7745_v18 = vld [vmem:[#allocation3 + $0xd1] sm:$0xff]  ;;  %5359 = vmatmul.mubr.f32.gmra.mrb[6].mxu1 %v2987_v5  ;;  %v2853_v56 = vmul.f32 %v7540_v42, %v7702_v45  ;;  %v2158_v43 = vmul.f32 %v7508_v31, %v2707_v59 }
 0x247   : > { %v2708_v4 = vld [vmem:[#allocation3 + $0xc7] sm:$0xff]  ;;  %v2709_v60 = vld [vmem:[#allocation3 + $0xcf] sm:$0xff]  ;;  %v7748_v29 = vmax.f32 %v2023_v17, 0.0  ;;  %v2365_v62 = vadd.f32 %v2333_v13, %v2261_v46  ;;  %v2957_v27 = vmul.f32 %v7591_v54, %v7745_v18  ;;  %v2541_v63 = vmul.f32 %v7533_v53, %v7708_v44 }
 0x248   : > { %v2748_v55 = vmul.f32 %v7582_v35, %v2708_v4  ;;  %v2916_v7 = vld [vmem:[#allocation3 + $0xc9] sm:$0xff]  ;;  %2089 = vst [vmem:[#allocation3 + $0xf0] sm:$0xff] %v7741_v3  ;;  %v2676_v41 = vadd.f32 %v2644_v51, %v2572_v52  ;;  %v2749_v25 = vmul.f32 %v7582_v35, %v2709_v60  ;;  %v2437_v20 = vmul.f32 %v7545_v50, %v2708_v4 }
 0x249   : > { %2088 = vst [vmem:[#allocation3 + $0xe8] sm:$0xff] %v7748_v29  ;;  %v2230_v59 = vmul.f32 %v7515_v40, %v7660_v38  ;;  %v2956_v14 = vmul.f32 %v7591_v54, %v2916_v7  ;;  %v2645_v36 = vmul.f32 %v7552_v16, %v2916_v7  ;;  %v2334_v48 = vmul.f32 %v7523_v6, %v7711_v8 }
 0x24a   : > { %v2780_v57 = vadd.f32 %v2748_v55, %v2675_v19  ;;  %v2781_v11 = vadd.f32 %v2749_v25, %v2676_v41  ;;  %v2469_v23 = vadd.f32 %v2437_v20, %v2365_v62  ;;  %v2438_v47 = vmul.f32 %v7545_v50, %v2709_v60 }
 0x24b   : > { %v2262_v30 = vadd.f32 %v2230_v59, %v2158_v43  ;;  %v2159_v38 = vmul.f32 %v7508_v31, %v2708_v4  ;;  %v2231_v2 = vmul.f32 %v7515_v40, %v7708_v44  ;;  %v2854_v39 = vmul.f32 %v7540_v42, %v7748_v29 }
 0x24c   : > { %v5292_v58 = vpop.f32.mrb[14].mxu0  ;;  %v2884_v12 = vadd.f32 %v2852_v61, %v2780_v57  ;;  %v2885_v15 = vadd.f32 %v2853_v56, %v2781_v11  ;;  %v2573_v22 = vadd.f32 %v2541_v63, %v2469_v23  ;;  %v2542_v9 = vmul.f32 %v7533_v53, %v7702_v45 }
 0x24d   : > { %v1987_v26 = vmul.f32 %v5292_v58, %v7496_v49  ;;  %v1876_v0 = vpop.f32.mrb[15].mxu0  ;;  %v2366_v37 = vadd.f32 %v2334_v48, %v2262_v30  ;;  %v2263_v10 = vadd.f32 %v2231_v2, %v2159_v38  ;;  %v2646_v17 = vmul.f32 %v7552_v16, %v7745_v18 }
 0x24e   : > { %v1986_v33 = vmul.f32 %v7496_v49, %v1876_v0  ;;  %v2988_v24 = vadd.f32 %v2956_v14, %v2884_v12  ;;  %v2989_v8 = vadd.f32 %v2957_v27, %v2885_v15  ;;  %v2677_v32 = vadd.f32 %v2645_v36, %v2573_v22 }
 0x24f   : > { %v7775_v28 = vadd.f32 %v7501_v34, %v1987_v26  ;;  %v2470_v61 = vadd.f32 %v2438_v47, %v2366_v37  ;;  %v2335_v19 = vmul.f32 %v7523_v6, %v2916_v7  ;;  %v2160_v46 = vmul.f32 %v7508_v31, %v2709_v60  ;;  %v7790_v13 = vld [vmem:[#allocation3 + $0xf1] sm:$0xff] }
 0x250   : > { %v2025_v21 = vadd.f32 %v7501_v34, %v1986_v33  ;;  %5361 = vmatprep.mubr.f32.mxu1 %v2988_v24  ;;  %v2710_v44 = vld [vmem:[#allocation3 + $0xe7] sm:$0xff]  ;;  %v2711_v5 = vld [vmem:[#allocation3 + $0xef] sm:$0xff]  ;;  %v2232_v55 = vmul.f32 %v7515_v40, %v7702_v45  ;;  %v2855_v43 = vmul.f32 %v7540_v42, %v7741_v3  ;;  %v2543_v60 = vmul.f32 %v7533_v53, %v7748_v29 }
 0x251   : > { %v2058_v1 = vmax.f32 %v7775_v28, 0.0  ;;  %5362 = vmatmul.mubr.f32.gmra.mrb[8].mxu1 %v2989_v8  ;;  %v2750_v52 = vmul.f32 %v7582_v35, %v2710_v44  ;;  %v2574_v51 = vadd.f32 %v2542_v9, %v2470_v61  ;;  %v2918_v56 = vld [vmem:[#allocation3 + $0xe9] sm:$0xff]  ;;  %v2367_v41 = vadd.f32 %v2335_v19, %v2263_v10 }
 0x252   : > { %v7787_v4 = vmax.f32 %v2025_v21, 0.0  ;;  %v2439_v7 = vmul.f32 %v7545_v50, %v2710_v44  ;;  %v2751_v20 = vmul.f32 %v7582_v35, %v2711_v5  ;;  %v2264_v57 = vadd.f32 %v2232_v55, %v2160_v46  ;;  %v2194_v9 = vld [vmem:[#allocation3 + $0xf0] sm:$0xff] }
 0x253   : > { %2091 = vst [vmem:[#allocation3 + $0x110] sm:$0xff] %v2058_v1  ;;  %v2782_v25 = vadd.f32 %v2750_v52, %v2677_v32  ;;  %v2678_v62 = vadd.f32 %v2646_v17, %v2574_v51  ;;  %v2959_v45 = vmul.f32 %v7591_v54, %v7790_v13  ;;  %v2336_v63 = vmul.f32 %v7523_v6, %v7745_v18 }
 0x254   : > { %2090 = vst [vmem:[#allocation3 + $0x108] sm:$0xff] %v7787_v4  ;;  %v2471_v27 = vadd.f32 %v2439_v7, %v2367_v41  ;;  %v2440_v59 = vmul.f32 %v7545_v50, %v2711_v5  ;;  %v2958_v23 = vmul.f32 %v7591_v54, %v2918_v56  ;;  %v2647_v58 = vmul.f32 %v7552_v16, %v2918_v56 }
 0x255   : > { %v5295_v14 = vpop.f32.mrb[16].mxu0  ;;  %v2886_v11 = vadd.f32 %v2854_v39, %v2782_v25  ;;  %v2783_v36 = vadd.f32 %v2751_v20, %v2678_v62  ;;  %v2368_v47 = vadd.f32 %v2336_v63, %v2264_v57  ;;  %v2161_v26 = vmul.f32 %v7508_v31, %v2710_v44 }
 0x256   : > { %v1989_v12 = vmul.f32 %v5295_v14, %v7496_v49  ;;  %v1886_v30 = vpop.f32.mrb[17].mxu0  ;;  %v2575_v48 = vadd.f32 %v2543_v60, %v2471_v27  ;;  %v2233_v22 = vmul.f32 %v7515_v40, %v7748_v29  ;;  %v2856_v33 = vmul.f32 %v7540_v42, %v7787_v4 }
 0x257   : > { %v1988_v0 = vmul.f32 %v7496_v49, %v1886_v30  ;;  %v2990_v15 = vadd.f32 %v2958_v23, %v2886_v11  ;;  %v2887_v18 = vadd.f32 %v2855_v43, %v2783_v36  ;;  %v2472_v24 = vadd.f32 %v2440_v59, %v2368_v47 }
 0x258   : > { %v2028_v38 = vadd.f32 %v7501_v34, %v1989_v12  ;;  %v2544_v37 = vmul.f32 %v7533_v53, %v7741_v3  ;;  %v2679_v8 = vadd.f32 %v2647_v58, %v2575_v48  ;;  %v2265_v39 = vadd.f32 %v2233_v22, %v2161_v26 }
 0x259   : > { %v2027_v2 = vadd.f32 %v7501_v34, %v1988_v0  ;;  %5364 = vmatprep.mubr.f32.mxu1 %v2990_v15  ;;  %v2991_v28 = vadd.f32 %v2959_v45, %v2887_v18  ;;  %v2648_v61 = vmul.f32 %v7552_v16, %v7790_v13  ;;  %v2337_v17 = vmul.f32 %v7523_v6, %v2918_v56  ;;  %v3293_v15 = vld [vmem:[#allocation15 + $0x40] sm:$0xff]  ;;  %v3294_v18 = vld [vmem:[#allocation15 + $0x48] sm:$0xff] }
 0x25a   : > { %v7819_v21 = vmax.f32 %v2028_v38, 0.0  ;;  %v2576_v29 = vadd.f32 %v2544_v37, %v2472_v24  ;;  %v7823_v44 = vld [vmem:[#allocation3 + $0x111] sm:$0xff]  ;;  %v2857_v52 = vmul.f32 %v7540_v42, %v2058_v1  ;;  %v2162_v51 = vmul.f32 %v7508_v31, %v2711_v5 }
 0x25b   : > { %v2712_v32 = vld [vmem:[#allocation3 + $0x107] sm:$0xff]  ;;  %v2713_v10 = vld [vmem:[#allocation3 + $0x10f] sm:$0xff]  ;;  %v7826_v3 = vmax.f32 %v2027_v2, 0.0  ;;  %5365 = vmatmul.mubr.f32.gmra.mrb[10].mxu1 %v2991_v28  ;;  %v2369_v41 = vadd.f32 %v2337_v17, %v2265_v39  ;;  %v2961_v60 = vmul.f32 %v7591_v54, %v7823_v44  ;;  %v2545_v25 = vmul.f32 %v7533_v53, %v7787_v4 }
 0x25c   : > { %v2752_v19 = vmul.f32 %v7582_v35, %v2712_v32  ;;  %v2920_v46 = vld [vmem:[#allocation3 + $0x109] sm:$0xff]  ;;  %2093 = vst [vmem:[#allocation3 + $0x130] sm:$0xff] %v7819_v21  ;;  %v2680_v55 = vadd.f32 %v2648_v61, %v2576_v29  ;;  %v2753_v43 = vmul.f32 %v7582_v35, %v2713_v10  ;;  %v2441_v7 = vmul.f32 %v7545_v50, %v2712_v32 }
 0x25d   : > { %2092 = vst [vmem:[#allocation3 + $0x128] sm:$0xff] %v7826_v3  ;;  %v2234_v1 = vmul.f32 %v7515_v40, %v2194_v9  ;;  %v2960_v5 = vmul.f32 %v7591_v54, %v2920_v46  ;;  %v2649_v57 = vmul.f32 %v7552_v16, %v2920_v46  ;;  %v2195_v45 = vld [vmem:[#allocation3 + $0x108] sm:$0xff]  ;;  %v2338_v14 = vmul.f32 %v7523_v6, %v7790_v13  ;;  %v2506_v23 = vld [vmem:[#allocation3 + $0x110] sm:$0xff] }
 0x25e   : > { %v2784_v56 = vadd.f32 %v2752_v19, %v2679_v8  ;;  %v2785_v62 = vadd.f32 %v2753_v43, %v2680_v55  ;;  %v2473_v20 = vadd.f32 %v2441_v7, %v2369_v41  ;;  %v2442_v11 = vmul.f32 %v7545_v50, %v2713_v10 }
 0x25f   : > { %v2266_v59 = vadd.f32 %v2234_v1, %v2162_v51  ;;  %v2163_v30 = vmul.f32 %v7508_v31, %v2712_v32  ;;  %v2235_v0 = vmul.f32 %v7515_v40, %v2195_v45  ;;  %v2858_v38 = vmul.f32 %v7540_v42, %v7826_v3 }
 0x260   : > { %v5298_v27 = vpop.f32.mrb[18].mxu0  ;;  %v2888_v63 = vadd.f32 %v2856_v33, %v2784_v56  ;;  %v2889_v58 = vadd.f32 %v2857_v52, %v2785_v62  ;;  %v2577_v12 = vadd.f32 %v2545_v25, %v2473_v20  ;;  %v2546_v33 = vmul.f32 %v7533_v53, %v2506_v23 }
 0x261   : > { %v1991_v4 = vmul.f32 %v5298_v27, %v7496_v49  ;;  %v1896_v36 = vpop.f32.mrb[19].mxu0  ;;  %v2370_v26 = vadd.f32 %v2338_v14, %v2266_v59  ;;  %v2267_v28 = vadd.f32 %v2235_v0, %v2163_v30  ;;  %v2650_v9 = vmul.f32 %v7552_v16, %v7823_v44 }
 0x262   : > { %v1990_v48 = vmul.f32 %v7496_v49, %v1896_v36  ;;  %v2992_v47 = vadd.f32 %v2960_v5, %v2888_v63  ;;  %v2993_v22 = vadd.f32 %v2961_v60, %v2889_v58  ;;  %v2681_v37 = vadd.f32 %v2649_v57, %v2577_v12 }
 0x263   : > { %v2030_v13 = vadd.f32 %v7501_v34, %v1991_v4  ;;  %v2474_v2 = vadd.f32 %v2442_v11, %v2370_v26  ;;  %v2339_v29 = vmul.f32 %v7523_v6, %v2920_v46  ;;  %v5637_v61 = vpack.c.bf16 %v3294_v18, %v3293_v15  ;;  %v7862_v55 = vld [vmem:[#allocation3 + $0x131] sm:$0xff] }
 0x264   : > { %v2029_v24 = vadd.f32 %v7501_v34, %v1990_v48  ;;  %5367 = vmatprep.mubr.f32.mxu1 %v2992_v47  ;;  %v2714_v39 = vld [vmem:[#allocation3 + $0x127] sm:$0xff]  ;;  %v2715_v32 = vld [vmem:[#allocation3 + $0x12f] sm:$0xff]  ;;  %v2164_v43 = vmul.f32 %v7508_v31, %v2713_v10  ;;  %v2859_v41 = vmul.f32 %v7540_v42, %v7819_v21  ;;  %v2547_v46 = vmul.f32 %v7533_v53, %v7826_v3 }
 0x265   : > { %v7854_v8 = vmax.f32 %v2030_v13, 0.0  ;;  %5368 = vmatmul.mubr.f32.gmra.mrb[12].mxu1 %v2993_v22  ;;  %v2754_v19 = vmul.f32 %v7582_v35, %v2714_v39  ;;  %v2922_v52 = vld [vmem:[#allocation3 + $0x129] sm:$0xff]  ;;  %v2578_v51 = vadd.f32 %v2546_v33, %v2474_v2  ;;  %v2371_v7 = vadd.f32 %v2339_v29, %v2267_v28  ;;  %5638 = vmatprep.subr.bf16.mxu1 %v5637_v61 }
 0x266   : > { %v7859_v17 = vmax.f32 %v2029_v24, 0.0  ;;  %v2443_v56 = vmul.f32 %v7545_v50, %v2714_v39  ;;  %v2755_v1 = vmul.f32 %v7582_v35, %v2715_v32  ;;  %v2236_v10 = vmul.f32 %v7515_v40, %v2506_v23  ;;  %5640 = vmatpush3.bf16.msra.mxu1 %v5637_v61  ;;  %v2197_v14 = vld [vmem:[#allocation3 + $0x128] sm:$0xff] }
 0x267   : > { %2095 = vst [vmem:[#allocation3 + $0x150] sm:$0xff] %v7854_v8  ;;  %v2786_v60 = vadd.f32 %v2754_v19, %v2681_v37  ;;  %v2682_v25 = vadd.f32 %v2650_v9, %v2578_v51  ;;  %v2962_v5 = vmul.f32 %v7591_v54, %v2922_v52  ;;  %v2963_v62 = vmul.f32 %v7591_v54, %v7862_v55 }
 0x268   : > { %2094 = vst [vmem:[#allocation3 + $0x148] sm:$0xff] %v7859_v17  ;;  %v2475_v20 = vadd.f32 %v2443_v56, %v2371_v7  ;;  %v2340_v57 = vmul.f32 %v7523_v6, %v7823_v44  ;;  %v2268_v63 = vadd.f32 %v2236_v10, %v2164_v43  ;;  %v2444_v59 = vmul.f32 %v7545_v50, %v2715_v32 }
 0x269   : > { %v2890_v45 = vadd.f32 %v2858_v38, %v2786_v60  ;;  %v2787_v27 = vadd.f32 %v2755_v1, %v2682_v25  ;;  %v2651_v36 = vmul.f32 %v7552_v16, %v2922_v52  ;;  %v2165_v58 = vmul.f32 %v7508_v31, %v2714_v39 }
 0x26a   : > { %v5301_v3 = vpop.f32.mrb[20].mxu0  ;;  %v2579_v4 = vadd.f32 %v2547_v46, %v2475_v20  ;;  %v2372_v44 = vadd.f32 %v2340_v57, %v2268_v63  ;;  %v2860_v26 = vmul.f32 %v7540_v42, %v7859_v17  ;;  %v2548_v0 = vmul.f32 %v7533_v53, %v7819_v21  ;;  %v2198_v21 = vld [vmem:[#allocation3 + $0x130] sm:$0xff] }
 0x26b   : > { %v1993_v11 = vmul.f32 %v5301_v3, %v7496_v49  ;;  %v1906_v23 = vpop.f32.mrb[21].mxu0  ;;  %v2994_v30 = vadd.f32 %v2962_v5, %v2890_v45  ;;  %v2891_v48 = vadd.f32 %v2859_v41, %v2787_v27  ;;  %v2237_v15 = vmul.f32 %v7515_v40, %v2197_v14  ;;  %v7921_v3 = vld [vmem:[#allocation12] ss:$0 sm:$0xff] }
 0x26c   : > { %v1992_v12 = vmul.f32 %v7496_v49, %v1906_v23  ;;  %v2683_v22 = vadd.f32 %v2651_v36, %v2579_v4  ;;  %v2476_v38 = vadd.f32 %v2444_v59, %v2372_v44  ;;  %v2652_v24 = vmul.f32 %v7552_v16, %v7862_v55  ;;  %v3295_v23 = vld [vmem:[#allocation15 + $0x50] sm:$0xff]  ;;  %v3296_v4 = vld [vmem:[#allocation15 + $0x58] sm:$0xff] }
 0x26d   : > { %v2032_v47 = vadd.f32 %v7501_v34, %v1993_v11  ;;  %5370 = vmatprep.mubr.f32.mxu1 %v2994_v30  ;;  %v2995_v13 = vadd.f32 %v2963_v62, %v2891_v48  ;;  %v2269_v2 = vadd.f32 %v2237_v15, %v2165_v58  ;;  %v2341_v28 = vmul.f32 %v7523_v6, %v2922_v52  ;;  %v7935_v36 = vld [vmem:[%s9028_s6] ss:$0 sm:$0xff]  ;;  %v7945_v48 = vld [vmem:[%s9069_s20 + $0x1] ss:$0 sm:$0xff] }
 0x26e   : > { %v2031_v18 = vadd.f32 %v7501_v34, %v1992_v12  ;;  %v2580_v29 = vadd.f32 %v2548_v0, %v2476_v38  ;;  %v7901_v61 = vld [vmem:[#allocation3 + $0x151] sm:$0xff]  ;;  %v2166_v19 = vmul.f32 %v7508_v31, %v2715_v32  ;;  %v2861_v51 = vmul.f32 %v7540_v42, %v7854_v8 }
 0x26f   : > { %v7891_v49 = vmax.f32 %v2032_v47, 0.0  ;;  %v2716_v33 = vld [vmem:[#allocation3 + $0x147] sm:$0xff]  ;;  %v7895_v37 = vld [vmem:[#allocation3 + $0x14f] sm:$0xff]  ;;  %5371 = vmatmul.mubr.f32.gmra.mrb[14].mxu1 %v2995_v13  ;;  %v2373_v43 = vadd.f32 %v2341_v28, %v2269_v2  ;;  %v2549_v41 = vmul.f32 %v7533_v53, %v7859_v17  ;;  %v2238_v31 = vmul.f32 %v7515_v40, %v2198_v21 }
 0x270   : > { %v7898_v39 = vmax.f32 %v2031_v18, 0.0  ;;  %v2756_v34 = vmul.f32 %v7582_v35, %v2716_v33  ;;  %v2924_v9 = vld [vmem:[#allocation3 + $0x149] sm:$0xff]  ;;  %v2445_v52 = vmul.f32 %v7545_v50, %v2716_v33  ;;  %v2684_v56 = vadd.f32 %v2652_v24, %v2580_v29 }
 0x271   : > { %2097 = vst [vmem:[#allocation3 + $0x170] sm:$0xff] %v7891_v49  ;;  %v2757_v46 = vmul.f32 %v7582_v35, %v7895_v37  ;;  %v2964_v32 = vmul.f32 %v7591_v54, %v2924_v9  ;;  %v2965_v60 = vmul.f32 %v7591_v54, %v7901_v61  ;;  %v2342_v1 = vmul.f32 %v7523_v6, %v7862_v55  ;;  %v2199_v57 = vld [vmem:[#allocation3 + $0x148] sm:$0xff]  ;;  %v7928_v6 = vld [vmem:[%s9069_s20] ss:$0 sm:$0xff]  ;;  %v2200_v29 = vld [vmem:[#allocation3 + $0x150] sm:$0xff] }
 0x272   : > { %2096 = vst [vmem:[#allocation3 + $0x168] sm:$0xff] %v7898_v39  ;;  %v2788_v7 = vadd.f32 %v2756_v34, %v2683_v22  ;;  %v2477_v25 = vadd.f32 %v2445_v52, %v2373_v43  ;;  %v2270_v62 = vadd.f32 %v2238_v31, %v2166_v19  ;;  %v2446_v20 = vmul.f32 %v7545_v50, %v7895_v37  ;;  %v7977_v43 = vld [vmem:[%s9069_s20 + $0x3] ss:$0 sm:$0xff]  ;;  %v7983_v52 = vld [vmem:[%s9069_s20 + $0x4] ss:$0 sm:$0xff] }
 0x273   : > { %v2789_v5 = vadd.f32 %v2757_v46, %v2684_v56  ;;  %v2653_v63 = vmul.f32 %v7552_v16, %v2924_v9  ;;  %v2167_v55 = vmul.f32 %v7928_v6, %v2716_v33  ;;  %v2862_v12 = vmul.f32 %v7540_v42, %v7898_v39 }
 0x274   : > { %v5304_v10 = vpop.f32.mrb[22].mxu0  ;;  %v2892_v17 = vadd.f32 %v2860_v26, %v2788_v7  ;;  %v2581_v27 = vadd.f32 %v2549_v41, %v2477_v25  ;;  %v2374_v11 = vadd.f32 %v2342_v1, %v2270_v62  ;;  %v2550_v30 = vmul.f32 %v7533_v53, %v7854_v8  ;;  %v7956_v53 = vld [vmem:[%s9069_s20 + $0x2] ss:$0 sm:$0xff]  ;;  %v7999_v62 = vld [vmem:[%s9069_s20 + $0x5] ss:$0 sm:$0xff] }
 0x275   : > { %v1995_v40 = vmul.f32 %v7921_v3, %v5304_v10  ;;  %v1916_v45 = vpop.f32.mrb[23].mxu0  ;;  %v2893_v50 = vadd.f32 %v2861_v51, %v2789_v5  ;;  %v2239_v44 = vmul.f32 %v7945_v48, %v2199_v57  ;;  %v2343_v8 = vmul.f32 %v7956_v53, %v2924_v9  ;;  %v7970_v9 = vld [vmem:[%s9069_s20 + $0x7] ss:$0 sm:$0xff] }
 0x276   : > { %v1994_v59 = vmul.f32 %v7921_v3, %v1916_v45  ;;  %v2996_v14 = vadd.f32 %v2964_v32, %v2892_v17  ;;  %v2685_v0 = vadd.f32 %v2653_v63, %v2581_v27  ;;  %v2478_v15 = vadd.f32 %v2446_v20, %v2374_v11 }
 0x277   : > { %v2034_v58 = vadd.f32 %v7935_v36, %v1995_v40  ;;  %v2997_v26 = vadd.f32 %v2965_v60, %v2893_v50  ;;  %v2271_v22 = vadd.f32 %v2239_v44, %v2167_v55  ;;  %v5641_v38 = vpack.c.bf16 %v3296_v4, %v3295_v23 }
 0x278   : > { %v2033_v47 = vadd.f32 %v7935_v36, %v1994_v59  ;;  %5373 = vmatprep.mubr.f32.mxu1 %v2996_v14  ;;  %v2582_v28 = vadd.f32 %v2550_v30, %v2478_v15  ;;  %v2654_v21 = vmul.f32 %v7552_v16, %v7901_v61  ;;  %v7964_v34 = vld [vmem:[#allocation3 + $0x171] sm:$0xff]  ;;  %v2863_v19 = vmul.f32 %v7970_v9, %v7891_v49 }
 0x279   : > { %v7949_v18 = vmax.f32 %v2034_v58, 0.0  ;;  %v2718_v13 = vld [vmem:[#allocation3 + $0x167] sm:$0xff]  ;;  %v7951_v42 = vld [vmem:[#allocation3 + $0x16f] sm:$0xff]  ;;  %5374 = vmatmul.mubr.f32.gmra.mrb[16].mxu1 %v2997_v26  ;;  %v2375_v51 = vadd.f32 %v2343_v8, %v2271_v22  ;;  %v2551_v41 = vmul.f32 %v7983_v52, %v7898_v39  ;;  %5642 = vmatprep.subr.bf16.mxu1 %v5641_v38  ;;  %v2168_v31 = vmul.f32 %v7928_v6, %v7895_v37 }
 0x27a   : > { %v7959_v33 = vmax.f32 %v2033_v47, 0.0  ;;  %v2758_v24 = vmul.f32 %v7582_v35, %v2718_v13  ;;  %v2926_v2 = vld [vmem:[#allocation3 + $0x169] sm:$0xff]  ;;  %v2447_v16 = vmul.f32 %v7977_v43, %v2718_v13  ;;  %v2686_v56 = vadd.f32 %v2654_v21, %v2582_v28  ;;  %5644 = vmatpush3.bf16.msra.mxu1 %v5641_v38 }
 0x27b   : > { %2099 = vst [vmem:[#allocation3 + $0x190] sm:$0xff] %v7949_v18  ;;  %v2759_v46 = vmul.f32 %v7582_v35, %v7951_v42  ;;  %v2966_v32 = vmul.f32 %v7591_v54, %v2926_v2  ;;  %v2967_v60 = vmul.f32 %v7591_v54, %v7964_v34  ;;  %v2240_v1 = vmul.f32 %v7945_v48, %v2200_v29 }
 0x27c   : > { %2098 = vst [vmem:[#allocation3 + $0x188] sm:$0xff] %v7959_v33  ;;  %v2790_v7 = vadd.f32 %v2758_v24, %v2685_v0  ;;  %v2479_v25 = vadd.f32 %v2447_v16, %v2375_v51  ;;  %v2655_v35 = vmul.f32 %v7999_v62, %v2926_v2  ;;  %v2344_v37 = vmul.f32 %v7956_v53, %v7901_v61  ;;  %v8044_v16 = vld [vmem:[%s9069_s20 + $0x8] ss:$0 sm:$0xff] }
 0x27d   : > { %v2791_v5 = vadd.f32 %v2759_v46, %v2686_v56  ;;  %v2272_v40 = vadd.f32 %v2240_v1, %v2168_v31  ;;  %v2448_v45 = vmul.f32 %v7977_v43, %v7951_v42  ;;  %v2169_v59 = vmul.f32 %v7928_v6, %v2718_v13  ;;  %v2202_v13 = vld [vmem:[#allocation3 + $0x170] sm:$0xff] }
 0x27e   : > { %v5307_v10 = vpop.f32.mrb[24].mxu0  ;;  %v2894_v17 = vadd.f32 %v2862_v12, %v2790_v7  ;;  %v2583_v54 = vadd.f32 %v2551_v41, %v2479_v25  ;;  %v2864_v50 = vmul.f32 %v7970_v9, %v7959_v33  ;;  %v2241_v11 = vmul.f32 %v7945_v48, %v7898_v39  ;;  %v8027_v39 = vld [vmem:[%s9069_s20 + $0x6] ss:$0 sm:$0xff] }
 0x27f   : > { %v1997_v20 = vmul.f32 %v7921_v3, %v5307_v10  ;;  %v1926_v57 = vpop.f32.mrb[25].mxu0  ;;  %v2895_v55 = vadd.f32 %v2863_v19, %v2791_v5  ;;  %v2376_v61 = vadd.f32 %v2344_v37, %v2272_v40  ;;  %v2552_v12 = vmul.f32 %v7983_v52, %v7891_v49 }
 0x280   : > { %v1996_v27 = vmul.f32 %v7921_v3, %v1926_v57  ;;  %v2998_v63 = vadd.f32 %v2966_v32, %v2894_v17  ;;  %v2687_v58 = vadd.f32 %v2655_v35, %v2583_v54  ;;  %v2273_v0 = vadd.f32 %v2241_v11, %v2169_v59 }
 0x281   : > { %v2036_v14 = vadd.f32 %v7935_v36, %v1997_v20  ;;  %v2999_v4 = vadd.f32 %v2967_v60, %v2895_v55  ;;  %v2480_v47 = vadd.f32 %v2448_v45, %v2376_v61  ;;  %v2345_v15 = vmul.f32 %v7956_v53, %v2926_v2 }
 0x282   : > { %v2035_v23 = vadd.f32 %v7935_v36, %v1996_v27  ;;  %5376 = vmatprep.mubr.f32.mxu1 %v2998_v63  ;;  %v8019_v26 = vld [vmem:[#allocation3 + $0x191] sm:$0xff]  ;;  %v2656_v38 = vmul.f32 %v7999_v62, %v7964_v34  ;;  %v2865_v2 = vmul.f32 %v7970_v9, %v7949_v18  ;;  %v2553_v19 = vmul.f32 %v7983_v52, %v7959_v33 }
 0x283   : > { %v8017_v30 = vmax.f32 %v2036_v14, 0.0  ;;  %v2720_v44 = vld [vmem:[#allocation3 + $0x187] sm:$0xff]  ;;  %5377 = vmatmul.mubr.f32.gmra.mrb[18].mxu1 %v2999_v4  ;;  %v8032_v24 = vld [vmem:[#allocation3 + $0x18f] sm:$0xff]  ;;  %v2584_v28 = vadd.f32 %v2552_v12, %v2480_v47  ;;  %v2377_v21 = vadd.f32 %v2345_v15, %v2273_v0  ;;  %v2969_v41 = vmul.f32 %v8044_v16, %v8019_v26 }
 0x284   : > { %v8022_v22 = vmax.f32 %v2035_v23, 0.0  ;;  %v2760_v49 = vmul.f32 %v8027_v39, %v2720_v44  ;;  %v2928_v8 = vld [vmem:[#allocation3 + $0x189] sm:$0xff]  ;;  %v2449_v29 = vmul.f32 %v7977_v43, %v2720_v44  ;;  %v2170_v7 = vmul.f32 %v7928_v6, %v7951_v42 }
 0x285   : > { %2101 = vst [vmem:[#allocation3 + $0x1b0] sm:$0xff] %v8017_v30  ;;  %v2242_v56 = vmul.f32 %v7945_v48, %v2202_v13  ;;  %v2968_v46 = vmul.f32 %v8044_v16, %v2928_v8  ;;  %v2688_v31 = vadd.f32 %v2656_v38, %v2584_v28  ;;  %v2761_v32 = vmul.f32 %v8027_v39, %v8032_v24  ;;  %v3297_v23 = vld [vmem:[#allocation15 + $0x60] sm:$0xff]  ;;  %v3298_v15 = vld [vmem:[#allocation15 + $0x68] sm:$0xff] }
 0x286   : > { %2100 = vst [vmem:[#allocation3 + $0x1a8] sm:$0xff] %v8022_v22  ;;  %v2792_v51 = vadd.f32 %v2760_v49, %v2687_v58  ;;  %v2481_v60 = vadd.f32 %v2449_v29, %v2377_v21  ;;  %v2346_v17 = vmul.f32 %v7956_v53, %v7964_v34  ;;  %v2450_v5 = vmul.f32 %v7977_v43, %v8032_v24 }
 0x287   : > { %v2274_v10 = vadd.f32 %v2242_v56, %v2170_v7  ;;  %v2793_v37 = vadd.f32 %v2761_v32, %v2688_v31  ;;  %v2657_v57 = vmul.f32 %v7999_v62, %v2928_v8  ;;  %v2171_v27 = vmul.f32 %v7928_v6, %v2720_v44 }
 0x288   : > { %v5310_v25 = vpop.f32.mrb[26].mxu0  ;;  %v2896_v1 = vadd.f32 %v2864_v50, %v2792_v51  ;;  %v2585_v20 = vadd.f32 %v2553_v19, %v2481_v60  ;;  %v2866_v34 = vmul.f32 %v7970_v9, %v8022_v22  ;;  %v2243_v59 = vmul.f32 %v7945_v48, %v7959_v33 }
 0x289   : > { %v1999_v42 = vmul.f32 %v7921_v3, %v5310_v25  ;;  %v1936_v35 = vpop.f32.mrb[27].mxu0  ;;  %v2378_v45 = vadd.f32 %v2346_v17, %v2274_v10  ;;  %v2897_v55 = vadd.f32 %v2865_v2, %v2793_v37  ;;  %v2554_v11 = vmul.f32 %v7983_v52, %v7949_v18  ;;  %v2204_v2 = vld [vmem:[#allocation3 + $0x190] sm:$0xff] }
 0x28a   : > { %v1998_v54 = vmul.f32 %v7921_v3, %v1936_v35  ;;  %v3000_v40 = vadd.f32 %v2968_v46, %v2896_v1  ;;  %v2689_v50 = vadd.f32 %v2657_v57, %v2585_v20  ;;  %v2275_v47 = vadd.f32 %v2243_v59, %v2171_v27 }
 0x28b   : > { %v2038_v63 = vadd.f32 %v7935_v36, %v1999_v42  ;;  %v2482_v61 = vadd.f32 %v2450_v5, %v2378_v45  ;;  %v3001_v58 = vadd.f32 %v2969_v41, %v2897_v55  ;;  %v2347_v0 = vmul.f32 %v7956_v53, %v2928_v8 }
 0x28c   : > { %v2037_v14 = vadd.f32 %v7935_v36, %v1998_v54  ;;  %5379 = vmatprep.mubr.f32.mxu1 %v3000_v40  ;;  %v2658_v38 = vmul.f32 %v7999_v62, %v8019_v26  ;;  %v8080_v18 = vld [vmem:[#allocation3 + $0x1b1] sm:$0xff]  ;;  %v2867_v21 = vmul.f32 %v7970_v9, %v8017_v30  ;;  %v2555_v19 = vmul.f32 %v7983_v52, %v8022_v22 }
 0x28d   : > { %v8070_v4 = vmax.f32 %v2038_v63, 0.0  ;;  %v2722_v12 = vld [vmem:[#allocation3 + $0x1a7] sm:$0xff]  ;;  %v8072_v44 = vld [vmem:[#allocation3 + $0x1af] sm:$0xff]  ;;  %v2586_v49 = vadd.f32 %v2554_v11, %v2482_v61  ;;  %5380 = vmatmul.mubr.f32.gmra.mrb[20].mxu1 %v3001_v58  ;;  %v2379_v8 = vadd.f32 %v2347_v0, %v2275_v47  ;;  %v5645_v56 = vpack.c.bf16 %v3298_v15, %v3297_v23 }
 0x28e   : > { %v8075_v33 = vmax.f32 %v2037_v14, 0.0  ;;  %v2762_v13 = vmul.f32 %v8027_v39, %v2722_v12  ;;  %v2930_v28 = vld [vmem:[#allocation3 + $0x1a9] sm:$0xff]  ;;  %v2451_v29 = vmul.f32 %v7977_v43, %v2722_v12  ;;  %v2763_v7 = vmul.f32 %v8027_v39, %v8072_v44 }
 0x28f   : > { %2103 = vst [vmem:[#allocation3 + $0x1d0] sm:$0xff] %v8070_v4  ;;  %v2690_v41 = vadd.f32 %v2658_v38, %v2586_v49  ;;  %v2971_v46 = vmul.f32 %v8044_v16, %v8080_v18  ;;  %v2172_v32 = vmul.f32 %v7928_v6, %v8032_v24  ;;  %v2244_v60 = vmul.f32 %v7945_v48, %v2204_v2  ;;  %v2206_v61 = vld [vmem:[#allocation3 + $0x1b0] sm:$0xff] }
 0x290   : > { %2102 = vst [vmem:[#allocation3 + $0x1c8] sm:$0xff] %v8075_v33  ;;  %v2794_v51 = vadd.f32 %v2762_v13, %v2689_v50  ;;  %v2483_v31 = vadd.f32 %v2451_v29, %v2379_v8  ;;  %v2970_v10 = vmul.f32 %v8044_v16, %v2930_v28  ;;  %5646 = vmatprep.subr.bf16.mxu1 %v5645_v56 }
 0x291   : > { %v2795_v17 = vadd.f32 %v2763_v7, %v2690_v41  ;;  %v2348_v5 = vmul.f32 %v7956_v53, %v8019_v26  ;;  %v2276_v20 = vadd.f32 %v2244_v60, %v2172_v32  ;;  %v2452_v57 = vmul.f32 %v7977_v43, %v8072_v44  ;;  %5648 = vmatpush3.bf16.msra.mxu1 %v5645_v56 }
 0x292   : > { %v5313_v25 = vpop.f32.mrb[28].mxu0  ;;  %v2898_v1 = vadd.f32 %v2866_v34, %v2794_v51  ;;  %v2587_v37 = vadd.f32 %v2555_v19, %v2483_v31  ;;  %v2659_v45 = vmul.f32 %v7999_v62, %v2930_v28  ;;  %v2868_v26 = vmul.f32 %v7970_v9, %v8075_v33 }
 0x293   : > { %v2001_v42 = vmul.f32 %v7921_v3, %v5313_v25  ;;  %v1946_v35 = vpop.f32.mrb[29].mxu0  ;;  %v2899_v40 = vadd.f32 %v2867_v21, %v2795_v17  ;;  %v2380_v63 = vadd.f32 %v2348_v5, %v2276_v20  ;;  %v2173_v55 = vmul.f32 %v7928_v6, %v2722_v12 }
 0x294   : > { %v2000_v24 = vmul.f32 %v7921_v3, %v1946_v35  ;;  %v3002_v54 = vadd.f32 %v2970_v10, %v2898_v1  ;;  %v2691_v14 = vadd.f32 %v2659_v45, %v2587_v37  ;;  %v2556_v50 = vmul.f32 %v7983_v52, %v8017_v30 }
 0x295   : > { %v2040_v27 = vadd.f32 %v7935_v36, %v2001_v42  ;;  %v3003_v59 = vadd.f32 %v2971_v46, %v2899_v40  ;;  %v2484_v47 = vadd.f32 %v2452_v57, %v2380_v63  ;;  %v2660_v0 = vmul.f32 %v7999_v62, %v8080_v18  ;;  %v3299_v63 = vld [vmem:[#allocation15 + $0x70] sm:$0xff] }
 0x296   : > { %v2039_v34 = vadd.f32 %v7935_v36, %v2000_v24  ;;  %5382 = vmatprep.mubr.f32.mxu1 %v3002_v54  ;;  %v2245_v12 = vmul.f32 %v7945_v48, %v8022_v22  ;;  %v2869_v49 = vmul.f32 %v7970_v9, %v8070_v4  ;;  %v2349_v38 = vmul.f32 %v7956_v53, %v2930_v28  ;;  %v2933_v31 = vld [vmem:[#allocation3 + $0x1d1] sm:$0xff] }
 0x297   : > { %v8111_v11 = vmax.f32 %v2040_v27, 0.0  ;;  %v2724_v23 = vld [vmem:[#allocation3 + $0x1c7] sm:$0xff]  ;;  %v8117_v15 = vld [vmem:[#allocation3 + $0x1cf] sm:$0xff]  ;;  %5383 = vmatmul.mubr.f32.gmra.mrb[22].mxu1 %v3003_v59  ;;  %v2588_v21 = vadd.f32 %v2556_v50, %v2484_v47  ;;  %v2174_v41 = vmul.f32 %v7928_v6, %v8072_v44  ;;  %v2246_v28 = vmul.f32 %v7945_v48, %v2206_v61  ;;  %v3300_v61 = vld [vmem:[#allocation15 + $0x78] sm:$0xff] }
 0x298   : > { %v8113_v58 = vld [vmem:[#allocation3 + $0x1c9] sm:$0xff]  ;;  %v8121_v13 = vmax.f32 %v2039_v34, 0.0  ;;  %v2764_v30 = vmul.f32 %v8027_v39, %v2724_v23  ;;  %v2277_v8 = vadd.f32 %v2245_v12, %v2173_v55  ;;  %v2453_v29 = vmul.f32 %v7977_v43, %v2724_v23 }
 0x299   : > { %2105 = vst [vmem:[#allocation3 + $0x1f0] sm:$0xff] %v8111_v11  ;;  %v2972_v2 = vmul.f32 %v8044_v16, %v8113_v58  ;;  %v5316_v22 = vpop.f32.mrb[30].mxu0  ;;  %v2765_v51 = vmul.f32 %v8027_v39, %v8117_v15  ;;  %v2692_v46 = vadd.f32 %v2660_v0, %v2588_v21  ;;  %v2350_v60 = vmul.f32 %v7956_v53, %v8080_v18 }
 0x29a   : > { %2104 = vst [vmem:[#allocation3 + $0x1e8] sm:$0xff] %v8121_v13  ;;  %v2796_v19 = vadd.f32 %v2764_v30, %v2691_v14  ;;  %v2003_v7 = vmul.f32 %v7921_v3, %v5316_v22  ;;  %v1956_v56 = vpop.f32.mrb[31].mxu0  ;;  %v2381_v32 = vadd.f32 %v2349_v38, %v2277_v8  ;;  %v2278_v10 = vadd.f32 %v2246_v28, %v2174_v41 }
 0x29b   : > { %v2002_v25 = vmul.f32 %v7921_v3, %v1956_v56  ;;  %v2454_v17 = vmul.f32 %v7977_v43, %v8117_v15  ;;  %v2797_v5 = vadd.f32 %v2765_v51, %v2692_v46  ;;  %v2557_v35 = vmul.f32 %v7983_v52, %v8075_v33 }
 0x29c   : > { %v2900_v1 = vadd.f32 %v2868_v26, %v2796_v19  ;;  %v2042_v44 = vadd.f32 %v7935_v36, %v2003_v7  ;;  %v2485_v42 = vadd.f32 %v2453_v29, %v2381_v32  ;;  %v2973_v57 = vmul.f32 %v8044_v16, %v2933_v31 }
 0x29d   : > { %v2041_v37 = vadd.f32 %v7935_v36, %v2002_v25  ;;  %v2382_v18 = vadd.f32 %v2350_v60, %v2278_v10  ;;  %v2901_v3 = vadd.f32 %v2869_v49, %v2797_v5  ;;  %v2661_v40 = vmul.f32 %v7999_v62, %v8113_v58 }
 0x29e   : > { %v3004_v20 = vadd.f32 %v2972_v2, %v2900_v1  ;;  %v8148_v24 = vmax.f32 %v2042_v44, 0.0  ;;  %v2589_v54 = vadd.f32 %v2557_v35, %v2485_v42  ;;  %v2558_v26 = vmul.f32 %v7983_v52, %v8070_v4 }
 0x29f   : > { %v8152_v45 = vmax.f32 %v2041_v37, 0.0  ;;  %v2486_v27 = vadd.f32 %v2454_v17, %v2382_v18  ;;  %v2175_v36 = vmul.f32 %v7928_v6, %v2724_v23  ;;  %v3005_v55 = vadd.f32 %v2973_v57, %v2901_v3 }
 0x2a0   : > { %5385 = vmatprep.mubr.f32.mxu1 %v3004_v20  ;;  %2107 = vst [vmem:[#allocation3 + $0x210] sm:$0xff] %v8148_v24  ;;  %v2693_v34 = vadd.f32 %v2661_v40, %v2589_v54  ;;  %v2247_v50 = vmul.f32 %v7945_v48, %v8075_v33  ;;  %v2662_v12 = vmul.f32 %v7999_v62, %v2933_v31  ;;  %v2935_v19 = vld [vmem:[#allocation3 + $0x1f1] sm:$0xff] }
 0x2a1   : > { %v2726_v59 = vld [vmem:[#allocation3 + $0x1e7] sm:$0xff]  ;;  %v8158_v14 = vld [vmem:[#allocation3 + $0x1ef] sm:$0xff]  ;;  %2106 = vst [vmem:[#allocation3 + $0x208] sm:$0xff] %v8152_v45  ;;  %v2590_v0 = vadd.f32 %v2558_v26, %v2486_v27  ;;  %5386 = vmatmul.mubr.f32.gmra.mrb[24].mxu1 %v3005_v55  ;;  %v2870_v23 = vmul.f32 %v7970_v9, %v8121_v13  ;;  %v2351_v38 = vmul.f32 %v7956_v53, %v8113_v58 }
 0x2a2   : > { %v2766_v47 = vmul.f32 %v8027_v39, %v2726_v59  ;;  %v2934_v30 = vld [vmem:[#allocation3 + $0x1e9] sm:$0xff]  ;;  %v2279_v49 = vadd.f32 %v2247_v50, %v2175_v36  ;;  %v2455_v2 = vmul.f32 %v7977_v43, %v2726_v59  ;;  %v2767_v8 = vmul.f32 %v8027_v39, %v8158_v14 }
 0x2a3   : > { %v2694_v21 = vadd.f32 %v2662_v12, %v2590_v0  ;;  %v5649_v29 = vpack.c.bf16 %v3300_v61, %v3299_v63  ;;  %v2871_v22 = vmul.f32 %v7970_v9, %v8111_v11  ;;  %v2176_v41 = vmul.f32 %v7928_v6, %v8117_v15 }
 0x2a4   : > { %v2798_v33 = vadd.f32 %v2766_v47, %v2693_v34  ;;  %v2383_v51 = vadd.f32 %v2351_v38, %v2279_v49  ;;  %v2248_v28 = vmul.f32 %v7945_v48, %v8070_v4  ;;  %v2974_v7 = vmul.f32 %v8044_v16, %v2934_v30  ;;  %v2730_v47 = vld [vmem:[#allocation3 + $0x227] sm:$0xff] }
 0x2a5   : > { %v2799_v56 = vadd.f32 %v2767_v8, %v2694_v21  ;;  %v2559_v46 = vmul.f32 %v7983_v52, %v8121_v13  ;;  %5650 = vmatprep.subr.bf16.mxu1 %v5649_v29  ;;  %v2352_v25 = vmul.f32 %v7956_v53, %v2933_v31  ;;  %v2456_v1 = vmul.f32 %v7977_v43, %v8158_v14  ;;  %v4500_v49 = vld [vmem:[#allocation16] sm:$0xff]  ;;  %v4501_v38 = vld [vmem:[#allocation16 + $0x8] sm:$0xff] }
 0x2a6   : > { %v2902_v58 = vadd.f32 %v2870_v23, %v2798_v33  ;;  %v2487_v32 = vadd.f32 %v2455_v2, %v2383_v51  ;;  %v2280_v60 = vadd.f32 %v2248_v28, %v2176_v41  ;;  %5652 = vmatpush3.bf16.msra.mxu1 %v5649_v29  ;;  %v2975_v4 = vmul.f32 %v8044_v16, %v2935_v19  ;;  %v4503_v51 = vld [vmem:[#allocation16 + $0x18] sm:$0xff] }
 0x2a7   : > { %v2903_v10 = vadd.f32 %v2871_v22, %v2799_v56  ;;  %v2177_v17 = vmul.f32 %v7928_v6, %v2726_v59  ;;  %v2663_v5 = vmul.f32 %v7999_v62, %v2934_v30  ;;  %v2249_v37 = vmul.f32 %v7945_v48, %v8121_v13  ;;  %v2937_v21 = vld [vmem:[#allocation3 + $0x211] sm:$0xff]  ;;  %v2938_v56 = vld [vmem:[#allocation3 + $0x229] sm:$0xff] }
 0x2a8   : > { %v3006_v15 = vadd.f32 %v2974_v7, %v2902_v58  ;;  %v2591_v44 = vadd.f32 %v2559_v46, %v2487_v32  ;;  %v2728_v42 = vld [vmem:[#allocation3 + $0x207] sm:$0xff]  ;;  %v2384_v35 = vadd.f32 %v2352_v25, %v2280_v60  ;;  %v2560_v18 = vmul.f32 %v7983_v52, %v8111_v11  ;;  %v2729_v27 = vld [vmem:[#allocation3 + $0x20f] sm:$0xff] }
 0x2a9   : > { %v3007_v31 = vadd.f32 %v2975_v4, %v2903_v10  ;;  %v2768_v20 = vmul.f32 %v8027_v39, %v2728_v42  ;;  %v2936_v57 = vld [vmem:[#allocation3 + $0x209] sm:$0xff]  ;;  %v2353_v3 = vmul.f32 %v7956_v53, %v2934_v30  ;;  %v2281_v26 = vadd.f32 %v2249_v37, %v2177_v17  ;;  %v4502_v22 = vld [vmem:[#allocation16 + $0x10] sm:$0xff] }
 0x2aa   : > { %5388 = vmatprep.mubr.f32.mxu1 %v3006_v15  ;;  %v2695_v54 = vadd.f32 %v2663_v5, %v2591_v44  ;;  %v2488_v40 = vadd.f32 %v2456_v1, %v2384_v35  ;;  %v2457_v36 = vmul.f32 %v7977_v43, %v2728_v42  ;;  %v2872_v13 = vmul.f32 %v7970_v9, %v8152_v45  ;;  %v4504_v60 = vld [vmem:[#allocation16 + $0x20] sm:$0xff]  ;;  %v4505_v25 = vld [vmem:[#allocation16 + $0x28] sm:$0xff] }
 0x2ab   : > { %5389 = vmatmul.mubr.f32.gmra.mrb[26].mxu1 %v3007_v31  ;;  %v2664_v63 = vmul.f32 %v7999_v62, %v2935_v19  ;;  %v2873_v55 = vmul.f32 %v7970_v9, %v8148_v24  ;;  %v2976_v59 = vmul.f32 %v8044_v16, %v2936_v57  ;;  %v2385_v61 = vadd.f32 %v2353_v3, %v2281_v26  ;;  %v8212_v10 = vld [vmem:[#allocation2 + $0x8] sm:$0xff] }
 0x2ac   : > { %v2800_v34 = vadd.f32 %v2768_v20, %v2695_v54  ;;  %v2592_v50 = vadd.f32 %v2560_v18, %v2488_v40  ;;  %v2769_v0 = vmul.f32 %v8027_v39, %v2729_v27  ;;  %v2561_v12 = vmul.f32 %v7983_v52, %v8152_v45  ;;  %v4506_v20 = vld [vmem:[#allocation16 + $0x30] sm:$0xff] }
 0x2ad   : > { %v2178_v23 = vmul.f32 %v7928_v6, %v8158_v14  ;;  %v2250_v30 = vmul.f32 %v7945_v48, %v8111_v11  ;;  %v2489_v8 = vadd.f32 %v2457_v36, %v2385_v61  ;;  %v2665_v29 = vmul.f32 %v7999_v62, %v2936_v57  ;;  %v2939_v18 = vld [vmem:[#allocation3 + $0x231] sm:$0xff] }
 0x2ae   : > { %v2904_v2 = vadd.f32 %v2872_v13, %v2800_v34  ;;  %v2696_v33 = vadd.f32 %v2664_v63, %v2592_v50  ;;  %v2770_v41 = vmul.f32 %v8027_v39, %v2730_v47  ;;  %v2354_v45 = vmul.f32 %v7956_v53, %v2935_v19  ;;  %v3253_v13 = vld [vmem:[%s6588_s18] sm:$0xff]  ;;  %v3254_v63 = vld [vmem:[%s6588_s18 + $0x8] sm:$0xff]  ;;  %v3259_v50 = vld [vmem:[%s6588_s18 + $0x30] sm:$0xff] }
 0x2af   : > { %v2282_v28 = vadd.f32 %v2250_v30, %v2178_v23  ;;  %v2458_v6 = vmul.f32 %v7977_v43, %v2729_v27  ;;  %v2593_v48 = vadd.f32 %v2561_v12, %v2489_v8  ;;  %v5653_v11 = vpack.c.bf16 %v4501_v38, %v4500_v49  ;;  %v2731_v43 = vld [vmem:[#allocation3 + $0x22f] sm:$0xff]  ;;  %v4508_v27 = vld [vmem:[#allocation16 + $0x40] sm:$0xff]  ;;  %v3260_v61 = vld [vmem:[%s6588_s18 + $0x38] sm:$0xff] }
 0x2b0   : > { %v3008_v14 = vadd.f32 %v2976_v59, %v2904_v2  ;;  %v2801_v58 = vadd.f32 %v2769_v0, %v2696_v33  ;;  %v2977_v7 = vmul.f32 %v8044_v16, %v2937_v21  ;;  %v5657_v32 = vpack.c.bf16 %v4503_v51, %v4502_v22  ;;  %v3257_v34 = vld [vmem:[%s6588_s18 + $0x20] sm:$0xff]  ;;  %v3258_v59 = vld [vmem:[%s6588_s18 + $0x28] sm:$0xff]  ;;  %v3263_v12 = vld [vmem:[%s6588_s18 + $0x50] sm:$0xff] }
 0x2b1   : > { %v2386_v46 = vadd.f32 %v2354_v45, %v2282_v28  ;;  %v2697_v15 = vadd.f32 %v2665_v29, %v2593_v48  ;;  %v2874_v53 = vmul.f32 %v8212_v10, %v7970_v9  ;;  %5654 = vmatprep.subr.bf16.mxu0 %v5653_v11  ;;  %v2562_v4 = vmul.f32 %v7983_v52, %v8148_v24  ;;  %v4507_v9 = vld [vmem:[#allocation16 + $0x38] sm:$0xff]  ;;  %v3262_v0 = vld [vmem:[%s6588_s18 + $0x48] sm:$0xff]  ;;  %v3267_v38 = vld [vmem:[%s6588_s18 + $0x70] sm:$0xff] }
 0x2b2   : > { %5391 = vmatprep.mubr.f32.mxu1 %v3008_v14  ;;  %v2905_v1 = vadd.f32 %v2873_v55, %v2801_v58  ;;  %5656 = vmatpush3.bf16.msra.mxu0 %v5653_v11  ;;  %v2978_v5 = vmul.f32 %v8044_v16, %v2938_v56  ;;  %v5661_v42 = vpack.c.bf16 %v4505_v25, %v4504_v60  ;;  %v3256_v55 = vld [vmem:[%s6588_s18 + $0x18] sm:$0xff]  ;;  %v3261_v47 = vld [vmem:[%s6588_s18 + $0x40] sm:$0xff]  ;;  %v3266_v49 = vld [vmem:[%s6588_s18 + $0x68] sm:$0xff] }
 0x2b3   : > { %v2490_v19 = vadd.f32 %v2458_v6, %v2386_v46  ;;  %v2802_v44 = vadd.f32 %v2770_v41, %v2697_v15  ;;  %5658 = vmatprep.subr.bf16.mxu0 %v5657_v32  ;;  %v2666_v37 = vmul.f32 %v7999_v62, %v2937_v21  ;;  %v2771_v31 = vmul.f32 %v8027_v39, %v2731_v43  ;;  %v4509_v62 = vld [vmem:[#allocation16 + $0x48] sm:$0xff]  ;;  %v3264_v23 = vld [vmem:[%s6588_s18 + $0x58] sm:$0xff]  ;;  %v3265_v30 = vld [vmem:[%s6588_s18 + $0x60] sm:$0xff] }
 0x2b4   : > { %v3009_v17 = vadd.f32 %v2977_v7, %v2905_v1  ;;  %v5665_v24 = vpack.c.bf16 %v4507_v9, %v4506_v20  ;;  %v2979_v40 = vmul.f32 %v8044_v16, %v2939_v18  ;;  %v5669_v26 = vpack.c.bf16 %v4509_v62, %v4508_v27  ;;  %v3255_v16 = vld [vmem:[%s6588_s18 + $0x10] sm:$0xff]  ;;  %v3268_v2 = vld [vmem:[%s6588_s18 + $0x78] sm:$0xff]  ;;  %v3269_v33 = vld [vmem:[%s6588_s18 + $0x80] sm:$0xff] }
 0x2b5   : > { %v2594_v35 = vadd.f32 %v2562_v4, %v2490_v19  ;;  %v2906_v57 = vadd.f32 %v2874_v53, %v2802_v44  ;;  %v3270_v21 = vld [vmem:[%s6588_s18 + $0x88] sm:$0xff]  ;;  %v3271_v8 = vld [vmem:[%s6588_s18 + $0x90] sm:$0xff]  ;;  %v3272_v29 = vld [vmem:[%s6588_s18 + $0x98] sm:$0xff] }
 0x2b6   : > { %5392 = vmatmul.mubr.f32.gmra.mrb[28].mxu1 %v3009_v17  ;;  %5660 = vmatpush3.bf16.msra.mxu0 %v5657_v32  ;;  %v3273_v22 = vld [vmem:[%s6588_s18 + $0xa0] sm:$0xff]  ;;  %v3274_v51 = vld [vmem:[%s6588_s18 + $0xa8] sm:$0xff]  ;;  %v3275_v41 = vld [vmem:[%s6588_s18 + $0xb0] sm:$0xff] }
 0x2b7   : > { %v2698_v3 = vadd.f32 %v2666_v37, %v2594_v35  ;;  %v3010_v52 = vadd.f32 %v2978_v5, %v2906_v57  ;;  %5662 = vmatprep.subr.bf16.mxu0 %v5661_v42  ;;  %v3276_v28 = vld [vmem:[%s6588_s18 + $0xb8] sm:$0xff]  ;;  %v3277_v45 = vld [vmem:[%s6588_s18 + $0xc0] sm:$0xff]  ;;  %v3278_v6 = vld [vmem:[%s6588_s18 + $0xc8] sm:$0xff] }
 0x2b8   : > { %v3279_v14 = vld [vmem:[%s6588_s18 + $0xd0] sm:$0xff]  ;;  %v3280_v58 = vld [vmem:[%s6588_s18 + $0xd8] sm:$0xff]  ;;  %v3281_v48 = vld [vmem:[%s6588_s18 + $0xe0] sm:$0xff] }
 0x2b9   : > { %v2803_v54 = vadd.f32 %v2771_v31, %v2698_v3  ;;  %5394 = vmatprep.mubr.f32.mxu1 %v3010_v52  ;;  %v3282_v11 = vld [vmem:[%s6588_s18 + $0xe8] sm:$0xff]  ;;  %v3283_v7 = vld [vmem:[%s6588_s18 + $0xf0] sm:$0xff]  ;;  %v3284_v56 = vld [vmem:[%s6588_s18 + $0xf8] sm:$0xff]  ;;  %s9070_s18 = sld [smem:[#allocation29_spill]] }
 0x2ba   : > { %5664 = vmatpush3.bf16.msra.mxu0 %v5661_v42  ;;  %v4510_v46 = vld [vmem:[#allocation16 + $0x50] sm:$0xff]  ;;  %v4511_v32 = vld [vmem:[#allocation16 + $0x58] sm:$0xff]  ;;  %v4512_v25 = vld [vmem:[#allocation16 + $0x60] sm:$0xff] }
 0x2bb   : > { %v2907_v39 = vadd.f32 %v2874_v53, %v2803_v54  ;;  %5666 = vmatprep.subr.bf16.mxu0 %v5665_v24  ;;  %v5673_v60 = vpack.c.bf16 %v4511_v32, %v4510_v46  ;;  %v4513_v1 = vld [vmem:[#allocation16 + $0x68] sm:$0xff]  ;;  %v4514_v53 = vld [vmem:[#allocation16 + $0x70] sm:$0xff]  ;;  %v4515_v43 = vld [vmem:[#allocation16 + $0x78] sm:$0xff] }
 0x2bc   : > { %v5677_v15 = vpack.c.bf16 %v4513_v1, %v4512_v25  ;;  %v5681_v19 = vpack.c.bf16 %v4515_v43, %v4514_v53  ;;  %v3597_v4 = vld [vmem:[#allocation3 + $0x7] sm:$0xff]  ;;  %v8262_v44 = vld [vmem:[%s9071_s13] ss:$0 sm:$0xff]  ;;  %v3598_v5 = vld [vmem:[#allocation3 + $0xf] sm:$0xff]  ;;  %s8974_s13 = scalar_lea.hbm %s9072_s1, %s5044_s19 }
 0x2bd   : > { %v3011_v36 = vadd.f32 %v2979_v40, %v2907_v39  ;;  %v3772_v3 = vld [vmem:[#allocation3 + $0x9] sm:$0xff] }
 0x2be   : > { %5668 = vmatpush3.bf16.msra.mxu0 %v5665_v24  ;;  %v3773_v24 = vld [vmem:[#allocation3 + $0x11] sm:$0xff] }
 0x2bf   : > { %5395 = vmatmul.mubr.f32.gmra.mrb[30].mxu1 %v3011_v36  ;;  %5670 = vmatprep.subr.bf16.mxu0 %v5669_v26  ;;  %v8257_v17 = vld [vmem:[%s9070_s18] ss:$0 sm:$0xff]  ;;  %v8267_v42 = vld [vmem:[%s9070_s18 + $0x1] ss:$0 sm:$0xff]  ;;  %v8278_v52 = vld [vmem:[%s9070_s18 + $0x2] ss:$0 sm:$0xff] }
 0x2c0   : > { %5429 = vmatprep.mubr.f32.mxu1 %v3253_v13  ;;  %v3636_v37 = vmul.f32 %v8257_v17, %v3597_v4  ;;  %v3708_v31 = vmul.f32 %v8212_v10, %v8267_v42  ;;  %v3637_v57 = vmul.f32 %v8257_v17, %v3598_v5  ;;  %v3812_v62 = vmul.f32 %v8278_v52, %v3772_v3  ;;  %v8287_v13 = vld [vmem:[%s9070_s18 + $0x4] ss:$0 sm:$0xff] }
 0x2c2   : > { %5672 = vmatpush3.bf16.msra.mxu0 %v5669_v26  ;;  %v3740_v40 = vadd.f32 %v3708_v31, %v3636_v37  ;;  %v3741_v39 = vadd.f32 %v3708_v31, %v3637_v57  ;;  %v3813_v26 = vmul.f32 %v8278_v52, %v3773_v24 }
 0x2c3   : > { %5430 = vmatmul.mubr.f32.vlgmr.msra.gmra.mrb[0].mxu1 %v3254_v63  ;;  %5674 = vmatprep.subr.bf16.mxu0 %v5673_v60 }
 0x2c4   : > { %5432 = vmatprep.mubr.f32.mxu1 %v3255_v16  ;;  %v8292_v16 = vld [vmem:[%s9070_s18 + $0x7] ss:$0 sm:$0xff] }
 0x2c6   : > { %5676 = vmatpush3.bf16.msra.mxu0 %v5673_v60  ;;  %v8346_v60 = vld [vmem:[%s9070_s18 + $0x6] ss:$0 sm:$0xff] }
 0x2c7   : > { %5433 = vmatmul.mubr.f32.gmra.mrb[2].mxu1 %v3256_v55  ;;  %5678 = vmatprep.subr.bf16.mxu0 %v5677_v15 }
 0x2c8   : > { %5435 = vmatprep.mubr.f32.mxu1 %v3257_v34 }
 0x2ca   : > { %5680 = vmatpush3.bf16.msra.mxu0 %v5677_v15 }
 0x2cb   : > { %5436 = vmatmul.mubr.f32.gmra.mrb[4].mxu1 %v3258_v59  ;;  %5682 = vmatprep.subr.bf16.mxu0 %v5681_v19  ;;  %v3844_v59 = vadd.f32 %v3812_v62, %v3740_v40 }
 0x2cc   : > { %5438 = vmatprep.mubr.f32.mxu1 %v3259_v50  ;;  %v8300_v50 = vld [vmem:[%s9070_s18 + $0x3] ss:$0 sm:$0xff] }
 0x2ce   : > { %5684 = vmatpush3.bf16.msra.mxu0 %v5681_v19 }
 0x2cf   : > { %5439 = vmatmul.mubr.f32.gmra.mrb[6].mxu1 %v3260_v61  ;;  %v3845_v61 = vadd.f32 %v3813_v26, %v3741_v39 }
 0x2d0   : > { %5441 = vmatprep.mubr.f32.mxu1 %v3261_v47 }
 0x2d3   : > { %5442 = vmatmul.mubr.f32.gmra.mrb[8].mxu1 %v3262_v0 }
 0x2d4   : > { %5444 = vmatprep.mubr.f32.mxu1 %v3263_v12 }
 0x2d7   : > { %5445 = vmatmul.mubr.f32.gmra.mrb[10].mxu1 %v3264_v23  ;;  %v8310_v23 = vld [vmem:[%s9070_s18 + $0x5] ss:$0 sm:$0xff] }
 0x2d8   : > { %5447 = vmatprep.mubr.f32.mxu1 %v3265_v30 }
 0x2db   : > { %5448 = vmatmul.mubr.f32.gmra.mrb[12].mxu1 %v3266_v49 }
 0x2dc   : > { %5450 = vmatprep.mubr.f32.mxu1 %v3267_v38 }
 0x2df   : > { %5451 = vmatmul.mubr.f32.gmra.mrb[14].mxu1 %v3268_v2 }
 0x2e0   : > { %5453 = vmatprep.mubr.f32.mxu1 %v3269_v33 }
 0x2e3   : > { %5454 = vmatmul.mubr.f32.gmra.mrb[16].mxu1 %v3270_v21 }
 0x2e4   : > { %5456 = vmatprep.mubr.f32.mxu1 %v3271_v8 }
 0x2e7   : > { %5457 = vmatmul.mubr.f32.gmra.mrb[18].mxu1 %v3272_v29 }
 0x2e8   : > { %5459 = vmatprep.mubr.f32.mxu1 %v3273_v22 }
 0x2eb   : > { %5460 = vmatmul.mubr.f32.gmra.mrb[20].mxu1 %v3274_v51 }
 0x2ec   : > { %5462 = vmatprep.mubr.f32.mxu1 %v3275_v41 }
 0x2ef   : > { %5463 = vmatmul.mubr.f32.gmra.mrb[22].mxu1 %v3276_v28 }
 0x2f0   : > { %5465 = vmatprep.mubr.f32.mxu1 %v3277_v45 }
 0x2f3   : > { %5466 = vmatmul.mubr.f32.gmra.mrb[24].mxu1 %v3278_v6 }
 0x2f4   : > { %5468 = vmatprep.mubr.f32.mxu1 %v3279_v14 }
 0x2f7   : > { %5469 = vmatmul.mubr.f32.gmra.mrb[26].mxu1 %v3280_v58 }
 0x2f8   : > { %5471 = vmatprep.mubr.f32.mxu1 %v3281_v48 }
 0x2fb   : > { %5472 = vmatmul.mubr.f32.gmra.mrb[28].mxu1 %v3282_v11 }
 0x2fc   : > { %5474 = vmatprep.mubr.f32.mxu1 %v3283_v7 }
 0x2ff   : > { %5475 = vmatmul.mubr.f32.gmra.mrb[30].mxu1 %v3284_v56 }
 0x396   : > { %v5431_v35 = vpop.f32.mrb[0].mxu1 }
 0x397   : > { %v3380_v20 = vadd.f32 %v5431_v35, %v8262_v44  ;;  %v3374_v9 = vpop.f32.mrb[1].mxu1 }
 0x398   : > { %v3375_v18 = vadd.f32 %v8262_v44, %v3374_v9 }
 0x399   : > { %3566 = vst [vmem:[#allocation3 + $0x30] sm:$0xff] %v3380_v20  ;;  %v4021_v47 = vmul.f32 %v8287_v13, %v3380_v20  ;;  %v3711_v38 = vmul.f32 %v8267_v42, %v3380_v20  ;;  %v8362_v20 = vld [vmem:[%s9070_s18 + $0x8] ss:$0 sm:$0xff] }
 0x39a   : > { %3565 = vst [vmem:[#allocation3 + $0x28] sm:$0xff] %v3375_v18  ;;  %v5434_v54 = vpop.f32.mrb[2].mxu1  ;;  %v4020_v12 = vmul.f32 %v8287_v13, %v3375_v18  ;;  %v3710_v49 = vmul.f32 %v8267_v42, %v3375_v18 }
 0x39b   : > { %v3390_v10 = vadd.f32 %v5434_v54, %v8262_v44  ;;  %v3384_v27 = vpop.f32.mrb[3].mxu1 }
 0x39c   : > { %v3385_v36 = vadd.f32 %v8262_v44, %v3384_v27 }
 0x39d   : > { %3568 = vst [vmem:[#allocation3 + $0x50] sm:$0xff] %v3390_v10  ;;  %v8319_v8 = vmul.f32 %v8292_v16, %v3390_v10  ;;  %v8322_v29 = vmul.f32 %v8287_v13, %v3390_v10  ;;  %v8325_v22 = vmul.f32 %v8267_v42, %v3390_v10 }
 0x39e   : > { %3567 = vst [vmem:[#allocation3 + $0x48] sm:$0xff] %v3385_v36  ;;  %v5437_v63 = vpop.f32.mrb[4].mxu1  ;;  %v8316_v33 = vmul.f32 %v8292_v16, %v3385_v36  ;;  %v4022_v14 = vmul.f32 %v8287_v13, %v3385_v36  ;;  %v8338_v56 = vmul.f32 %v8267_v42, %v3385_v36 }
 0x39f   : > { %v8295_v55 = vadd.f32 %v5437_v63, %v8262_v44  ;;  %v3394_v34 = vpop.f32.mrb[5].mxu1 }
 0x3a0   : > { %v8304_v0 = vadd.f32 %v8262_v44, %v3394_v34  ;;  %v4085_v30 = vld [vmem:[#allocation3 + $0x31] sm:$0xff] }
 0x3a1   : > { %3570 = vst [vmem:[#allocation3 + $0x70] sm:$0xff] %v8295_v55  ;;  %v3876_v2 = vld [vmem:[#allocation3 + $0x27] sm:$0xff]  ;;  %v3877_v21 = vld [vmem:[#allocation3 + $0x2f] sm:$0xff]  ;;  %v4125_v11 = vmul.f32 %v8310_v23, %v4085_v30  ;;  %v3815_v4 = vmul.f32 %v8278_v52, %v4085_v30  ;;  %v8355_v5 = vmul.f32 %v8292_v16, %v8295_v55 }
 0x3a2   : > { %3569 = vst [vmem:[#allocation3 + $0x68] sm:$0xff] %v8304_v0  ;;  %v5440_v51 = vpop.f32.mrb[6].mxu1  ;;  %v3916_v41 = vmul.f32 %v8300_v50, %v3876_v2  ;;  %v4084_v28 = vld [vmem:[#allocation3 + $0x29] sm:$0xff]  ;;  %v3917_v45 = vmul.f32 %v8300_v50, %v3877_v21  ;;  %v3638_v6 = vmul.f32 %v8257_v17, %v3876_v2  ;;  %v3639_v7 = vmul.f32 %v8257_v17, %v3877_v21 }
 0x3a3   : > { %v8333_v58 = vadd.f32 %v5440_v51, %v8262_v44  ;;  %v3404_v48 = vpop.f32.mrb[7].mxu1  ;;  %v3814_v43 = vmul.f32 %v8278_v52, %v4084_v28  ;;  %v4124_v31 = vmul.f32 %v8310_v23, %v4084_v28  ;;  %v4334_v18 = vmul.f32 %v8292_v16, %v8304_v0 }
 0x3a4   : > { %v8341_v46 = vadd.f32 %v8262_v44, %v3404_v48  ;;  %v3948_v32 = vadd.f32 %v3916_v41, %v3844_v59  ;;  %v3949_v25 = vadd.f32 %v3917_v45, %v3845_v61  ;;  %v3742_v1 = vadd.f32 %v3710_v49, %v3638_v6  ;;  %v8364_v57 = vld [vmem:[#allocation3 + $0x51] sm:$0xff] }
 0x3a5   : > { %3572 = vst [vmem:[#allocation3 + $0x90] sm:$0xff] %v8333_v58  ;;  %v4188_v15 = vld [vmem:[#allocation3 + $0x47] sm:$0xff]  ;;  %v8349_v53 = vld [vmem:[#allocation3 + $0x4f] sm:$0xff]  ;;  %v3743_v19 = vadd.f32 %v3711_v38, %v3639_v7  ;;  %v4437_v63 = vmul.f32 %v8362_v20, %v8364_v57  ;;  %v4127_v2 = vmul.f32 %v8310_v23, %v8364_v57 }
 0x3a6   : > { %3571 = vst [vmem:[#allocation3 + $0x88] sm:$0xff] %v8341_v46  ;;  %v5443_v35 = vpop.f32.mrb[8].mxu1  ;;  %v4052_v37 = vadd.f32 %v4020_v12, %v3948_v32  ;;  %v4053_v9 = vadd.f32 %v4021_v47, %v3949_v25  ;;  %v4228_v54 = vmul.f32 %v8346_v60, %v4188_v15  ;;  %v4396_v40 = vld [vmem:[#allocation3 + $0x49] sm:$0xff]  ;;  %v3846_v10 = vadd.f32 %v3814_v43, %v3742_v1 }
 0x3a7   : > { %v8369_v3 = vadd.f32 %v5443_v35, %v8262_v44  ;;  %v3414_v24 = vpop.f32.mrb[9].mxu1  ;;  %v3918_v27 = vmul.f32 %v8300_v50, %v4188_v15  ;;  %v4229_v36 = vmul.f32 %v8346_v60, %v8349_v53  ;;  %v3847_v59 = vadd.f32 %v3815_v4, %v3743_v19 }
 0x3a8   : > { %v8374_v62 = vadd.f32 %v8262_v44, %v3414_v24  ;;  %v4156_v39 = vadd.f32 %v4124_v31, %v4052_v37  ;;  %v4157_v26 = vadd.f32 %v4125_v11, %v4053_v9  ;;  %v3919_v61 = vmul.f32 %v8300_v50, %v8349_v53 }
 0x3a9   : > { %3574 = vst [vmem:[#allocation3 + $0xb0] sm:$0xff] %v8369_v3  ;;  %v3950_v34 = vadd.f32 %v3918_v27, %v3846_v10  ;;  %v4436_v30 = vmul.f32 %v8362_v20, %v4396_v40  ;;  %v8385_v38 = vld [vmem:[#allocation3 + $0x67] sm:$0xff]  ;;  %v4126_v28 = vmul.f32 %v8310_v23, %v4396_v40  ;;  %v8398_v7 = vld [vmem:[#allocation3 + $0x6f] sm:$0xff]  ;;  %v3640_v32 = vmul.f32 %v8257_v17, %v4188_v15 }
 0x3aa   : > { %3573 = vst [vmem:[#allocation3 + $0xa8] sm:$0xff] %v8374_v62  ;;  %v5446_v47 = vpop.f32.mrb[10].mxu1  ;;  %v4260_v12 = vadd.f32 %v4228_v54, %v4156_v39  ;;  %v4261_v49 = vadd.f32 %v4229_v36, %v4157_v26  ;;  %v3951_v45 = vadd.f32 %v3919_v61, %v3847_v59  ;;  %v3816_v43 = vmul.f32 %v8278_v52, %v4396_v40  ;;  %v8415_v54 = vld [vmem:[#allocation3 + $0x71] sm:$0xff] }
 0x3ab   : > { %v8390_v21 = vadd.f32 %v5446_v47, %v8262_v44  ;;  %v3424_v51 = vpop.f32.mrb[11].mxu1  ;;  %v4054_v41 = vadd.f32 %v4022_v14, %v3950_v34  ;;  %v4230_v14 = vmul.f32 %v8346_v60, %v8385_v38  ;;  %v3744_v35 = vadd.f32 %v8338_v56, %v3640_v32 }
 0x3ac   : > { %v8394_v6 = vadd.f32 %v8262_v44, %v3424_v51  ;;  %v4364_v48 = vadd.f32 %v8316_v33, %v4260_v12  ;;  %v4365_v11 = vadd.f32 %v8319_v8, %v4261_v49  ;;  %v4055_v1 = vadd.f32 %v8322_v29, %v3951_v45  ;;  %v4398_v8 = vld [vmem:[#allocation3 + $0x69] sm:$0xff] }
 0x3ad   : > { %3576 = vst [vmem:[#allocation3 + $0xd0] sm:$0xff] %v8390_v21  ;;  %v4158_v25 = vadd.f32 %v4126_v28, %v4054_v41  ;;  %v3920_v15 = vmul.f32 %v8300_v50, %v8385_v38  ;;  %v4231_v29 = vmul.f32 %v8346_v60, %v8398_v7  ;;  %v3848_v10 = vadd.f32 %v3816_v43, %v3744_v35  ;;  %v8441_v51 = vld [vmem:[#allocation3 + $0x89] sm:$0xff] }
 0x3ae   : > { %3575 = vst [vmem:[#allocation3 + $0xc8] sm:$0xff] %v8394_v6  ;;  %v5449_v19 = vpop.f32.mrb[12].mxu1  ;;  %v4468_v33 = vadd.f32 %v4436_v30, %v4364_v48  ;;  %v4469_v4 = vadd.f32 %v4437_v63, %v4365_v11  ;;  %v4159_v24 = vadd.f32 %v4127_v2, %v4055_v1  ;;  %v4024_v56 = vmul.f32 %v8287_v13, %v8304_v0  ;;  %v8426_v63 = vld [vmem:[#allocation3 + $0x87] sm:$0xff] }
 0x3af   : > { %v8411_v37 = vadd.f32 %v5449_v19, %v8262_v44  ;;  %v3434_v31 = vpop.f32.mrb[13].mxu1  ;;  %v4262_v9 = vadd.f32 %v4230_v14, %v4158_v25  ;;  %v4025_v27 = vmul.f32 %v8287_v13, %v8295_v55  ;;  %v4438_v26 = vmul.f32 %v8362_v20, %v4398_v8  ;;  %v8451_v25 = vld [vmem:[#allocation3 + $0x8f] sm:$0xff] }
 0x3b0   : > { %v8418_v40 = vadd.f32 %v8262_v44, %v3434_v31  ;;  %5509 = vmatprep.mubr.f32.mxu0 %v4468_v33  ;;  %v4263_v36 = vadd.f32 %v4231_v29, %v4159_v24  ;;  %v3641_v34 = vmul.f32 %v8257_v17, %v8349_v53  ;;  %v4439_v61 = vmul.f32 %v8362_v20, %v8415_v54 }
 0x3b1   : > { %3578 = vst [vmem:[#allocation3 + $0xf0] sm:$0xff] %v8411_v37  ;;  %5510 = vmatmul.mubr.f32.vlgmr.msra.gmra.mrb[32].mxu0 %v4469_v4  ;;  %v4366_v39 = vadd.f32 %v4334_v18, %v4262_v9  ;;  %v3952_v47 = vadd.f32 %v3920_v15, %v3848_v10  ;;  %v3817_v12 = vmul.f32 %v8278_v52, %v8364_v57  ;;  %v8466_v15 = vld [vmem:[#allocation3 + $0x91] sm:$0xff] }
 0x3b2   : > { %3577 = vst [vmem:[#allocation3 + $0xe8] sm:$0xff] %v8418_v40  ;;  %v5452_v59 = vpop.f32.mrb[14].mxu1  ;;  %v3921_v18 = vmul.f32 %v8300_v50, %v8398_v7  ;;  %v4367_v53 = vadd.f32 %v8355_v5, %v4263_v36  ;;  %v3745_v41 = vadd.f32 %v8325_v22, %v3641_v34  ;;  %v4128_v57 = vmul.f32 %v8310_v23, %v4398_v8 }
 0x3b3   : > { %v8438_v30 = vadd.f32 %v5452_v59, %v8262_v44  ;;  %v3444_v49 = vpop.f32.mrb[15].mxu1  ;;  %v4470_v2 = vadd.f32 %v4438_v26, %v4366_v39  ;;  %v4056_v45 = vadd.f32 %v4024_v56, %v3952_v47  ;;  %v4232_v48 = vmul.f32 %v8346_v60, %v8426_v63  ;;  %v8487_v47 = vld [vmem:[#allocation3 + $0xa7] sm:$0xff] }
 0x3b4   : > { %v8445_v28 = vadd.f32 %v8262_v44, %v3444_v49  ;;  %v4471_v11 = vadd.f32 %v4439_v61, %v4367_v53  ;;  %v3849_v32 = vadd.f32 %v3817_v12, %v3745_v41  ;;  %v3642_v5 = vmul.f32 %v8257_v17, %v8385_v38 }
 0x3b5   : > { %3580 = vst [vmem:[#allocation3 + $0x110] sm:$0xff] %v8438_v30  ;;  %5512 = vmatprep.mubr.f32.mxu0 %v4470_v2  ;;  %v3714_v22 = vmul.f32 %v8267_v42, %v8304_v0  ;;  %v4160_v1 = vadd.f32 %v4128_v57, %v4056_v45  ;;  %v4336_v43 = vmul.f32 %v8292_v16, %v8341_v46 }
 0x3b6   : > { %3579 = vst [vmem:[#allocation3 + $0x108] sm:$0xff] %v8445_v28  ;;  %v5455_v14 = vpop.f32.mrb[16].mxu1  ;;  %v4440_v19 = vmul.f32 %v8362_v20, %v8441_v51  ;;  %v3818_v33 = vmul.f32 %v8278_v52, %v4398_v8  ;;  %5513 = vmatmul.mubr.f32.gmra.mrb[34].mxu0 %v4471_v11  ;;  %v3953_v35 = vadd.f32 %v3921_v18, %v3849_v32 }
 0x3b7   : > { %v8464_v4 = vadd.f32 %v5455_v14, %v8262_v44  ;;  %v3454_v38 = vpop.f32.mrb[17].mxu1  ;;  %v3746_v0 = vadd.f32 %v3714_v22, %v3642_v5  ;;  %v3922_v31 = vmul.f32 %v8300_v50, %v8426_v63  ;;  %v4264_v24 = vadd.f32 %v4232_v48, %v4160_v1 }
 0x3b8   : > { %v8471_v9 = vadd.f32 %v8262_v44, %v3454_v38  ;;  %v4129_v29 = vmul.f32 %v8310_v23, %v8415_v54  ;;  %v4233_v8 = vmul.f32 %v8346_v60, %v8451_v25  ;;  %v4057_v10 = vadd.f32 %v4025_v27, %v3953_v35 }
 0x3b9   : > { %3582 = vst [vmem:[#allocation3 + $0x130] sm:$0xff] %v8464_v4  ;;  %v4337_v56 = vmul.f32 %v8292_v16, %v8333_v58  ;;  %v3850_v39 = vadd.f32 %v3818_v33, %v3746_v0  ;;  %v3643_v26 = vmul.f32 %v8257_v17, %v8398_v7  ;;  %v4368_v36 = vadd.f32 %v4336_v43, %v4264_v24  ;;  %v4402_v33 = vld [vmem:[#allocation3 + $0xa9] sm:$0xff] }
 0x3ba   : > { %3581 = vst [vmem:[#allocation3 + $0x128] sm:$0xff] %v8471_v9  ;;  %v4441_v34 = vmul.f32 %v8362_v20, %v8466_v15  ;;  %v5458_v59 = vpop.f32.mrb[18].mxu1  ;;  %v4026_v61 = vmul.f32 %v8287_v13, %v8341_v46  ;;  %v3715_v27 = vmul.f32 %v8267_v42, %v8295_v55  ;;  %v4161_v12 = vadd.f32 %v4129_v29, %v4057_v10  ;;  %v8518_v24 = vld [vmem:[#allocation3 + $0xaf] sm:$0xff] }
 0x3bb   : > { %v8492_v18 = vadd.f32 %v5458_v59, %v8262_v44  ;;  %v3464_v7 = vpop.f32.mrb[19].mxu1  ;;  %v3954_v49 = vadd.f32 %v3922_v31, %v3850_v39  ;;  %v3819_v2 = vmul.f32 %v8278_v52, %v8415_v54  ;;  %v4472_v53 = vadd.f32 %v4440_v19, %v4368_v36 }
 0x3bc   : > { %v8497_v41 = vadd.f32 %v8262_v44, %v3464_v7  ;;  %v3747_v45 = vadd.f32 %v3715_v27, %v3643_v26  ;;  %v3923_v57 = vmul.f32 %v8300_v50, %v8451_v25  ;;  %v4265_v48 = vadd.f32 %v4233_v8, %v4161_v12  ;;  %v4403_v27 = vld [vmem:[#allocation3 + $0xb1] sm:$0xff] }
 0x3bd   : > { %3584 = vst [vmem:[#allocation3 + $0x150] sm:$0xff] %v8492_v18  ;;  %v4058_v55 = vadd.f32 %v4026_v61, %v3954_v49  ;;  %v4130_v11 = vmul.f32 %v8310_v23, %v8441_v51  ;;  %v4234_v32 = vmul.f32 %v8346_v60, %v8487_v47  ;;  %5515 = vmatprep.mubr.f32.mxu0 %v4472_v53 }
 0x3be   : > { %3583 = vst [vmem:[#allocation3 + $0x148] sm:$0xff] %v8497_v41  ;;  %v3851_v54 = vadd.f32 %v3819_v2, %v3747_v45  ;;  %v4027_v5 = vmul.f32 %v8287_v13, %v8333_v58  ;;  %v5461_v22 = vpop.f32.mrb[20].mxu1  ;;  %v3644_v14 = vmul.f32 %v8257_v17, %v8426_v63  ;;  %v3716_v1 = vmul.f32 %v8267_v42, %v8341_v46 }
 0x3bf   : > { %v4369_v43 = vadd.f32 %v4337_v56, %v4265_v48  ;;  %v4162_v19 = vadd.f32 %v4130_v11, %v4058_v55  ;;  %v8514_v38 = vadd.f32 %v5461_v22, %v8262_v44  ;;  %v3474_v35 = vpop.f32.mrb[21].mxu1  ;;  %v3820_v0 = vmul.f32 %v8278_v52, %v8441_v51  ;;  %v8542_v48 = vld [vmem:[#allocation3 + $0xc7] sm:$0xff] }
 0x3c0   : > { %v3955_v31 = vadd.f32 %v3923_v57, %v3851_v54  ;;  %v8521_v29 = vadd.f32 %v8262_v44, %v3474_v35  ;;  %v3748_v63 = vadd.f32 %v3716_v1, %v3644_v14  ;;  %v3924_v46 = vmul.f32 %v8300_v50, %v8487_v47 }
 0x3c1   : > { %v4473_v8 = vadd.f32 %v4441_v34, %v4369_v43  ;;  %v4266_v10 = vadd.f32 %v4234_v32, %v4162_v19  ;;  %v4338_v56 = vmul.f32 %v8292_v16, %v8374_v62  ;;  %3586 = vst [vmem:[#allocation3 + $0x170] sm:$0xff] %v8514_v38  ;;  %v4442_v39 = vmul.f32 %v8362_v20, %v4402_v33 }
 0x3c2   : > { %v4059_v51 = vadd.f32 %v4027_v5, %v3955_v31  ;;  %v4131_v26 = vmul.f32 %v8310_v23, %v8466_v15  ;;  %3585 = vst [vmem:[#allocation3 + $0x168] sm:$0xff] %v8521_v29  ;;  %v3852_v36 = vadd.f32 %v3820_v0, %v3748_v63  ;;  %v5464_v59 = vpop.f32.mrb[22].mxu1  ;;  %v4235_v34 = vmul.f32 %v8346_v60, %v8518_v24  ;;  %v4404_v63 = vld [vmem:[#allocation3 + $0xc9] sm:$0xff] }
 0x3c3   : > { %5516 = vmatmul.mubr.f32.gmra.mrb[36].mxu0 %v4473_v8  ;;  %v4370_v61 = vadd.f32 %v4338_v56, %v4266_v10  ;;  %v3645_v12 = vmul.f32 %v8257_v17, %v8451_v25  ;;  %v3717_v7 = vmul.f32 %v8267_v42, %v8333_v58  ;;  %v3484_v49 = vpop.f32.mrb[23].mxu1  ;;  %v4339_v53 = vmul.f32 %v8292_v16, %v8369_v3 }
 0x3c4   : > { %v4163_v2 = vadd.f32 %v4131_v26, %v4059_v51  ;;  %v3956_v45 = vadd.f32 %v3924_v46, %v3852_v36  ;;  %v4028_v57 = vmul.f32 %v8287_v13, %v8374_v62  ;;  %v3821_v32 = vmul.f32 %v8278_v52, %v8466_v15 }
 0x3c5   : > { %v4474_v55 = vadd.f32 %v4442_v39, %v4370_v61  ;;  %v3749_v11 = vadd.f32 %v3717_v7, %v3645_v12  ;;  %v3925_v25 = vmul.f32 %v8300_v50, %v8518_v24  ;;  %v4443_v54 = vmul.f32 %v8362_v20, %v4403_v27 }
 0x3c6   : > { %v4267_v58 = vadd.f32 %v4235_v34, %v4163_v2  ;;  %v4060_v5 = vadd.f32 %v4028_v57, %v3956_v45  ;;  %v4132_v22 = vmul.f32 %v8310_v23, %v4402_v33  ;;  %v5467_v14 = vpop.f32.mrb[24].mxu1  ;;  %v4236_v1 = vmul.f32 %v8346_v60, %v8542_v48 }
 0x3c7   : > { %5518 = vmatprep.mubr.f32.mxu0 %v4474_v55  ;;  %v3853_v43 = vadd.f32 %v3821_v32, %v3749_v11  ;;  %v8553_v19 = vadd.f32 %v5464_v59, %v8262_v44  ;;  %v8556_v15 = vadd.f32 %v8262_v44, %v3484_v49  ;;  %v3494_v35 = vpop.f32.mrb[25].mxu1  ;;  %v3646_v46 = vmul.f32 %v8257_v17, %v8487_v47  ;;  %v4197_v59 = vld [vmem:[#allocation3 + $0xcf] sm:$0xff] }
 0x3c8   : > { %v4371_v0 = vadd.f32 %v4339_v53, %v4267_v58  ;;  %v4164_v31 = vadd.f32 %v4132_v22, %v4060_v5  ;;  %v3718_v8 = vmul.f32 %v8267_v42, %v8374_v62  ;;  %v4340_v10 = vmul.f32 %v8292_v16, %v8394_v6  ;;  %v4405_v53 = vld [vmem:[#allocation3 + $0xd1] sm:$0xff]  ;;  %v8585_v5 = vld [vmem:[#allocation3 + $0xe7] sm:$0xff] }
 0x3c9   : > { %v3957_v56 = vadd.f32 %v3925_v25, %v3853_v43  ;;  %v4029_v39 = vmul.f32 %v8287_v13, %v8369_v3  ;;  %3588 = vst [vmem:[#allocation3 + $0x190] sm:$0xff] %v8553_v19  ;;  %3587 = vst [vmem:[#allocation3 + $0x188] sm:$0xff] %v8556_v15  ;;  %v3822_v51 = vmul.f32 %v8278_v52, %v4402_v33 }
 0x3ca   : > { %v4475_v26 = vadd.f32 %v4443_v54, %v4371_v0  ;;  %v4268_v36 = vadd.f32 %v4236_v1, %v4164_v31  ;;  %v3750_v47 = vadd.f32 %v3718_v8, %v3646_v46  ;;  %v3926_v62 = vmul.f32 %v8300_v50, %v8542_v48  ;;  %v8571_v61 = vpop.f32.mrb[26].mxu1 }
 0x3cb   : > { %v4444_v34 = vmul.f32 %v8362_v20, %v4404_v63  ;;  %v4061_v12 = vadd.f32 %v4029_v39, %v3957_v56  ;;  %v4133_v7 = vmul.f32 %v8310_v23, %v4403_v27  ;;  %v8575_v49 = vpop.f32.mrb[27].mxu1  ;;  %v3647_v45 = vmul.f32 %v8257_v17, %v8518_v24 }
 0x3cc   : > { %5519 = vmatmul.mubr.f32.gmra.mrb[38].mxu0 %v4475_v26  ;;  %v4372_v2 = vadd.f32 %v4340_v10, %v4268_v36  ;;  %v3854_v33 = vadd.f32 %v3822_v51, %v3750_v47  ;;  %v3719_v57 = vmul.f32 %v8267_v42, %v8369_v3  ;;  %v4237_v11 = vmul.f32 %v8346_v60, %v4197_v59  ;;  %v4406_v26 = vld [vmem:[#allocation3 + $0xe9] sm:$0xff] }
 0x3cd   : > { %v4165_v55 = vadd.f32 %v4133_v7, %v4061_v12  ;;  %v4030_v32 = vmul.f32 %v8287_v13, %v8394_v6  ;;  %v3823_v25 = vmul.f32 %v8278_v52, %v4403_v27  ;;  %v3927_v1 = vmul.f32 %v8300_v50, %v4197_v59  ;;  %v4199_v12 = vld [vmem:[#allocation3 + $0xef] sm:$0xff] }
 0x3ce   : > { %v4476_v58 = vadd.f32 %v4444_v34, %v4372_v2  ;;  %v3958_v54 = vadd.f32 %v3926_v62, %v3854_v33  ;;  %v3751_v22 = vadd.f32 %v3719_v57, %v3647_v45  ;;  %v8588_v43 = vpop.f32.mrb[28].mxu1  ;;  %v4341_v3 = vmul.f32 %v8292_v16, %v8390_v21 }
 0x3cf   : > { %v4269_v24 = vadd.f32 %v4237_v11, %v4165_v55  ;;  %v4445_v0 = vmul.f32 %v8362_v20, %v4405_v53  ;;  %v4134_v31 = vmul.f32 %v8310_v23, %v4404_v63  ;;  %v8594_v46 = vpop.f32.mrb[29].mxu1  ;;  %v8597_v10 = vadd.f32 %v5467_v14, %v8262_v44 }
 0x3d0   : > { %5521 = vmatprep.mubr.f32.mxu0 %v4476_v58  ;;  %v4062_v27 = vadd.f32 %v4030_v32, %v3958_v54  ;;  %v3855_v8 = vadd.f32 %v3823_v25, %v3751_v22  ;;  %v8600_v56 = vadd.f32 %v8262_v44, %v3494_v35  ;;  %v4238_v51 = vmul.f32 %v8346_v60, %v8585_v5  ;;  %v4407_v58 = vld [vmem:[#allocation3 + $0xf1] sm:$0xff] }
 0x3d1   : > { %v4373_v39 = vadd.f32 %v4341_v3, %v4269_v24  ;;  %v3648_v36 = vmul.f32 %v8257_v17, %v8542_v48  ;;  %v3720_v47 = vmul.f32 %v8267_v42, %v8394_v6  ;;  %v4342_v34 = vmul.f32 %v8292_v16, %v8418_v40  ;;  %3590 = vst [vmem:[#allocation3 + $0x1b0] sm:$0xff] %v8597_v10 }
 0x3d2   : > { %v4166_v62 = vadd.f32 %v4134_v31, %v4062_v27  ;;  %v3959_v14 = vadd.f32 %v3927_v1, %v3855_v8  ;;  %v4031_v35 = vmul.f32 %v8287_v13, %v8390_v21  ;;  %3589 = vst [vmem:[#allocation3 + $0x1a8] sm:$0xff] %v8600_v56  ;;  %v8614_v7 = vpop.f32.mrb[30].mxu1  ;;  %v3824_v33 = vmul.f32 %v8278_v52, %v4404_v63  ;;  %v4200_v27 = vld [vmem:[#allocation3 + $0x107] sm:$0xff] }
 0x3d3   : > { %v4477_v2 = vadd.f32 %v4445_v0, %v4373_v39  ;;  %v3752_v48 = vadd.f32 %v3720_v47, %v3648_v36  ;;  %v3928_v6 = vmul.f32 %v8300_v50, %v8585_v5  ;;  %v8619_v45 = vpop.f32.mrb[31].mxu1  ;;  %v4446_v55 = vmul.f32 %v8362_v20, %v4406_v26 }
 0x3d4   : > { %v4270_v57 = vadd.f32 %v4238_v51, %v4166_v62  ;;  %v4063_v11 = vadd.f32 %v4031_v35, %v3959_v14  ;;  %v4135_v32 = vmul.f32 %v8310_v23, %v4405_v53  ;;  %v4239_v25 = vmul.f32 %v8346_v60, %v4199_v12 }
 0x3d5   : > { %5522 = vmatmul.mubr.f32.gmra.mrb[40].mxu0 %v4477_v2  ;;  %v3856_v54 = vadd.f32 %v3824_v33, %v3752_v48  ;;  %v3649_v22 = vmul.f32 %v8257_v17, %v4197_v59  ;;  %v3721_v63 = vmul.f32 %v8267_v42, %v8390_v21  ;;  %v4343_v3 = vmul.f32 %v8292_v16, %v8411_v37  ;;  %v4408_v48 = vld [vmem:[#allocation3 + $0x109] sm:$0xff] }
 0x3d6   : > { %v4374_v1 = vadd.f32 %v4342_v34, %v4270_v57  ;;  %v4167_v24 = vadd.f32 %v4135_v32, %v4063_v11  ;;  %v4032_v0 = vmul.f32 %v8287_v13, %v8418_v40  ;;  %v3825_v39 = vmul.f32 %v8278_v52, %v4405_v53  ;;  %v4201_v11 = vld [vmem:[#allocation3 + $0x10f] sm:$0xff] }
 0x3d7   : > { %v3960_v31 = vadd.f32 %v3928_v6, %v3856_v54  ;;  %v3753_v8 = vadd.f32 %v3721_v63, %v3649_v22  ;;  %v3929_v51 = vmul.f32 %v8300_v50, %v4199_v12  ;;  %v4447_v47 = vmul.f32 %v8362_v20, %v4407_v58 }
 0x3d8   : > { %v4478_v36 = vadd.f32 %v4446_v55, %v4374_v1  ;;  %v4271_v59 = vadd.f32 %v4239_v25, %v4167_v24  ;;  %v4136_v21 = vmul.f32 %v8310_v23, %v4406_v26  ;;  %v8637_v14 = vadd.f32 %v8571_v61, %v8262_v44 }
 0x3d9   : > { %v4064_v62 = vadd.f32 %v4032_v0, %v3960_v31  ;;  %v3857_v34 = vadd.f32 %v3825_v39, %v3753_v8  ;;  %v8641_v35 = vadd.f32 %v8262_v44, %v8575_v49  ;;  %v4240_v2 = vmul.f32 %v8346_v60, %v4200_v27 }
 0x3da   : > { %5524 = vmatprep.mubr.f32.mxu0 %v4478_v36  ;;  %v4375_v53 = vadd.f32 %v4343_v3, %v4271_v59  ;;  %v3650_v33 = vmul.f32 %v8257_v17, %v8585_v5  ;;  %v3722_v6 = vmul.f32 %v8267_v42, %v8418_v40  ;;  %v4344_v61 = vmul.f32 %v8292_v16, %v8445_v28  ;;  %v4409_v3 = vld [vmem:[#allocation3 + $0x111] sm:$0xff] }
 0x3db   : > { %v4168_v57 = vadd.f32 %v4136_v21, %v4064_v62  ;;  %v3961_v55 = vadd.f32 %v3929_v51, %v3857_v34  ;;  %v4033_v49 = vmul.f32 %v8287_v13, %v8411_v37  ;;  %3592 = vst [vmem:[#allocation3 + $0x1d0] sm:$0xff] %v8637_v14  ;;  %3591 = vst [vmem:[#allocation3 + $0x1c8] sm:$0xff] %v8641_v35 }
 0x3dc   : > { %v4479_v32 = vadd.f32 %v4447_v47, %v4375_v53  ;;  %v3754_v25 = vadd.f32 %v3722_v6, %v3650_v33  ;;  %v3826_v5 = vmul.f32 %v8278_v52, %v4406_v26  ;;  %v3930_v54 = vmul.f32 %v8300_v50, %v4200_v27  ;;  %v4202_v47 = vld [vmem:[#allocation3 + $0x127] sm:$0xff] }
 0x3dd   : > { %v4272_v40 = vadd.f32 %v4240_v2, %v4168_v57  ;;  %v4448_v22 = vmul.f32 %v8362_v20, %v4408_v48  ;;  %v4065_v63 = vadd.f32 %v4033_v49, %v3961_v55  ;;  %v4137_v1 = vmul.f32 %v8310_v23, %v4407_v58  ;;  %v4410_v49 = vld [vmem:[#allocation3 + $0x129] sm:$0xff] }
 0x3de   : > { %5525 = vmatmul.mubr.f32.gmra.mrb[42].mxu0 %v4479_v32  ;;  %v4241_v24 = vmul.f32 %v8346_v60, %v4201_v11  ;;  %v3858_v0 = vadd.f32 %v3826_v5, %v3754_v25  ;;  %v3651_v31 = vmul.f32 %v8257_v17, %v4199_v12  ;;  %v3723_v8 = vmul.f32 %v8267_v42, %v8411_v37 }
 0x3df   : > { %v4376_v39 = vadd.f32 %v4344_v61, %v4272_v40  ;;  %v4169_v26 = vadd.f32 %v4137_v1, %v4065_v63  ;;  %v4345_v51 = vmul.f32 %v8292_v16, %v8438_v30  ;;  %v4034_v36 = vmul.f32 %v8287_v13, %v8445_v28 }
 0x3e0   : > { %v3962_v59 = vadd.f32 %v3930_v54, %v3858_v0  ;;  %v3755_v21 = vadd.f32 %v3723_v8, %v3651_v31  ;;  %v3827_v62 = vmul.f32 %v8278_v52, %v4407_v58  ;;  %v3931_v34 = vmul.f32 %v8300_v50, %v4201_v11 }
 0x3e1   : > { %v4480_v53 = vadd.f32 %v4448_v22, %v4376_v39  ;;  %v4273_v12 = vadd.f32 %v4241_v24, %v4169_v26  ;;  %v4449_v2 = vmul.f32 %v8362_v20, %v4409_v3  ;;  %v4138_v37 = vmul.f32 %v8310_v23, %v4408_v48  ;;  %v4411_v39 = vld [vmem:[#allocation3 + $0x131] sm:$0xff] }
 0x3e2   : > { %v4066_v33 = vadd.f32 %v4034_v36, %v3962_v59  ;;  %v3859_v6 = vadd.f32 %v3827_v62, %v3755_v21  ;;  %v8672_v57 = vadd.f32 %v8588_v43, %v8262_v44  ;;  %v8676_v61 = vadd.f32 %v8262_v44, %v8594_v46  ;;  %v4203_v46 = vld [vmem:[#allocation3 + $0x12f] sm:$0xff] }
 0x3e3   : > { %5527 = vmatprep.mubr.f32.mxu0 %v4480_v53  ;;  %v4377_v58 = vadd.f32 %v4345_v51, %v4273_v12  ;;  %v4242_v55 = vmul.f32 %v8346_v60, %v4202_v47  ;;  %v3652_v32 = vmul.f32 %v8257_v17, %v4200_v27  ;;  %v3724_v25 = vmul.f32 %v8267_v42, %v8445_v28  ;;  %v4204_v53 = vld [vmem:[#allocation3 + $0x147] sm:$0xff] }
 0x3e4   : > { %v4170_v5 = vadd.f32 %v4138_v37, %v4066_v33  ;;  %v4346_v54 = vmul.f32 %v8292_v16, %v8471_v9  ;;  %v3963_v43 = vadd.f32 %v3931_v34, %v3859_v6  ;;  %v4035_v40 = vmul.f32 %v8287_v13, %v8438_v30  ;;  %3594 = vst [vmem:[#allocation3 + $0x1f0] sm:$0xff] %v8672_v57 }
 0x3e5   : > { %3593 = vst [vmem:[#allocation3 + $0x1e8] sm:$0xff] %v8676_v61  ;;  %v4481_v22 = vadd.f32 %v4449_v2, %v4377_v58  ;;  %v3756_v63 = vadd.f32 %v3724_v25, %v3652_v32  ;;  %v3828_v27 = vmul.f32 %v8278_v52, %v4408_v48  ;;  %v3932_v1 = vmul.f32 %v8300_v50, %v4202_v47 }
 0x3e6   : > { %v4274_v28 = vadd.f32 %v4242_v55, %v4170_v5  ;;  %v4450_v24 = vmul.f32 %v8362_v20, %v4410_v49  ;;  %v4067_v0 = vadd.f32 %v4035_v40, %v3963_v43  ;;  %v4139_v31 = vmul.f32 %v8310_v23, %v4409_v3 }
 0x3e7   : > { %5528 = vmatmul.mubr.f32.gmra.mrb[44].mxu0 %v4481_v22  ;;  %v4243_v8 = vmul.f32 %v8346_v60, %v4203_v46  ;;  %v3860_v26 = vadd.f32 %v3828_v27, %v3756_v63  ;;  %v3653_v51 = vmul.f32 %v8257_v17, %v4201_v11  ;;  %v3725_v36 = vmul.f32 %v8267_v42, %v8438_v30 }
 0x3e8   : > { %v4378_v59 = vadd.f32 %v4346_v54, %v4274_v28  ;;  %v4171_v48 = vadd.f32 %v4139_v31, %v4067_v0  ;;  %v4347_v21 = vmul.f32 %v8292_v16, %v8464_v4  ;;  %v4036_v62 = vmul.f32 %v8287_v13, %v8471_v9  ;;  %v4412_v54 = vld [vmem:[#allocation3 + $0x149] sm:$0xff] }
 0x3e9   : > { %v3964_v34 = vadd.f32 %v3932_v1, %v3860_v26  ;;  %v3757_v12 = vadd.f32 %v3725_v36, %v3653_v51  ;;  %v3829_v2 = vmul.f32 %v8278_v52, %v4409_v3  ;;  %v3933_v37 = vmul.f32 %v8300_v50, %v4203_v46  ;;  %v4413_v26 = vld [vmem:[#allocation3 + $0x151] sm:$0xff] }
 0x3ea   : > { %v4482_v33 = vadd.f32 %v4450_v24, %v4378_v59  ;;  %v4275_v11 = vadd.f32 %v4243_v8, %v4171_v48  ;;  %v4451_v6 = vmul.f32 %v8362_v20, %v4411_v39  ;;  %v4140_v30 = vmul.f32 %v8310_v23, %v4410_v49 }
 0x3eb   : > { %v4068_v58 = vadd.f32 %v4036_v62, %v3964_v34  ;;  %v3861_v55 = vadd.f32 %v3829_v2, %v3757_v12  ;;  %v8706_v32 = vadd.f32 %v8614_v7, %v8262_v44  ;;  %v8710_v25 = vadd.f32 %v8262_v44, %v8619_v45  ;;  %v4205_v44 = vld [vmem:[#allocation3 + $0x14f] sm:$0xff]  ;;  %v4206_v12 = vld [vmem:[#allocation3 + $0x167] sm:$0xff] }
 0x3ec   : > { %5530 = vmatprep.mubr.f32.mxu0 %v4482_v33  ;;  %v4379_v3 = vadd.f32 %v4347_v21, %v4275_v11  ;;  %v4244_v5 = vmul.f32 %v8346_v60, %v4204_v53  ;;  %v3654_v43 = vmul.f32 %v8257_v17, %v4202_v47  ;;  %v3726_v40 = vmul.f32 %v8267_v42, %v8471_v9 }
 0x3ed   : > { %v4172_v22 = vadd.f32 %v4140_v30, %v4068_v58  ;;  %v4348_v63 = vmul.f32 %v8292_v16, %v8497_v41  ;;  %v3965_v7 = vadd.f32 %v3933_v37, %v3861_v55  ;;  %v4037_v27 = vmul.f32 %v8287_v13, %v8464_v4  ;;  %3596 = vst [vmem:[#allocation3 + $0x210] sm:$0xff] %v8706_v32  ;;  %v4414_v58 = vld [vmem:[#allocation3 + $0x169] sm:$0xff] }
 0x3ee   : > { %3595 = vst [vmem:[#allocation3 + $0x208] sm:$0xff] %v8710_v25  ;;  %v4483_v45 = vadd.f32 %v4451_v6, %v4379_v3  ;;  %v3758_v1 = vadd.f32 %v3726_v40, %v3654_v43  ;;  %v3830_v47 = vmul.f32 %v8278_v52, %v4410_v49  ;;  %v3934_v28 = vmul.f32 %v8300_v50, %v4204_v53 }
 0x3ef   : > { %v4276_v9 = vadd.f32 %v4244_v5, %v4172_v22  ;;  %v4452_v24 = vmul.f32 %v8362_v20, %v4412_v54  ;;  %v4069_v0 = vadd.f32 %v4037_v27, %v3965_v7  ;;  %v4141_v31 = vmul.f32 %v8310_v23, %v4411_v39  ;;  %v4207_v27 = vld [vmem:[#allocation3 + $0x16f] sm:$0xff] }
 0x3f0   : > { %5531 = vmatmul.mubr.f32.gmra.mrb[46].mxu0 %v4483_v45  ;;  %v4245_v8 = vmul.f32 %v8346_v60, %v4205_v44  ;;  %v3862_v51 = vadd.f32 %v3830_v47, %v3758_v1  ;;  %v3655_v36 = vmul.f32 %v8257_v17, %v4203_v46  ;;  %v3727_v59 = vmul.f32 %v8267_v42, %v8464_v4  ;;  %v4415_v45 = vld [vmem:[#allocation3 + $0x171] sm:$0xff] }
 0x3f1   : > { %v4380_v48 = vadd.f32 %v4348_v63, %v4276_v9  ;;  %v4173_v49 = vadd.f32 %v4141_v31, %v4069_v0  ;;  %v4349_v21 = vmul.f32 %v8292_v16, %v8492_v18  ;;  %v4038_v62 = vmul.f32 %v8287_v13, %v8497_v41 }
 0x3f2   : > { %v3966_v34 = vadd.f32 %v3934_v28, %v3862_v51  ;;  %v3759_v2 = vadd.f32 %v3727_v59, %v3655_v36  ;;  %v3831_v37 = vmul.f32 %v8278_v52, %v4411_v39  ;;  %v3935_v33 = vmul.f32 %v8300_v50, %v4205_v44 }
 0x3f3   : > { %v4484_v11 = vadd.f32 %v4452_v24, %v4380_v48  ;;  %v4277_v46 = vadd.f32 %v4245_v8, %v4173_v49  ;;  %v4453_v6 = vmul.f32 %v8362_v20, %v4413_v26  ;;  %v4142_v4 = vmul.f32 %v8310_v23, %v4412_v54 }
 0x3f4   : > { %v4070_v30 = vadd.f32 %v4038_v62, %v3966_v34  ;;  %v3863_v55 = vadd.f32 %v3831_v37, %v3759_v2  ;;  %v3656_v3 = vmul.f32 %v8257_v17, %v4204_v53  ;;  %v3728_v5 = vmul.f32 %v8267_v42, %v8497_v41  ;;  %v4208_v34 = vld [vmem:[#allocation3 + $0x187] sm:$0xff] }
 0x3f5   : > { %5533 = vmatprep.mubr.f32.mxu0 %v4484_v11  ;;  %v4381_v43 = vadd.f32 %v4349_v21, %v4277_v46  ;;  %v4246_v39 = vmul.f32 %v8346_v60, %v4206_v12  ;;  %v4039_v40 = vmul.f32 %v8287_v13, %v8492_v18  ;;  %v3832_v22 = vmul.f32 %v8278_v52, %v4412_v54 }
 0x3f6   : > { %v4174_v63 = vadd.f32 %v4142_v4, %v4070_v30  ;;  %v3967_v7 = vadd.f32 %v3935_v33, %v3863_v55  ;;  %v3760_v1 = vadd.f32 %v3728_v5, %v3656_v3  ;;  %v3936_v47 = vmul.f32 %v8300_v50, %v4206_v12 }
 0x3f7   : > { %v4485_v53 = vadd.f32 %v4453_v6, %v4381_v43  ;;  %v4350_v41 = vmul.f32 %v8292_v16, %v8521_v29  ;;  %v4454_v28 = vmul.f32 %v8362_v20, %v4414_v58  ;;  %v4143_v9 = vmul.f32 %v8310_v23, %v4413_v26 }
 0x3f8   : > { %v4278_v24 = vadd.f32 %v4246_v39, %v4174_v63  ;;  %v4071_v0 = vadd.f32 %v4039_v40, %v3967_v7  ;;  %v3864_v31 = vadd.f32 %v3832_v22, %v3760_v1  ;;  %v3657_v54 = vmul.f32 %v8257_v17, %v4205_v44  ;;  %v4416_v44 = vld [vmem:[#allocation3 + $0x189] sm:$0xff]  ;;  %v8784_v22 = vld [vmem:[%s9070_s18 + $0x2] ss:$0 sm:$0xff] }
 0x3f9   : > { %5534 = vmatmul.mubr.f32.gmra.mrb[48].mxu0 %v4485_v53  ;;  %v4247_v8 = vmul.f32 %v8346_v60, %v4207_v27  ;;  %v4351_v51 = vmul.f32 %v8292_v16, %v8514_v38  ;;  %v4455_v36 = vmul.f32 %v8362_v20, %v4415_v45  ;;  %v3729_v59 = vmul.f32 %v8267_v42, %v8492_v18  ;;  %v8765_v42 = vld [vmem:[%s9070_s18] ss:$0 sm:$0xff]  ;;  %v4209_v39 = vld [vmem:[#allocation3 + $0x18f] sm:$0xff] }
 0x3fa   : > { %v4382_v48 = vadd.f32 %v4350_v41, %v4278_v24  ;;  %v4175_v49 = vadd.f32 %v4143_v9, %v4071_v0  ;;  %v3968_v21 = vadd.f32 %v3936_v47, %v3864_v31  ;;  %v4040_v62 = vmul.f32 %v8287_v13, %v8521_v29 }
 0x3fb   : > { %v4144_v17 = vmul.f32 %v8310_v23, %v4414_v58  ;;  %v3761_v2 = vadd.f32 %v3729_v59, %v3657_v54  ;;  %v3833_v37 = vmul.f32 %v8278_v52, %v4413_v26  ;;  %v3937_v33 = vmul.f32 %v8300_v50, %v4207_v27  ;;  %v8774_v52 = vld [vmem:[%s9070_s18 + $0x1] ss:$0 sm:$0xff] }
 0x3fc   : > { %v4486_v11 = vadd.f32 %v4454_v28, %v4382_v48  ;;  %v4279_v46 = vadd.f32 %v4247_v8, %v4175_v49  ;;  %v4072_v6 = vadd.f32 %v4040_v62, %v3968_v21  ;;  %v3658_v18 = vmul.f32 %v8765_v42, %v4206_v12  ;;  %v4417_v28 = vld [vmem:[#allocation3 + $0x191] sm:$0xff]  ;;  %v4210_v8 = vld [vmem:[#allocation3 + $0x1a7] sm:$0xff]  ;;  %v8818_v21 = vld [vmem:[%s9070_s18 + $0x5] ss:$0 sm:$0xff] }
 0x3fd   : > { %v4248_v4 = vmul.f32 %v8346_v60, %v4208_v34  ;;  %v4352_v30 = vmul.f32 %v8292_v16, %v8556_v15  ;;  %v3865_v55 = vadd.f32 %v3833_v37, %v3761_v2  ;;  %v3730_v26 = vmul.f32 %v8774_v52, %v8521_v29  ;;  %v4418_v37 = vld [vmem:[#allocation3 + $0x1a9] sm:$0xff] }
 0x3fe   : > { %5536 = vmatprep.mubr.f32.mxu0 %v4486_v11  ;;  %v4383_v3 = vadd.f32 %v4351_v51, %v4279_v46  ;;  %v4176_v5 = vadd.f32 %v4144_v17, %v4072_v6  ;;  %v4456_v43 = vmul.f32 %v8362_v20, %v4416_v44  ;;  %v4041_v12 = vmul.f32 %v8287_v13, %v8514_v38 }
 0x3ff   : > { %v3969_v40 = vadd.f32 %v3937_v33, %v3865_v55  ;;  %v3762_v16 = vadd.f32 %v3730_v26, %v3658_v18  ;;  %v3834_v63 = vmul.f32 %v8784_v22, %v4414_v58  ;;  %v3938_v29 = vmul.f32 %v8300_v50, %v4208_v34  ;;  %v8796_v50 = vld [vmem:[%s9070_s18 + $0x7] ss:$0 sm:$0xff]  ;;  %v8803_v58 = vld [vmem:[%s9070_s18 + $0x4] ss:$0 sm:$0xff]  ;;  %v4211_v26 = vld [vmem:[#allocation3 + $0x1af] sm:$0xff] }
 0x400   : > { %v4487_v7 = vadd.f32 %v4455_v36, %v4383_v3  ;;  %v4280_v1 = vadd.f32 %v4248_v4, %v4176_v5  ;;  %v4145_v47 = vmul.f32 %v8310_v23, %v4415_v45  ;;  %v3659_v53 = vmul.f32 %v8765_v42, %v4207_v27  ;;  %v8811_v36 = vld [vmem:[%s9070_s18 + $0x3] ss:$0 sm:$0xff]  ;;  %v4419_v3 = vld [vmem:[#allocation3 + $0x1b1] sm:$0xff] }
 0x401   : > { %v4073_v41 = vadd.f32 %v4041_v12, %v3969_v40  ;;  %v4249_v13 = vmul.f32 %v8346_v60, %v4209_v39  ;;  %v3866_v9 = vadd.f32 %v3834_v63, %v3762_v16  ;;  %v3731_v24 = vmul.f32 %v8774_v52, %v8514_v38 }
 0x402   : > { %5537 = vmatmul.mubr.f32.gmra.mrb[50].mxu0 %v4487_v7  ;;  %v4384_v0 = vadd.f32 %v4352_v30, %v4280_v1  ;;  %v4353_v23 = vmul.f32 %v8796_v50, %v8553_v19  ;;  %v4042_v27 = vmul.f32 %v8803_v58, %v8556_v15  ;;  %v3835_v38 = vmul.f32 %v8784_v22, %v4415_v45 }
 0x403   : > { %v4177_v31 = vadd.f32 %v4145_v47, %v4073_v41  ;;  %v3970_v54 = vadd.f32 %v3938_v29, %v3866_v9  ;;  %v3763_v51 = vadd.f32 %v3731_v24, %v3659_v53  ;;  %v3939_v59 = vmul.f32 %v8811_v36, %v4209_v39  ;;  %v8837_v29 = vld [vmem:[%s9070_s18 + $0x6] ss:$0 sm:$0xff]  ;;  %v4212_v24 = vld [vmem:[#allocation3 + $0x1c7] sm:$0xff] }
 0x404   : > { %v4488_v48 = vadd.f32 %v4456_v43, %v4384_v0  ;;  %v4457_v49 = vmul.f32 %v8362_v20, %v4417_v28  ;;  %v4146_v45 = vmul.f32 %v8818_v21, %v4416_v44  ;;  %v3660_v62 = vmul.f32 %v8765_v42, %v4208_v34 }
 0x405   : > { %v4281_v17 = vadd.f32 %v4249_v13, %v4177_v31  ;;  %v4074_v2 = vadd.f32 %v4042_v27, %v3970_v54  ;;  %v3867_v33 = vadd.f32 %v3835_v38, %v3763_v51  ;;  %v3732_v11 = vmul.f32 %v8774_v52, %v8556_v15 }
 0x406   : > { %5539 = vmatprep.mubr.f32.mxu0 %v4488_v48  ;;  %v4250_v46 = vmul.f32 %v8346_v60, %v4210_v8  ;;  %v4043_v6 = vmul.f32 %v8803_v58, %v8553_v19  ;;  %v3836_v18 = vmul.f32 %v8784_v22, %v4416_v44  ;;  %v3940_v4 = vmul.f32 %v8811_v36, %v4210_v8 }
 0x407   : > { %v4385_v30 = vadd.f32 %v4353_v23, %v4281_v17  ;;  %v4178_v55 = vadd.f32 %v4146_v45, %v4074_v2  ;;  %v3971_v34 = vadd.f32 %v3939_v59, %v3867_v33  ;;  %v3764_v5 = vadd.f32 %v3732_v11, %v3660_v62  ;;  %v4420_v23 = vld [vmem:[#allocation3 + $0x1c9] sm:$0xff] }
 0x408   : > { %v4354_v43 = vmul.f32 %v8796_v50, %v8600_v56  ;;  %v4458_v15 = vmul.f32 %v8362_v20, %v4418_v37  ;;  %v4147_v60 = vmul.f32 %v8818_v21, %v4417_v28  ;;  %v3661_v12 = vmul.f32 %v8765_v42, %v4209_v39  ;;  %v8845_v20 = vld [vmem:[%s9070_s18 + $0x8] ss:$0 sm:$0xff]  ;;  %v4213_v11 = vld [vmem:[#allocation3 + $0x1cf] sm:$0xff] }
 0x409   : > { %v4489_v40 = vadd.f32 %v4457_v49, %v4385_v30  ;;  %v4282_v16 = vadd.f32 %v4250_v46, %v4178_v55  ;;  %v4075_v44 = vadd.f32 %v4043_v6, %v3971_v34  ;;  %v3868_v63 = vadd.f32 %v3836_v18, %v3764_v5 }
 0x40a   : > { %v4251_v7 = vmul.f32 %v8837_v29, %v4211_v26  ;;  %v4355_v1 = vmul.f32 %v8796_v50, %v8597_v10  ;;  %v4459_v39 = vmul.f32 %v8845_v20, %v4419_v3  ;;  %v3733_v47 = vmul.f32 %v8774_v52, %v8553_v19 }
 0x40b   : > { %5540 = vmatmul.mubr.f32.gmra.mrb[52].mxu0 %v4489_v40  ;;  %v4386_v53 = vadd.f32 %v4354_v43, %v4282_v16  ;;  %v4179_v41 = vadd.f32 %v4147_v60, %v4075_v44  ;;  %v3972_v13 = vadd.f32 %v3940_v4, %v3868_v63  ;;  %v4044_v9 = vmul.f32 %v8803_v58, %v8600_v56  ;;  %v4421_v43 = vld [vmem:[#allocation3 + $0x1d1] sm:$0xff]  ;;  %v4214_v63 = vld [vmem:[#allocation3 + $0x1e7] sm:$0xff] }
 0x40c   : > { %v4148_v0 = vmul.f32 %v8818_v21, %v4418_v37  ;;  %v3765_v27 = vadd.f32 %v3733_v47, %v3661_v12  ;;  %v3837_v38 = vmul.f32 %v8784_v22, %v4417_v28  ;;  %v3941_v31 = vmul.f32 %v8811_v36, %v4211_v26 }
 0x40d   : > { %v4490_v54 = vadd.f32 %v4458_v15, %v4386_v53  ;;  %v4283_v51 = vadd.f32 %v4251_v7, %v4179_v41  ;;  %v4076_v59 = vadd.f32 %v4044_v9, %v3972_v13  ;;  %v3662_v19 = vmul.f32 %v8765_v42, %v4210_v8 }
 0x40e   : > { %v4252_v48 = vmul.f32 %v8837_v29, %v4212_v24  ;;  %v4356_v49 = vmul.f32 %v8796_v50, %v8641_v35  ;;  %v3869_v45 = vadd.f32 %v3837_v38, %v3765_v27  ;;  %v3734_v62 = vmul.f32 %v8774_v52, %v8600_v56 }
 0x40f   : > { %5542 = vmatprep.mubr.f32.mxu0 %v4490_v54  ;;  %v4387_v17 = vadd.f32 %v4355_v1, %v4283_v51  ;;  %v4180_v2 = vadd.f32 %v4148_v0, %v4076_v59  ;;  %v4460_v28 = vmul.f32 %v8845_v20, %v4420_v23  ;;  %v4045_v33 = vmul.f32 %v8803_v58, %v8597_v10  ;;  %v4422_v59 = vld [vmem:[#allocation3 + $0x1e9] sm:$0xff] }
 0x410   : > { %v3973_v46 = vadd.f32 %v3941_v31, %v3869_v45  ;;  %v3766_v8 = vadd.f32 %v3734_v62, %v3662_v19  ;;  %v3838_v6 = vmul.f32 %v8784_v22, %v4418_v37  ;;  %v3942_v18 = vmul.f32 %v8811_v36, %v4212_v24  ;;  %v4215_v19 = vld [vmem:[#allocation3 + $0x1ef] sm:$0xff] }
 0x411   : > { %v4491_v4 = vadd.f32 %v4459_v39, %v4387_v17  ;;  %v4284_v30 = vadd.f32 %v4252_v48, %v4180_v2  ;;  %v4149_v55 = vmul.f32 %v8818_v21, %v4419_v3  ;;  %v3663_v56 = vmul.f32 %v8765_v42, %v4211_v26 }
 0x412   : > { %v4077_v34 = vadd.f32 %v4045_v33, %v3973_v46  ;;  %v4253_v5 = vmul.f32 %v8837_v29, %v4213_v11  ;;  %v3870_v15 = vadd.f32 %v3838_v6, %v3766_v8  ;;  %v3735_v60 = vmul.f32 %v8774_v52, %v8597_v10 }
 0x413   : > { %5543 = vmatmul.mubr.f32.gmra.mrb[54].mxu0 %v4491_v4  ;;  %v4388_v12 = vadd.f32 %v4356_v49, %v4284_v30  ;;  %v4357_v37 = vmul.f32 %v8796_v50, %v8637_v14  ;;  %v4046_v40 = vmul.f32 %v8803_v58, %v8641_v35  ;;  %v3839_v16 = vmul.f32 %v8784_v22, %v4419_v3  ;;  %v4423_v4 = vld [vmem:[#allocation3 + $0x1f1] sm:$0xff] }
 0x414   : > { %v4181_v44 = vadd.f32 %v4149_v55, %v4077_v34  ;;  %v3974_v26 = vadd.f32 %v3942_v18, %v3870_v15  ;;  %v3767_v7 = vadd.f32 %v3735_v60, %v3663_v56  ;;  %v3943_v1 = vmul.f32 %v8811_v36, %v4213_v11  ;;  %v4216_v55 = vld [vmem:[#allocation3 + $0x207] sm:$0xff] }
 0x415   : > { %v4492_v39 = vadd.f32 %v4460_v28, %v4388_v12  ;;  %v4461_v47 = vmul.f32 %v8845_v20, %v4421_v43  ;;  %v4150_v10 = vmul.f32 %v8818_v21, %v4420_v23  ;;  %v3664_v53 = vmul.f32 %v8765_v42, %v4212_v24 }
 0x416   : > { %v4285_v41 = vadd.f32 %v4253_v5, %v4181_v44  ;;  %v4078_v13 = vadd.f32 %v4046_v40, %v3974_v26  ;;  %v3871_v9 = vadd.f32 %v3839_v16, %v3767_v7  ;;  %v3736_v0 = vmul.f32 %v8774_v52, %v8641_v35  ;;  %v4424_v44 = vld [vmem:[#allocation3 + $0x209] sm:$0xff] }
 0x417   : > { %5545 = vmatprep.mubr.f32.mxu0 %v4492_v39  ;;  %v4254_v3 = vmul.f32 %v8837_v29, %v4214_v63  ;;  %v4047_v27 = vmul.f32 %v8803_v58, %v8637_v14  ;;  %v3840_v38 = vmul.f32 %v8784_v22, %v4420_v23  ;;  %v3944_v31 = vmul.f32 %v8811_v36, %v4214_v63 }
 0x418   : > { %v4389_v54 = vadd.f32 %v4357_v37, %v4285_v41  ;;  %v4182_v51 = vadd.f32 %v4150_v10, %v4078_v13  ;;  %v3975_v24 = vadd.f32 %v3943_v1, %v3871_v9  ;;  %v3768_v48 = vadd.f32 %v3736_v0, %v3664_v53 }
 0x419   : > { %v4358_v49 = vmul.f32 %v8796_v50, %v8676_v61  ;;  %v4151_v35 = vmul.f32 %v8818_v21, %v4421_v43  ;;  %v3665_v45 = vmul.f32 %v8765_v42, %v4213_v11  ;;  %v4462_v23 = vmul.f32 %v8845_v20, %v4422_v59 }
 0x41a   : > { %v4493_v62 = vadd.f32 %v4461_v47, %v4389_v54  ;;  %v4286_v17 = vadd.f32 %v4254_v3, %v4182_v51  ;;  %v4079_v2 = vadd.f32 %v4047_v27, %v3975_v24  ;;  %v3872_v28 = vadd.f32 %v3840_v38, %v3768_v48  ;;  %v4218_v48 = vld [vmem:[#allocation3 + $0x227] sm:$0xff] }
 0x41b   : > { %v4255_v33 = vmul.f32 %v8837_v29, %v4215_v19  ;;  %v4359_v46 = vmul.f32 %v8796_v50, %v8672_v57  ;;  %v3737_v8 = vmul.f32 %v8774_v52, %v8637_v14  ;;  %v4048_v11 = vmul.f32 %v8803_v58, %v8676_v61 }
 0x41c   : > { %5546 = vmatmul.mubr.f32.gmra.mrb[56].mxu0 %v4493_v62  ;;  %v4390_v6 = vadd.f32 %v4358_v49, %v4286_v17  ;;  %v4183_v18 = vadd.f32 %v4151_v35, %v4079_v2  ;;  %v3976_v30 = vadd.f32 %v3944_v31, %v3872_v28  ;;  %v4152_v56 = vmul.f32 %v8818_v21, %v4422_v59 }
 0x41d   : > { %v3769_v34 = vadd.f32 %v3737_v8, %v3665_v45  ;;  %v3841_v5 = vmul.f32 %v8784_v22, %v4421_v43  ;;  %v3945_v15 = vmul.f32 %v8811_v36, %v4215_v19  ;;  %v3666_v14 = vmul.f32 %v8765_v42, %v4214_v63  ;;  %v4217_v63 = vld [vmem:[#allocation3 + $0x20f] sm:$0xff] }
 0x41e   : > { %v4494_v60 = vadd.f32 %v4462_v23, %v4390_v6  ;;  %v4287_v12 = vadd.f32 %v4255_v33, %v4183_v18  ;;  %v4080_v37 = vadd.f32 %v4048_v11, %v3976_v30  ;;  %v4463_v40 = vmul.f32 %v8845_v20, %v4423_v4  ;;  %v4425_v45 = vld [vmem:[#allocation3 + $0x211] sm:$0xff] }
 0x41f   : > { %v4256_v16 = vmul.f32 %v8837_v29, %v4216_v55  ;;  %v3873_v26 = vadd.f32 %v3841_v5, %v3769_v34  ;;  %v3738_v7 = vmul.f32 %v8774_v52, %v8676_v61  ;;  %v4360_v43 = vmul.f32 %v8796_v50, %v8710_v25  ;;  %v4219_v6 = vld [vmem:[#allocation3 + $0x22f] sm:$0xff] }
 0x420   : > { %5548 = vmatprep.mubr.f32.mxu0 %v4494_v60  ;;  %v4391_v1 = vadd.f32 %v4359_v46, %v4287_v12  ;;  %v4184_v39 = vadd.f32 %v4152_v56, %v4080_v37  ;;  %v4049_v47 = vmul.f32 %v8803_v58, %v8672_v57  ;;  %v3842_v41 = vmul.f32 %v8784_v22, %v4422_v59  ;;  %v5904_v46 = vld [vmem:[#allocation2 + $0x8] sm:$0xff]  ;;  %v4427_v60 = vld [vmem:[#allocation3 + $0x231] sm:$0xff] }
 0x421   : > { %v3977_v10 = vadd.f32 %v3945_v15, %v3873_v26  ;;  %v3770_v53 = vadd.f32 %v3738_v7, %v3666_v14  ;;  %v3946_v13 = vmul.f32 %v8811_v36, %v4216_v55  ;;  %v4464_v61 = vmul.f32 %v8845_v20, %v4424_v44 }
 0x422   : > { %v4495_v9 = vadd.f32 %v4463_v40, %v4391_v1  ;;  %v4288_v0 = vadd.f32 %v4256_v16, %v4184_v39  ;;  %v3667_v3 = vmul.f32 %v8765_v42, %v4215_v19  ;;  %v4153_v38 = vmul.f32 %v8818_v21, %v4423_v4 }
 0x423   : > { %v4081_v27 = vadd.f32 %v4049_v47, %v3977_v10  ;;  %v3874_v31 = vadd.f32 %v3842_v41, %v3770_v53  ;;  %v3739_v54 = vmul.f32 %v8774_v52, %v8672_v57  ;;  %v4257_v24 = vmul.f32 %v8837_v29, %v4217_v63 }
 0x424   : > { %5549 = vmatmul.mubr.f32.gmra.mrb[58].mxu0 %v4495_v9  ;;  %v4392_v51 = vadd.f32 %v4360_v43, %v4288_v0  ;;  %v4050_v59 = vmul.f32 %v8803_v58, %v8710_v25  ;;  %v3843_v49 = vmul.f32 %v8784_v22, %v4423_v4  ;;  %v3947_v62 = vmul.f32 %v8811_v36, %v4217_v63  ;;  %v4426_v25 = vld [vmem:[#allocation3 + $0x229] sm:$0xff] }
 0x425   : > { %v4185_v35 = vadd.f32 %v4153_v38, %v4081_v27  ;;  %v3978_v42 = vadd.f32 %v3946_v13, %v3874_v31  ;;  %v3771_v19 = vadd.f32 %v3739_v54, %v3667_v3  ;;  %v4361_v57 = vmul.f32 %v8796_v50, %v8706_v32 }
 0x426   : > { %v4496_v17 = vadd.f32 %v4464_v61, %v4392_v51  ;;  %v4154_v52 = vmul.f32 %v8818_v21, %v4424_v44  ;;  %v4258_v23 = vmul.f32 %v8837_v29, %v4218_v48  ;;  %v4465_v22 = vmul.f32 %v8845_v20, %v4425_v45 }
 0x427   : > { %v4289_v2 = vadd.f32 %v4257_v24, %v4185_v35  ;;  %v4082_v28 = vadd.f32 %v4050_v59, %v3978_v42  ;;  %v3875_v33 = vadd.f32 %v3843_v49, %v3771_v19  ;;  %v4362_v8 = vmul.f32 %v5904_v46, %v8796_v50 }
 0x428   : > { %5551 = vmatprep.mubr.f32.mxu0 %v4496_v17  ;;  %v4051_v30 = vmul.f32 %v8803_v58, %v8706_v32  ;;  %v4466_v11 = vmul.f32 %v8845_v20, %v4426_v25  ;;  %v4155_v55 = vmul.f32 %v8818_v21, %v4425_v45  ;;  %v4259_v15 = vmul.f32 %v8837_v29, %v4219_v6 }
 0x429   : > { %v4393_v36 = vadd.f32 %v4361_v57, %v4289_v2  ;;  %v4186_v18 = vadd.f32 %v4154_v52, %v4082_v28  ;;  %v3979_v4 = vadd.f32 %v3947_v62, %v3875_v33  ;;  %v4467_v40 = vmul.f32 %v8845_v20, %v4427_v60 }
 0x42b   : > { %v4497_v56 = vadd.f32 %v4465_v22, %v4393_v36  ;;  %v4290_v34 = vadd.f32 %v4258_v23, %v4186_v18  ;;  %v4083_v5 = vadd.f32 %v4051_v30, %v3979_v4 }
 0x42d   : > { %5552 = vmatmul.mubr.f32.gmra.mrb[60].mxu0 %v4497_v56  ;;  %v4394_v50 = vadd.f32 %v4362_v8, %v4290_v34  ;;  %v4187_v12 = vadd.f32 %v4155_v55, %v4083_v5 }
 0x42f   : > { %v4498_v37 = vadd.f32 %v4466_v11, %v4394_v50  ;;  %v4291_v14 = vadd.f32 %v4259_v15, %v4187_v12 }
 0x431   : > { %5554 = vmatprep.mubr.f32.mxu0 %v4498_v37  ;;  %v4395_v32 = vadd.f32 %v4362_v8, %v4291_v14 }
 0x433   : > { %v4499_v58 = vadd.f32 %v4467_v40, %v4395_v32 }
 0x435   : > { %5555 = vmatmul.mubr.f32.gmra.mrb[62].mxu0 %v4499_v58 }
 0x484   : > { %v5511_v16 = vpop.f32.mrb[32].mxu0 }
 0x485   : > { %v4742_v21 = vmax.f32 %v5511_v16, 0.0  ;;  %v4582_v44 = vpop.f32.mrb[33].mxu0 }
 0x486   : > { %v4741_v26 = vmax.f32 %v4582_v44, 0.0 }
 0x487   : > { %4774 = vst [vmem:[%s8937_s22 + $0x8] sm:$0xff] %v4742_v21 }
 0x488   : > { %4773 = vst [vmem:[%s8937_s22] sm:$0xff] %v4741_v26 }
 0x489   : > { %v5514_v29 = vpop.f32.mrb[34].mxu0 }
 0x48a   : > { %v4744_v20 = vmax.f32 %v5514_v29, 0.0  ;;  %v4592_v7 = vpop.f32.mrb[35].mxu0 }
 0x48b   : > { %v4743_v1 = vmax.f32 %v4592_v7, 0.0 }
 0x48c   : > { %4776 = vst [vmem:[%s8937_s22 + $0x18] sm:$0xff] %v4744_v20 }
 0x48d   : > { %4775 = vst [vmem:[%s8937_s22 + $0x10] sm:$0xff] %v4743_v1 }
 0x496   : > { %v5517_v39 = vpop.f32.mrb[36].mxu0 }
 0x497   : > { %v4746_v43 = vmax.f32 %v5517_v39, 0.0  ;;  %v4602_v47 = vpop.f32.mrb[37].mxu0 }
 0x498   : > { %v4745_v10 = vmax.f32 %v4602_v47, 0.0 }
 0x499   : > { %4778 = vst [vmem:[%s8937_s22 + $0x28] sm:$0xff] %v4746_v43 }
 0x49a   : > { %4777 = vst [vmem:[%s8937_s22 + $0x20] sm:$0xff] %v4745_v10 }
 0x49f   : > { %v5520_v63 = vpop.f32.mrb[38].mxu0 }
 0x4a0   : > { %v4748_v53 = vmax.f32 %v5520_v63, 0.0  ;;  %v4612_v41 = vpop.f32.mrb[39].mxu0 }
 0x4a1   : > { %v4747_v13 = vmax.f32 %v4612_v41, 0.0 }
 0x4a2   : > { %4780 = vst [vmem:[%s8937_s22 + $0x38] sm:$0xff] %v4748_v53 }
 0x4a3   : > { %4779 = vst [vmem:[%s8937_s22 + $0x30] sm:$0xff] %v4747_v13 }
 0x4a8   : > { %v5523_v9 = vpop.f32.mrb[40].mxu0 }
 0x4a9   : > { %v4750_v0 = vmax.f32 %v5523_v9, 0.0  ;;  %v4622_v61 = vpop.f32.mrb[41].mxu0 }
 0x4aa   : > { %v4749_v3 = vmax.f32 %v4622_v61, 0.0 }
 0x4ab   : > { %4782 = vst [vmem:[%s8937_s22 + $0x48] sm:$0xff] %v4750_v0 }
 0x4ac   : > { %4781 = vst [vmem:[%s8937_s22 + $0x40] sm:$0xff] %v4749_v3 }
 0x4b1   : > { %v5526_v27 = vpop.f32.mrb[42].mxu0 }
 0x4b2   : > { %v4752_v38 = vmax.f32 %v5526_v27, 0.0  ;;  %v4632_v31 = vpop.f32.mrb[43].mxu0 }
 0x4b3   : > { %v4751_v54 = vmax.f32 %v4632_v31, 0.0 }
 0x4b4   : > { %4784 = vst [vmem:[%s8937_s22 + $0x58] sm:$0xff] %v4752_v38 }
 0x4b5   : > { %4783 = vst [vmem:[%s8937_s22 + $0x50] sm:$0xff] %v4751_v54 }
 0x4ba   : > { %v5529_v51 = vpop.f32.mrb[44].mxu0 }
 0x4bb   : > { %v4754_v24 = vmax.f32 %v5529_v51, 0.0  ;;  %v4642_v59 = vpop.f32.mrb[45].mxu0 }
 0x4bc   : > { %v4753_v48 = vmax.f32 %v4642_v59, 0.0 }
 0x4bd   : > { %4786 = vst [vmem:[%s8937_s22 + $0x68] sm:$0xff] %v4754_v24 }
 0x4be   : > { %4785 = vst [vmem:[%s8937_s22 + $0x60] sm:$0xff] %v4753_v48 }
 0x4c3   : > { %v5532_v49 = vpop.f32.mrb[46].mxu0 }
 0x4c4   : > { %v4756_v35 = vmax.f32 %v5532_v49, 0.0  ;;  %v4652_v45 = vpop.f32.mrb[47].mxu0 }
 0x4c5   : > { %v4755_v42 = vmax.f32 %v4652_v45, 0.0 }
 0x4c6   : > { %4788 = vst [vmem:[%s8937_s22 + $0x78] sm:$0xff] %v4756_v35 }
 0x4c7   : > { %4787 = vst [vmem:[%s8937_s22 + $0x70] sm:$0xff] %v4755_v42 }
 0x4cc   : > { %v5535_v19 = vpop.f32.mrb[48].mxu0 }
 0x4cd   : > { %v4758_v62 = vmax.f32 %v5535_v19, 0.0  ;;  %v4662_v17 = vpop.f32.mrb[49].mxu0 }
 0x4ce   : > { %v4757_v57 = vmax.f32 %v4662_v17, 0.0 }
 0x4cf   : > { %4790 = vst [vmem:[%s8937_s22 + $0x88] sm:$0xff] %v4758_v62 }
 0x4d0   : > { %4789 = vst [vmem:[%s8937_s22 + $0x80] sm:$0xff] %v4757_v57 }
 0x4d5   : > { %v5538_v52 = vpop.f32.mrb[50].mxu0 }
 0x4d6   : > { %v4760_v2 = vmax.f32 %v5538_v52, 0.0  ;;  %v4672_v28 = vpop.f32.mrb[51].mxu0 }
 0x4d7   : > { %v4759_v23 = vmax.f32 %v4672_v28, 0.0 }
 0x4d8   : > { %4792 = vst [vmem:[%s8937_s22 + $0x98] sm:$0xff] %v4760_v2 }
 0x4d9   : > { %4791 = vst [vmem:[%s8937_s22 + $0x90] sm:$0xff] %v4759_v23 }
 0x4de   : > { %v5541_v25 = vpop.f32.mrb[52].mxu0 }
 0x4df   : > { %v4762_v33 = vmax.f32 %v5541_v25, 0.0  ;;  %v4682_v22 = vpop.f32.mrb[53].mxu0 }
 0x4e0   : > { %v4761_v46 = vmax.f32 %v4682_v22, 0.0 }
 0x4e1   : > { %4794 = vst [vmem:[%s8937_s22 + $0xa8] sm:$0xff] %v4762_v33 }
 0x4e2   : > { %4793 = vst [vmem:[%s8937_s22 + $0xa0] sm:$0xff] %v4761_v46 }
 0x4e6   : > { %v5544_v8 = vpop.f32.mrb[54].mxu0 }
 0x4e7   : > { %v4764_v6 = vmax.f32 %v5544_v8, 0.0  ;;  %v4692_v36 = vpop.f32.mrb[55].mxu0 }
 0x4e8   : > { %v4763_v18 = vmax.f32 %v4692_v36, 0.0 }
 0x4e9   : > { %4796 = vst [vmem:[%s8937_s22 + $0xb8] sm:$0xff] %v4764_v6 }
 0x4ea   : > { %4795 = vst [vmem:[%s8937_s22 + $0xb0] sm:$0xff] %v4763_v18 }
 0x4ef   : > { %v5547_v4 = vpop.f32.mrb[56].mxu0 }
 0x4f0   : > { %v4766_v30 = vmax.f32 %v5547_v4, 0.0  ;;  %v4702_v11 = vpop.f32.mrb[57].mxu0 }
 0x4f1   : > { %v4765_v55 = vmax.f32 %v4702_v11, 0.0 }
 0x4f2   : > { %4798 = vst [vmem:[%s8937_s22 + $0xc8] sm:$0xff] %v4766_v30 }
 0x4f3   : > { %4797 = vst [vmem:[%s8937_s22 + $0xc0] sm:$0xff] %v4765_v55 }
 0x4f7   : > { %v5550_v56 = vpop.f32.mrb[58].mxu0 }
 0x4f8   : > { %v4768_v34 = vmax.f32 %v5550_v56, 0.0  ;;  %v4712_v5 = vpop.f32.mrb[59].mxu0 }
 0x4f9   : > { %v4767_v15 = vmax.f32 %v4712_v5, 0.0 }
 0x4fa   : > { %4800 = vst [vmem:[%s8937_s22 + $0xd8] sm:$0xff] %v4768_v34 }
 0x4fb   : > { %4799 = vst [vmem:[%s8937_s22 + $0xd0] sm:$0xff] %v4767_v15 }
 0x500   : > { %v5553_v60 = vpop.f32.mrb[60].mxu0 }
 0x501   : > { %v4770_v50 = vmax.f32 %v5553_v60, 0.0  ;;  %v4722_v12 = vpop.f32.mrb[61].mxu0 }
 0x502   : > { %v4769_v37 = vmax.f32 %v4722_v12, 0.0 }
 0x503   : > { %4802 = vst [vmem:[%s8937_s22 + $0xe8] sm:$0xff] %v4770_v50 }
 0x504   : > { %4801 = vst [vmem:[%s8937_s22 + $0xe0] sm:$0xff] %v4769_v37 }
 0x508   : > { %v5556_v14 = vpop.f32.mrb[62].mxu0 }
 0x509   : > { %v4772_v40 = vmax.f32 %v5556_v14, 0.0  ;;  %v4732_v32 = vpop.f32.mrb[63].mxu0 }
 0x50a   : > { %v4771_v58 = vmax.f32 %v4732_v32, 0.0 }
 0x50b   : > { %4804 = vst [vmem:[%s8937_s22 + $0xf8] sm:$0xff] %v4772_v40 }
 0x50c   : > { %4803 = vst [vmem:[%s8937_s22 + $0xf0] sm:$0xff] %v4771_v58 }
 0x50d   : > { %6144 = shalt.err (!%p6141_p11)
}
 0x50e   : > { %s6145_s22 = scalar_lea.hbm %s8974_s13, 4096  ;;  %s6149_s23 = scalar_lea.hbm %s9072_s1, 8192 }
 0x50f   : > { %p6146_p12 = scmp.ne.s32.totalorder %s8974_s13, %s6145_s22  ;;  %p6150_p9 = scmp.lt.u32.totalorder %s8974_s13, %s9072_s1 }
 0x510   : > { %p6151_p7 = scmp.lt.u32.totalorder %s6149_s23, %s6145_s22  ;;  %p6153_p4 = scmp.lt.u32.totalorder %s6145_s22, %s8974_s13 }
 0x511   : > { %p6147_p0 = pnand %p6146_p12, %p9073_p13 }
 0x512   : > { %p6152_p10 = por %p6151_p7, %p6150_p9 }
 0x513   : > { %p6148_p5 = pneg %p6147_p0 }
 0x514   : > { %p6154_p1 = por %p6153_p4, %p6152_p10 }
 0x516   : > { %p6155_p3 = pnand %p6154_p1, %p6148_p5 }
 0x518   : > { %6158 = shalt.err (!%p6155_p3)
}
 0x519   : > { %s6227_s30 = smov 128   ;;  %s6228_s11 = smov 8  }
 0x51a   : > { %5779 = dma.vmem_to_hbm [thread:$0]  (%p9073_p13), %s8976_s7, 4096, %s8974_s13, %s4806_s10, %s6227_s30, %s6227_s30, %s6228_s11  }
 0x51b PF: > { %s4834_s19 = sand.u32 1, %s6201_s25   ;;  %p9074_p2 = scmp.ne.s32.totalorder %s9057_s17, 0 }
 0x51c   : > { %p9075_p8 = scmp.ge.s32.totalorder %s6213_s28, 2  ;;  %s4835_s22 = scalar_lea.sflag [#allocation6], %s4834_s19 }
 0x51e   : > { %p5808_p6 = pnand %p9075_p8, %p9074_p2 }
 0x520   : > { %6196 = dma.done.wait (!%p5808_p6), %s4835_s22, 4096  }
 0x521   : > { %6198 = vsyncadd (!%p5808_p6), %s4835_s22, 4294963200  ;;  %p30_p11 = scmp.ge.s32.totalorder %s6506_s16, 4   ;;  %s9076_s25 = smov %s6205_s26 }
 0x522   : > { %s9077_s26 = smov %s6209_s27  ;;  %s9078_s27 = smov %s6518_s29 }
 0x523   : > { %s9079_s28 = smov %s6506_s16  ;;  %32 = sbr.rel (!%p30_p11) target bundleno = 16 (0x10), region = 175 }
 0x52a   :  { %4840 = vsyncpa [#allocation5], 1 }
 0x52b   :  { %4842 = vsyncpa [#allocation5 + $0x1], 1 }
 0x52c   :  { %4843 = vsyncpa [#allocation8], 1 }
 0x52d   :  { %4844 = vsyncpa [#allocation11], 1 }
 0x52e   :  { %4845 = vsyncpa [#allocation14], 1 }
 0x52f   :  { %4846 = vsyncpa [#allocation17], 1 }
 0x530   :  { %4847 = vsyncpa [#allocation6], 1 }
 0x531   :  { %4849 = vsyncpa [#allocation6 + $0x1], 1 }

</bundles_post_ra>
